<compile_context>
chip_gen: v5e
topology: v5e:2x2
jax: 0.10.0
libtpu: 0.0.40
codegen_flags: <defaults>
</compile_context>

<pallas_src>
import functools
import jax
import jax.numpy as jnp
from jax.experimental import pallas as pl
from jax.experimental.pallas import tpu as pltpu

# --------------------------- small synthetic config -------------------------
VOCAB = 64
D_MODEL = 128                       # lane-dense (multiple of 128)
N_HEADS = 4
HEAD_DIM = D_MODEL // N_HEADS       # 32
D_FF = 256
N_LAYERS = 2
LORA_R = 8
LORA_ALPHA = 16
LORA_SCALE = LORA_ALPHA / LORA_R    # PEFT scaling alpha / r
RMS_EPS = 1e-5
DTYPE = jnp.float32                 # config.dtype == 'float32' branch


# ------------------------------ Pallas kernels ------------------------------
def _norm_matmul_kernel(x_ref, g_ref, w_ref, o_ref, *, eps):
    # fused RMSNorm + (merged-LoRA) projection: o = rmsnorm(x) * g @ W
    x = x_ref[...].astype(jnp.float32)
    var = jnp.mean(x * x, axis=-1, keepdims=True)
    xn = x * jax.lax.rsqrt(var + eps) * g_ref[...].astype(jnp.float32)
    o_ref[...] = jnp.dot(xn, w_ref[...].astype(jnp.float32),
                         preferred_element_type=jnp.float32).astype(o_ref.dtype)


def norm_matmul(x2d, g, w):
    # TODO(synk): at production sizes (D=4096, S>=512) add BlockSpec row/K
    # tiling + vmem_limit_bytes (halve tiles for v7x's 64 MiB VMEM).
    n = x2d.shape[0]
    d_out = w.shape[1]
    return pl.pallas_call(
        functools.partial(_norm_matmul_kernel, eps=RMS_EPS),
        out_shape=jax.ShapeDtypeStruct((n, d_out), x2d.dtype),
    )(x2d, g, w)


def _attention_block_kernel(qkv_ref, h_ref, cos_ref, sin_ref, mask_ref, wo_ref,
                            o_ref, *, n_heads, head_dim, scale):
    # Bidirectional attention (LLM2Vec-mntp removes the causal mask); fuses
    # RoPE, softmax, o_proj and the residual add.  One batch element per grid
    # step (grid axis marked "parallel" -> TC sharding on v7x).
    d = n_heads * head_dim
    qkv = qkv_ref[0].astype(jnp.float32)        # [S, 3D]
    h = h_ref[0].astype(jnp.float32)            # [S, D]
    cos = cos_ref[...].astype(jnp.float32)      # [S, Dh]
    sin = sin_ref[...].astype(jnp.float32)      # [S, Dh]
    key_ok = mask_ref[...][0, 0] > 0.5          # bool [S]
    half = head_dim // 2

    def apply_rope(x):                          # x: [S, Dh]
        x1 = x[:, :half]
        x2 = x[:, half:]
        rot = jnp.concatenate([-x2, x1], axis=-1)
        return x * cos + rot * sin

    head_outs = []
    for hh in range(n_heads):                   # static unrolled loop, H=4
        lo = hh * head_dim
        q = apply_rope(qkv[:, lo:lo + head_dim])
        k = apply_rope(qkv[:, d + lo:d + lo + head_dim])
        v = qkv[:, 2 * d + lo:2 * d + lo + head_dim]
        # q @ k^T without an explicit transpose: contract last dims of both.
        s = jax.lax.dot_general(q, k, (((1,), (1,)), ((), ())),
                                preferred_element_type=jnp.float32) * scale
        s = jnp.where(key_ok[None, :], s, -1e9)  # finite mask (bf16-safe)
        s = s - jnp.max(s, axis=-1, keepdims=True)
        p = jnp.exp(s)
        p = p * pl.reciprocal(jnp.sum(p, axis=-1, keepdims=True), approx=True)
        head_outs.append(jnp.dot(p, v, preferred_element_type=jnp.float32))
    attn = jnp.concatenate(head_outs, axis=-1)   # [S, D], lane-dense
    out = h + jnp.dot(attn, wo_ref[...].astype(jnp.float32),
                      preferred_element_type=jnp.float32)
    o_ref[0] = out.astype(o_ref.dtype)


def attention_block(qkv, h, cos, sin, mask3d, w_o):
    B, S, D = h.shape
    scale = 1.0 / (HEAD_DIM ** 0.5)
    return pl.pallas_call(
        functools.partial(_attention_block_kernel, n_heads=N_HEADS,
                          head_dim=HEAD_DIM, scale=scale),
        grid=(B,),
        in_specs=[pl.BlockSpec((1, S, 3 * D), lambda b: (b, 0, 0)),
                  pl.BlockSpec((1, S, D), lambda b: (b, 0, 0)),
                  pl.BlockSpec((S, HEAD_DIM), lambda b: (0, 0)),
                  pl.BlockSpec((S, HEAD_DIM), lambda b: (0, 0)),
                  pl.BlockSpec((1, 1, S), lambda b: (b, 0, 0)),
                  pl.BlockSpec((D, D), lambda b: (0, 0))],
        out_specs=pl.BlockSpec((1, S, D), lambda b: (b, 0, 0)),
        out_shape=jax.ShapeDtypeStruct((B, S, D), h.dtype),
        compiler_params=pltpu.CompilerParams(
            dimension_semantics=("parallel",)),
    )(qkv, h, cos, sin, mask3d, w_o)


def _mlp_block_kernel(h_ref, g_ref, wgu_ref, wd_ref, o_ref, *, eps, d_ff):
    # fused RMSNorm + [gate|up] matmul + SwiGLU + down_proj + residual
    h = h_ref[...].astype(jnp.float32)
    var = jnp.mean(h * h, axis=-1, keepdims=True)
    xn = h * jax.lax.rsqrt(var + eps) * g_ref[...].astype(jnp.float32)
    gu = jnp.dot(xn, wgu_ref[...].astype(jnp.float32),
                 preferred_element_type=jnp.float32)       # [N, 2*d_ff]
    gate = gu[:, :d_ff]
    up = gu[:, d_ff:]
    act = gate * jax.nn.sigmoid(gate) * up                  # silu(gate) * up
    o_ref[...] = (h + jnp.dot(act, wd_ref[...].astype(jnp.float32),
                              preferred_element_type=jnp.float32)
                  ).astype(o_ref.dtype)


def mlp_block(h2d, g, w_gu, w_down):
    n, d = h2d.shape
    return pl.pallas_call(
        functools.partial(_mlp_block_kernel, eps=RMS_EPS, d_ff=D_FF),
        out_shape=jax.ShapeDtypeStruct((n, d), h2d.dtype),
    )(h2d, g, w_gu, w_down)


def _final_pool_kernel(h_ref, g_ref, mask_ref, o_ref, *, eps):
    # fused final RMSNorm + masked mean pooling (pooling_mode='mean')
    h = h_ref[...].astype(jnp.float32)          # [B, S, D]
    var = jnp.mean(h * h, axis=-1, keepdims=True)
    xn = h * jax.lax.rsqrt(var + eps) * g_ref[...].astype(jnp.float32)
    m = mask_ref[...].astype(jnp.float32)       # [B, S]
    num = jnp.sum(xn * m[:, :, None], axis=1)   # [B, D]
    den = jnp.maximum(jnp.sum(m, axis=1, keepdims=True), 1.0)
    o_ref[...] = (num / den).astype(o_ref.dtype)


def final_pool(h, g, mask_f):
    B, S, D = h.shape
    return pl.pallas_call(
        functools.partial(_final_pool_kernel, eps=RMS_EPS),
        out_shape=jax.ShapeDtypeStruct((B, D), h.dtype),
    )(h, g, mask_f)


# ------------------------------- JAX glue -----------------------------------
def rope_tables(seq_len, head_dim):
    half = head_dim // 2
    inv_freq = 1.0 / (10000.0 ** (jnp.arange(half, dtype=jnp.float32) / half))
    ang = jnp.arange(seq_len, dtype=jnp.float32)[:, None] * inv_freq[None, :]
    cos = jnp.concatenate([jnp.cos(ang), jnp.cos(ang)], -1).astype(DTYPE)
    sin = jnp.concatenate([jnp.sin(ang), jnp.sin(ang)], -1).astype(DTYPE)
    return cos, sin                              # each [S, Dh]


def init_params(key):
    cnt = [0]

    def nk():
        cnt[0] += 1
        return jax.random.fold_in(key, cnt[0])

    def norm(shape, scale):
        return (scale * jax.random.normal(nk(), shape, jnp.float32)).astype(DTYPE)

    def merged_lora(d_out, d_in):
        # base + LoRA merged at load time (exact for inference); scale folded
        # into the merge; pre-transposed to [D_in, D_out] so kernels never .T
        w = norm((d_out, d_in), 0.05)
        a = norm((LORA_R, d_in), 0.05)
        # NOTE: PEFT initializes LoRA B to zero; nonzero here so the merge
        # path is actually exercised numerically.
        b = norm((d_out, LORA_R), 0.05)
        w_eff = w + LORA_SCALE * (b @ a)
        return w_eff.T.astype(DTYPE)

    params = {'embed': norm((VOCAB, D_MODEL), 0.02), 'layers': []}
    for _ in range(N_LAYERS):
        wq = merged_lora(D_MODEL, D_MODEL)
        wk = merged_lora(D_MODEL, D_MODEL)
        wv = merged_lora(D_MODEL, D_MODEL)
        wo = merged_lora(D_MODEL, D_MODEL)
        wg = merged_lora(D_FF, D_MODEL)
        wu = merged_lora(D_FF, D_MODEL)
        wd = merged_lora(D_MODEL, D_FF)
        params['layers'].append({
            'ln1': jnp.ones((1, D_MODEL), DTYPE),
            'ln2': jnp.ones((1, D_MODEL), DTYPE),
            'w_qkv': jnp.concatenate([wq, wk, wv], axis=1),   # [D, 3D]
            'w_o': wo,                                        # [D, D]
            'w_gu': jnp.concatenate([wg, wu], axis=1),        # [D, 2*D_FF]
            'w_down': wd,                                     # [D_FF, D]
        })
    params['ln_f'] = jnp.ones((1, D_MODEL), DTYPE)
    return params


def encode(params, input_ids, attention_mask):
    # TODO(synk): HF AutoTokenizer / checkpoint + PEFT loading have no Pallas
    # equivalent; inputs here are pre-tokenized ids + attention mask.
    B, S = input_ids.shape
    mask_f = attention_mask.astype(DTYPE)               # [B, S]
    mask3d = mask_f[:, None, :]                          # [B, 1, S]
    cos, sin = rope_tables(S, HEAD_DIM)

    h = jnp.take(params['embed'], input_ids, axis=0)     # [B, S, D]

    for lyr in params['layers']:
        # --- attention block: (norm + fused QKV), (RoPE+attn+o_proj+resid) ---
        qkv = norm_matmul(h.reshape(B * S, D_MODEL), lyr['ln1'], lyr['w_qkv'])
        qkv = qkv.reshape(B, S, 3 * D_MODEL)
        h = attention_block(qkv, h, cos, sin, mask3d, lyr['w_o'])

        # --- SwiGLU MLP block: single fused kernel (norm+gu+swiglu+down+resid)
        h = mlp_block(h.reshape(B * S, D_MODEL), lyr['ln2'],
                      lyr['w_gu'], lyr['w_down']).reshape(B, S, D_MODEL)

    return final_pool(h, params['ln_f'], mask_f)          # [B, D]


# ---------------------------------- main -------------------------------------
if __name__ == "__main__":
    key = jax.random.PRNGKey(0)
    params = init_params(key)

    B, S = 2, 8
    input_ids = jax.random.randint(jax.random.fold_in(key, 1000),
                                   (B, S), 0, VOCAB, dtype=jnp.int32)
    # second sequence padded after 5 tokens
    attention_mask = jnp.array([[1, 1, 1, 1, 1, 1, 1, 1],
                                [1, 1, 1, 1, 1, 0, 0, 0]], dtype=jnp.int32)

    encode_fn = jax.jit(functools.partial(encode, params))
    emb = encode_fn(input_ids, attention_mask)
    jax.block_until_ready(emb)
    assert emb.shape == (B, D_MODEL) and emb.dtype == DTYPE
    assert bool(jnp.all(jnp.isfinite(emb)))
    print("KERNEL_OK")
</pallas_src>

<mosaic_0001>
module attributes {stable_mosaic.version = 11 : i64} {
  func.func @_mlp_block_kernel(%arg0: memref<16x128xf32, #tpu.memory_space<vmem>>, %arg1: memref<1x128xf32, #tpu.memory_space<vmem>>, %arg2: memref<128x512xf32, #tpu.memory_space<vmem>>, %arg3: memref<256x128xf32, #tpu.memory_space<vmem>>, %arg4: memref<16x128xf32, #tpu.memory_space<vmem>>) attributes {dimension_semantics = [], scalar_prefetch = 0 : i64, scratch_operands = 0 : i64, tpu.core_type = #tpu.core_type<tc>} {
    %c0 = arith.constant 0 : index
    %c0_0 = arith.constant 0 : index
    %0 = vector.load %arg0[%c0, %c0_0] : memref<16x128xf32, #tpu.memory_space<vmem>>, vector<16x128xf32>
    %1 = arith.mulf %0, %0 : vector<16x128xf32>
    %cst = arith.constant dense<0.000000e+00> : vector<16xf32>
    %2 = vector.multi_reduction <add>, %1, %cst [1] : vector<16x128xf32> to vector<16xf32>
    %3 = vector.shape_cast %2 : vector<16xf32> to vector<16x1xf32>
    %cst_1 = arith.constant 1.280000e+02 : f32
    %4 = vector.broadcast %cst_1 : f32 to vector<16x1xf32>
    %5 = arith.divf %3, %4 : vector<16x1xf32>
    %cst_2 = arith.constant 9.99999974E-6 : f32
    %6 = vector.broadcast %cst_2 : f32 to vector<16x1xf32>
    %7 = arith.addf %5, %6 : vector<16x1xf32>
    %8 = math.rsqrt %7 : vector<16x1xf32>
    %9 = vector.broadcast %8 : vector<16x1xf32> to vector<16x128xf32>
    %10 = arith.mulf %0, %9 : vector<16x128xf32>
    %c0_3 = arith.constant 0 : index
    %c0_4 = arith.constant 0 : index
    %11 = vector.load %arg1[%c0_3, %c0_4] : memref<1x128xf32, #tpu.memory_space<vmem>>, vector<1x128xf32>
    %12 = vector.broadcast %11 : vector<1x128xf32> to vector<16x128xf32>
    %13 = arith.mulf %10, %12 : vector<16x128xf32>
    %c0_5 = arith.constant 0 : index
    %c0_6 = arith.constant 0 : index
    %14 = vector.load %arg2[%c0_5, %c0_6] : memref<128x512xf32, #tpu.memory_space<vmem>>, vector<128x512xf32>
    %cst_7 = arith.constant dense<0.000000e+00> : vector<16x512xf32>
    %15 = tpu.matmul %13, %14, %cst_7 {dimension_numbers = #tpu.dot_dimension_numbers<[1], [0], [0], [1], [0, 0, 1, 1], [], []>} : vector<16x128xf32>, vector<128x512xf32>, vector<16x512xf32> -> vector<16x512xf32>
    %16 = vector.extract_strided_slice %15 {offsets = [0, 0], sizes = [16, 256], strides = [1, 1]} : vector<16x512xf32> to vector<16x256xf32>
    %17 = vector.extract_strided_slice %15 {offsets = [0, 256], sizes = [16, 256], strides = [1, 1]} : vector<16x512xf32> to vector<16x256xf32>
    %18 = arith.negf %16 : vector<16x256xf32>
    %19 = math.exp %18 : vector<16x256xf32>
    %cst_8 = arith.constant 1.000000e+00 : f32
    %20 = vector.broadcast %cst_8 : f32 to vector<16x256xf32>
    %21 = arith.addf %20, %19 : vector<16x256xf32>
    %22 = arith.divf %20, %21 : vector<16x256xf32>
    %23 = arith.mulf %16, %22 : vector<16x256xf32>
    %24 = arith.mulf %23, %17 : vector<16x256xf32>
    %c0_9 = arith.constant 0 : index
    %c0_10 = arith.constant 0 : index
    %25 = vector.load %arg3[%c0_9, %c0_10] : memref<256x128xf32, #tpu.memory_space<vmem>>, vector<256x128xf32>
    %cst_11 = arith.constant dense<0.000000e+00> : vector<16x128xf32>
    %26 = tpu.matmul %24, %25, %cst_11 {dimension_numbers = #tpu.dot_dimension_numbers<[1], [0], [0], [1], [0, 0, 1, 1], [], []>} : vector<16x256xf32>, vector<256x128xf32>, vector<16x128xf32> -> vector<16x128xf32>
    %27 = arith.addf %0, %26 : vector<16x128xf32>
    %c0_12 = arith.constant 0 : index
    %c0_13 = arith.constant 0 : index
    %28 = vector.load %arg4[%c0_12, %c0_13] : memref<16x128xf32, #tpu.memory_space<vmem>>, vector<16x128xf32>
    tpu.vector_store %arg4[%c0_12, %c0_13], %27 {strides = array<i32>} : memref<16x128xf32, #tpu.memory_space<vmem>>, vector<16x128xf32>,
    return
  }
}

module attributes {stable_mosaic.version = 11 : i64} {
  func.func @_mlp_block_kernel(%arg0: memref<16x128xf32, #tpu.memory_space<vmem>>, %arg1: memref<1x128xf32, #tpu.memory_space<vmem>>, %arg2: memref<128x512xf32, #tpu.memory_space<vmem>>, %arg3: memref<256x128xf32, #tpu.memory_space<vmem>>, %arg4: memref<16x128xf32, #tpu.memory_space<vmem>>) attributes {dimension_semantics = [], scalar_prefetch = 0 : i64, scratch_operands = 0 : i64, tpu.core_type = #tpu.core_type<tc>} {
    %c0 = arith.constant 0 : index
    %c0_0 = arith.constant 0 : index
    %0 = vector.load %arg0[%c0, %c0_0] : memref<16x128xf32, #tpu.memory_space<vmem>>, vector<16x128xf32>
    %1 = arith.mulf %0, %0 : vector<16x128xf32>
    %cst = arith.constant dense<0.000000e+00> : vector<16xf32>
    %2 = vector.multi_reduction <add>, %1, %cst [1] : vector<16x128xf32> to vector<16xf32>
    %3 = vector.shape_cast %2 : vector<16xf32> to vector<16x1xf32>
    %cst_1 = arith.constant 1.280000e+02 : f32
    %4 = vector.broadcast %cst_1 : f32 to vector<16x1xf32>
    %5 = arith.divf %3, %4 : vector<16x1xf32>
    %cst_2 = arith.constant 9.99999974E-6 : f32
    %6 = vector.broadcast %cst_2 : f32 to vector<16x1xf32>
    %7 = arith.addf %5, %6 : vector<16x1xf32>
    %8 = math.rsqrt %7 : vector<16x1xf32>
    %9 = vector.broadcast %8 : vector<16x1xf32> to vector<16x128xf32>
    %10 = arith.mulf %0, %9 : vector<16x128xf32>
    %c0_3 = arith.constant 0 : index
    %c0_4 = arith.constant 0 : index
    %11 = vector.load %arg1[%c0_3, %c0_4] : memref<1x128xf32, #tpu.memory_space<vmem>>, vector<1x128xf32>
    %12 = vector.broadcast %11 : vector<1x128xf32> to vector<16x128xf32>
    %13 = arith.mulf %10, %12 : vector<16x128xf32>
    %c0_5 = arith.constant 0 : index
    %c0_6 = arith.constant 0 : index
    %14 = vector.load %arg2[%c0_5, %c0_6] : memref<128x512xf32, #tpu.memory_space<vmem>>, vector<128x512xf32>
    %cst_7 = arith.constant dense<0.000000e+00> : vector<16x512xf32>
    %15 = tpu.matmul %13, %14, %cst_7 {dimension_numbers = #tpu.dot_dimension_numbers<[1], [0], [0], [1], [0, 0, 1, 1], [], []>} : vector<16x128xf32>, vector<128x512xf32>, vector<16x512xf32> -> vector<16x512xf32>
    %16 = vector.extract_strided_slice %15 {offsets = [0, 0], sizes = [16, 256], strides = [1, 1]} : vector<16x512xf32> to vector<16x256xf32>
    %17 = vector.extract_strided_slice %15 {offsets = [0, 256], sizes = [16, 256], strides = [1, 1]} : vector<16x512xf32> to vector<16x256xf32>
    %18 = arith.negf %16 : vector<16x256xf32>
    %19 = math.exp %18 : vector<16x256xf32>
    %cst_8 = arith.constant 1.000000e+00 : f32
    %20 = vector.broadcast %cst_8 : f32 to vector<16x256xf32>
    %21 = arith.addf %20, %19 : vector<16x256xf32>
    %22 = arith.divf %20, %21 : vector<16x256xf32>
    %23 = arith.mulf %16, %22 : vector<16x256xf32>
    %24 = arith.mulf %23, %17 : vector<16x256xf32>
    %c0_9 = arith.constant 0 : index
    %c0_10 = arith.constant 0 : index
    %25 = vector.load %arg3[%c0_9, %c0_10] : memref<256x128xf32, #tpu.memory_space<vmem>>, vector<256x128xf32>
    %cst_11 = arith.constant dense<0.000000e+00> : vector<16x128xf32>
    %26 = tpu.matmul %24, %25, %cst_11 {dimension_numbers = #tpu.dot_dimension_numbers<[1], [0], [0], [1], [0, 0, 1, 1], [], []>} : vector<16x256xf32>, vector<256x128xf32>, vector<16x128xf32> -> vector<16x128xf32>
    %27 = arith.addf %0, %26 : vector<16x128xf32>
    %c0_12 = arith.constant 0 : index
    %c0_13 = arith.constant 0 : index
    %28 = vector.load %arg4[%c0_12, %c0_13] : memref<16x128xf32, #tpu.memory_space<vmem>>, vector<16x128xf32>
    tpu.vector_store %arg4[%c0_12, %c0_13], %27 {strides = array<i32>} : memref<16x128xf32, #tpu.memory_space<vmem>>, vector<16x128xf32>,
    return
  }
}

module attributes {stable_mosaic.version = 11 : i64} {
  func.func @_norm_matmul_kernel(%arg0: memref<16x128xf32, #tpu.memory_space<vmem>>, %arg1: memref<1x128xf32, #tpu.memory_space<vmem>>, %arg2: memref<128x384xf32, #tpu.memory_space<vmem>>, %arg3: memref<16x384xf32, #tpu.memory_space<vmem>>) attributes {dimension_semantics = [], scalar_prefetch = 0 : i64, scratch_operands = 0 : i64, tpu.core_type = #tpu.core_type<tc>} {
    %c0 = arith.constant 0 : index
    %c0_0 = arith.constant 0 : index
    %0 = vector.load %arg0[%c0, %c0_0] : memref<16x128xf32, #tpu.memory_space<vmem>>, vector<16x128xf32>
    %1 = arith.mulf %0, %0 : vector<16x128xf32>
    %cst = arith.constant dense<0.000000e+00> : vector<16xf32>
    %2 = vector.multi_reduction <add>, %1, %cst [1] : vector<16x128xf32> to vector<16xf32>
    %3 = vector.shape_cast %2 : vector<16xf32> to vector<16x1xf32>
    %cst_1 = arith.constant 1.280000e+02 : f32
    %4 = vector.broadcast %cst_1 : f32 to vector<16x1xf32>
    %5 = arith.divf %3, %4 : vector<16x1xf32>
    %cst_2 = arith.constant 9.99999974E-6 : f32
    %6 = vector.broadcast %cst_2 : f32 to vector<16x1xf32>
    %7 = arith.addf %5, %6 : vector<16x1xf32>
    %8 = math.rsqrt %7 : vector<16x1xf32>
    %9 = vector.broadcast %8 : vector<16x1xf32> to vector<16x128xf32>
    %10 = arith.mulf %0, %9 : vector<16x128xf32>
    %c0_3 = arith.constant 0 : index
    %c0_4 = arith.constant 0 : index
    %11 = vector.load %arg1[%c0_3, %c0_4] : memref<1x128xf32, #tpu.memory_space<vmem>>, vector<1x128xf32>
    %12 = vector.broadcast %11 : vector<1x128xf32> to vector<16x128xf32>
    %13 = arith.mulf %10, %12 : vector<16x128xf32>
    %c0_5 = arith.constant 0 : index
    %c0_6 = arith.constant 0 : index
    %14 = vector.load %arg2[%c0_5, %c0_6] : memref<128x384xf32, #tpu.memory_space<vmem>>, vector<128x384xf32>
    %cst_7 = arith.constant dense<0.000000e+00> : vector<16x384xf32>
    %15 = tpu.matmul %13, %14, %cst_7 {dimension_numbers = #tpu.dot_dimension_numbers<[1], [0], [0], [1], [0, 0, 1, 1], [], []>} : vector<16x128xf32>, vector<128x384xf32>, vector<16x384xf32> -> vector<16x384xf32>
    %c0_8 = arith.constant 0 : index
    %c0_9 = arith.constant 0 : index
    %16 = vector.load %arg3[%c0_8, %c0_9] : memref<16x384xf32, #tpu.memory_space<vmem>>, vector<16x384xf32>
    tpu.vector_store %arg3[%c0_8, %c0_9], %15 {strides = array<i32>} : memref<16x384xf32, #tpu.memory_space<vmem>>, vector<16x384xf32>,
    return
  }
}

module attributes {stable_mosaic.version = 11 : i64} {
  func.func @_attention_block_kernel(%arg0: i32, %arg1: memref<1x8x384xf32, #tpu.memory_space<vmem>>, %arg2: memref<1x8x128xf32, #tpu.memory_space<vmem>>, %arg3: memref<8x32xf32, #tpu.memory_space<vmem>>, %arg4: memref<8x32xf32, #tpu.memory_space<vmem>>, %arg5: memref<1x1x8xf32, #tpu.memory_space<vmem>>, %arg6: memref<128x128xf32, #tpu.memory_space<vmem>>, %arg7: memref<1x8x128xf32, #tpu.memory_space<vmem>>) attributes {dimension_semantics = [#tpu.dimension_semantics<parallel>], iteration_bounds = array<i64: 2>, scalar_prefetch = 0 : i64, scratch_operands = 0 : i64, tpu.core_type = #tpu.core_type<tc>, window_params = [{transform_indices = @transform_0, window_bounds = array<i64: 1, 8, 384>}, {transform_indices = @transform_1, window_bounds = array<i64: 1, 8, 128>}, {pipeline_mode = #tpu.pipeline_mode<synchronous>, transform_indices = @transform_2, window_bounds = array<i64: 8, 32>}, {pipeline_mode = #tpu.pipeline_mode<synchronous>, transform_indices = @transform_3, window_bounds = array<i64: 8, 32>}, {transform_indices = @transform_4, window_bounds = array<i64: 1, 1, 8>}, {pipeline_mode = #tpu.pipeline_mode<synchronous>, transform_indices = @transform_5, window_bounds = array<i64: 128, 128>}, {transform_indices = @transform_6, window_bounds = array<i64: 1, 8, 128>}]} {
    %c0 = arith.constant 0 : index
    %c0_0 = arith.constant 0 : index
    %c0_1 = arith.constant 0 : index
    %0 = vector.load %arg1[%c0, %c0_0, %c0_1] : memref<1x8x384xf32, #tpu.memory_space<vmem>>, vector<1x8x384xf32>
    %1 = vector.shape_cast %0 : vector<1x8x384xf32> to vector<8x384xf32>
    %c0_2 = arith.constant 0 : index
    %c0_3 = arith.constant 0 : index
    %c0_4 = arith.constant 0 : index
    %2 = vector.load %arg2[%c0_2, %c0_3, %c0_4] : memref<1x8x128xf32, #tpu.memory_space<vmem>>, vector<1x8x128xf32>
    %3 = vector.shape_cast %2 : vector<1x8x128xf32> to vector<8x128xf32>
    %c0_5 = arith.constant 0 : index
    %c0_6 = arith.constant 0 : index
    %4 = vector.load %arg3[%c0_5, %c0_6] : memref<8x32xf32, #tpu.memory_space<vmem>>, vector<8x32xf32>
    %c0_7 = arith.constant 0 : index
    %c0_8 = arith.constant 0 : index
    %5 = vector.load %arg4[%c0_7, %c0_8] : memref<8x32xf32, #tpu.memory_space<vmem>>, vector<8x32xf32>
    %c0_9 = arith.constant 0 : index
    %c0_10 = arith.constant 0 : index
    %c0_11 = arith.constant 0 : index
    %6 = vector.load %arg5[%c0_9, %c0_10, %c0_11] : memref<1x1x8xf32, #tpu.memory_space<vmem>>, vector<1x1x8xf32>
    %7 = vector.shape_cast %6 : vector<1x1x8xf32> to vector<8xf32>
    %cst = arith.constant 5.000000e-01 : f32
    %8 = vector.broadcast %cst : f32 to vector<8xf32>
    %9 = arith.cmpf ogt, %7, %8 : vector<8xf32>
    %10 = vector.extract_strided_slice %1 {offsets = [0, 0], sizes = [8, 32], strides = [1, 1]} : vector<8x384xf32> to vector<8x32xf32>
    %11 = vector.extract_strided_slice %10 {offsets = [0, 0], sizes = [8, 16], strides = [1, 1]} : vector<8x32xf32> to vector<8x16xf32>
    %12 = vector.extract_strided_slice %10 {offsets = [0, 16], sizes = [8, 16], strides = [1, 1]} : vector<8x32xf32> to vector<8x16xf32>
    %cst_12 = arith.constant 0.000000e+00 : f32
    %13 = vector.broadcast %cst_12 : f32 to vector<8x16xf32>
    %14 = arith.subf %13, %12 : vector<8x16xf32>
    %15 = tpu.concatenate %14, %11 in 1 : vector<8x16xf32>, vector<8x16xf32> -> vector<8x32xf32>
    %16 = arith.mulf %10, %4 : vector<8x32xf32>
    %17 = arith.mulf %15, %5 : vector<8x32xf32>
    %18 = arith.addf %16, %17 : vector<8x32xf32>
    %19 = vector.extract_strided_slice %1 {offsets = [0, 128], sizes = [8, 32], strides = [1, 1]} : vector<8x384xf32> to vector<8x32xf32>
    %20 = vector.extract_strided_slice %19 {offsets = [0, 0], sizes = [8, 16], strides = [1, 1]} : vector<8x32xf32> to vector<8x16xf32>
    %21 = vector.extract_strided_slice %19 {offsets = [0, 16], sizes = [8, 16], strides = [1, 1]} : vector<8x32xf32> to vector<8x16xf32>
    %cst_13 = arith.constant 0.000000e+00 : f32
    %22 = vector.broadcast %cst_13 : f32 to vector<8x16xf32>
    %23 = arith.subf %22, %21 : vector<8x16xf32>
    %24 = tpu.concatenate %23, %20 in 1 : vector<8x16xf32>, vector<8x16xf32> -> vector<8x32xf32>
    %25 = arith.mulf %19, %4 : vector<8x32xf32>
    %26 = arith.mulf %24, %5 : vector<8x32xf32>
    %27 = arith.addf %25, %26 : vector<8x32xf32>
    %28 = vector.extract_strided_slice %1 {offsets = [0, 256], sizes = [8, 32], strides = [1, 1]} : vector<8x384xf32> to vector<8x32xf32>
    %cst_14 = arith.constant dense<0.000000e+00> : vector<8x8xf32>
    %29 = tpu.matmul %18, %27, %cst_14 {dimension_numbers = #tpu.dot_dimension_numbers<[1], [1], [0], [0], [0, 0, 1, 0], [], []>} : vector<8x32xf32>, vector<8x32xf32>, vector<8x8xf32> -> vector<8x8xf32>
    %cst_15 = arith.constant 0.176776692 : f32
    %30 = vector.broadcast %cst_15 : f32 to vector<8x8xf32>
    %31 = arith.mulf %29, %30 : vector<8x8xf32>
    %32 = vector.shape_cast %9 : vector<8xi1> to vector<1x8xi1>
    %cst_16 = arith.constant -1.000000e+09 : f32
    %33 = vector.shape_cast %32 : vector<1x8xi1> to vector<1x8xi1>
    %34 = vector.broadcast %33 : vector<1x8xi1> to vector<8x8xi1>
    %35 = vector.broadcast %cst_16 : f32 to vector<8x8xf32>
    %36 = arith.select %34, %31, %35 : vector<8x8xi1>, vector<8x8xf32>
    %cst_17 = arith.constant dense<0xFF800000> : vector<8xf32>
    %37 = vector.multi_reduction <maximumf>, %36, %cst_17 [1] : vector<8x8xf32> to vector<8xf32>
    %38 = vector.shape_cast %37 : vector<8xf32> to vector<8x1xf32>
    %39 = vector.broadcast %38 : vector<8x1xf32> to vector<8x8xf32>
    %40 = arith.subf %36, %39 : vector<8x8xf32>
    %41 = math.exp %40 : vector<8x8xf32>
    %cst_18 = arith.constant dense<0.000000e+00> : vector<8xf32>
    %42 = vector.multi_reduction <add>, %41, %cst_18 [1] : vector<8x8xf32> to vector<8xf32>
    %43 = vector.shape_cast %42 : vector<8xf32> to vector<8x1xf32>
    %44 = tpu.reciprocal %43 {approx = true} : vector<8x1xf32> -> vector<8x1xf32>
    %45 = vector.broadcast %44 : vector<8x1xf32> to vector<8x8xf32>
    %46 = arith.mulf %41, %45 : vector<8x8xf32>
    %cst_19 = arith.constant dense<0.000000e+00> : vector<8x32xf32>
    %47 = tpu.matmul %46, %28, %cst_19 {dimension_numbers = #tpu.dot_dimension_numbers<[1], [0], [0], [1], [0, 0, 1, 1], [], []>} : vector<8x8xf32>, vector<8x32xf32>, vector<8x32xf32> -> vector<8x32xf32>
    %48 = vector.extract_strided_slice %1 {offsets = [0, 32], sizes = [8, 32], strides = [1, 1]} : vector<8x384xf32> to vector<8x32xf32>
    %49 = vector.extract_strided_slice %48 {offsets = [0, 0], sizes = [8, 16], strides = [1, 1]} : vector<8x32xf32> to vector<8x16xf32>
    %50 = vector.extract_strided_slice %48 {offsets = [0, 16], sizes = [8, 16], strides = [1, 1]} : vector<8x32xf32> to vector<8x16xf32>
    %cst_20 = arith.constant 0.000000e+00 : f32
    %51 = vector.broadcast %cst_20 : f32 to vector<8x16xf32>
    %52 = arith.subf %51, %50 : vector<8x16xf32>
    %53 = tpu.concatenate %52, %49 in 1 : vector<8x16xf32>, vector<8x16xf32> -> vector<8x32xf32>
    %54 = arith.mulf %48, %4 : vector<8x32xf32>
    %55 = arith.mulf %53, %5 : vector<8x32xf32>
    %56 = arith.addf %54, %55 : vector<8x32xf32>
    %57 = vector.extract_strided_slice %1 {offsets = [0, 160], sizes = [8, 32], strides = [1, 1]} : vector<8x384xf32> to vector<8x32xf32>
    %58 = vector.extract_strided_slice %57 {offsets = [0, 0], sizes = [8, 16], strides = [1, 1]} : vector<8x32xf32> to vector<8x16xf32>
    %59 = vector.extract_strided_slice %57 {offsets = [0, 16], sizes = [8, 16], strides = [1, 1]} : vector<8x32xf32> to vector<8x16xf32>
    %cst_21 = arith.constant 0.000000e+00 : f32
    %60 = vector.broadcast %cst_21 : f32 to vector<8x16xf32>
    %61 = arith.subf %60, %59 : vector<8x16xf32>
    %62 = tpu.concatenate %61, %58 in 1 : vector<8x16xf32>, vector<8x16xf32> -> vector<8x32xf32>
    %63 = arith.mulf %57, %4 : vector<8x32xf32>
    %64 = arith.mulf %62, %5 : vector<8x32xf32>
    %65 = arith.addf %63, %64 : vector<8x32xf32>
    %66 = vector.extract_strided_slice %1 {offsets = [0, 288], sizes = [8, 32], strides = [1, 1]} : vector<8x384xf32> to vector<8x32xf32>
    %cst_22 = arith.constant dense<0.000000e+00> : vector<8x8xf32>
    %67 = tpu.matmul %56, %65, %cst_22 {dimension_numbers = #tpu.dot_dimension_numbers<[1], [1], [0], [0], [0, 0, 1, 0], [], []>} : vector<8x32xf32>, vector<8x32xf32>, vector<8x8xf32> -> vector<8x8xf32>
    %cst_23 = arith.constant 0.176776692 : f32
    %68 = vector.broadcast %cst_23 : f32 to vector<8x8xf32>
    %69 = arith.mulf %67, %68 : vector<8x8xf32>
    %70 = vector.shape_cast %9 : vector<8xi1> to vector<1x8xi1>
    %cst_24 = arith.constant -1.000000e+09 : f32
    %71 = vector.shape_cast %70 : vector<1x8xi1> to vector<1x8xi1>
    %72 = vector.broadcast %71 : vector<1x8xi1> to vector<8x8xi1>
    %73 = vector.broadcast %cst_24 : f32 to vector<8x8xf32>
    %74 = arith.select %72, %69, %73 : vector<8x8xi1>, vector<8x8xf32>
    %cst_25 = arith.constant dense<0xFF800000> : vector<8xf32>
    %75 = vector.multi_reduction <maximumf>, %74, %cst_25 [1] : vector<8x8xf32> to vector<8xf32>
    %76 = vector.shape_cast %75 : vector<8xf32> to vector<8x1xf32>
    %77 = vector.broadcast %76 : vector<8x1xf32> to vector<8x8xf32>
    %78 = arith.subf %74, %77 : vector<8x8xf32>
    %79 = math.exp %78 : vector<8x8xf32>
    %cst_26 = arith.constant dense<0.000000e+00> : vector<8xf32>
    %80 = vector.multi_reduction <add>, %79, %cst_26 [1] : vector<8x8xf32> to vector<8xf32>
    %81 = vector.shape_cast %80 : vector<8xf32> to vector<8x1xf32>
    %82 = tpu.reciprocal %81 {approx = true} : vector<8x1xf32> -> vector<8x1xf32>
    %83 = vector.broadcast %82 : vector<8x1xf32> to vector<8x8xf32>
    %84 = arith.mulf %79, %83 : vector<8x8xf32>
    %cst_27 = arith.constant dense<0.000000e+00> : vector<8x32xf32>
    %85 = tpu.matmul %84, %66, %cst_27 {dimension_numbers = #tpu.dot_dimension_numbers<[1], [0], [0], [1], [0, 0, 1, 1], [], []>} : vector<8x8xf32>, vector<8x32xf32>, vector<8x32xf32> -> vector<8x32xf32>
    %86 = vector.extract_strided_slice %1 {offsets = [0, 64], sizes = [8, 32], strides = [1, 1]} : vector<8x384xf32> to vector<8x32xf32>
    %87 = vector.extract_strided_slice %86 {offsets = [0, 0], sizes = [8, 16], strides = [1, 1]} : vector<8x32xf32> to vector<8x16xf32>
    %88 = vector.extract_strided_slice %86 {offsets = [0, 16], sizes = [8, 16], strides = [1, 1]} : vector<8x32xf32> to vector<8x16xf32>
    %cst_28 = arith.constant 0.000000e+00 : f32
    %89 = vector.broadcast %cst_28 : f32 to vector<8x16xf32>
    %90 = arith.subf %89, %88 : vector<8x16xf32>
    %91 = tpu.concatenate %90, %87 in 1 : vector<8x16xf32>, vector<8x16xf32> -> vector<8x32xf32>
    %92 = arith.mulf %86, %4 : vector<8x32xf32>
    %93 = arith.mulf %91, %5 : vector<8x32xf32>
    %94 = arith.addf %92, %93 : vector<8x32xf32>
    %95 = vector.extract_strided_slice %1 {offsets = [0, 192], sizes = [8, 32], strides = [1, 1]} : vector<8x384xf32> to vector<8x32xf32>
    %96 = vector.extract_strided_slice %95 {offsets = [0, 0], sizes = [8, 16], strides = [1, 1]} : vector<8x32xf32> to vector<8x16xf32>
    %97 = vector.extract_strided_slice %95 {offsets = [0, 16], sizes = [8, 16], strides = [1, 1]} : vector<8x32xf32> to vector<8x16xf32>
    %cst_29 = arith.constant 0.000000e+00 : f32
    %98 = vector.broadcast %cst_29 : f32 to vector<8x16xf32>
    %99 = arith.subf %98, %97 : vector<8x16xf32>
    %100 = tpu.concatenate %99, %96 in 1 : vector<8x16xf32>, vector<8x16xf32> -> vector<8x32xf32>
    %101 = arith.mulf %95, %4 : vector<8x32xf32>
    %102 = arith.mulf %100, %5 : vector<8x32xf32>
    %103 = arith.addf %101, %102 : vector<8x32xf32>
    %104 = vector.extract_strided_slice %1 {offsets = [0, 320], sizes = [8, 32], strides = [1, 1]} : vector<8x384xf32> to vector<8x32xf32>
    %cst_30 = arith.constant dense<0.000000e+00> : vector<8x8xf32>
    %105 = tpu.matmul %94, %103, %cst_30 {dimension_numbers = #tpu.dot_dimension_numbers<[1], [1], [0], [0], [0, 0, 1, 0], [], []>} : vector<8x32xf32>, vector<8x32xf32>, vector<8x8xf32> -> vector<8x8xf32>
    %cst_31 = arith.constant 0.176776692 : f32
    %106 = vector.broadcast %cst_31 : f32 to vector<8x8xf32>
    %107 = arith.mulf %105, %106 : vector<8x8xf32>
    %108 = vector.shape_cast %9 : vector<8xi1> to vector<1x8xi1>
    %cst_32 = arith.constant -1.000000e+09 : f32
    %109 = vector.shape_cast %108 : vector<1x8xi1> to vector<1x8xi1>
    %110 = vector.broadcast %109 : vector<1x8xi1> to vector<8x8xi1>
    %111 = vector.broadcast %cst_32 : f32 to vector<8x8xf32>
    %112 = arith.select %110, %107, %111 : vector<8x8xi1>, vector<8x8xf32>
    %cst_33 = arith.constant dense<0xFF800000> : vector<8xf32>
    %113 = vector.multi_reduction <maximumf>, %112, %cst_33 [1] : vector<8x8xf32> to vector<8xf32>
    %114 = vector.shape_cast %113 : vector<8xf32> to vector<8x1xf32>
    %115 = vector.broadcast %114 : vector<8x1xf32> to vector<8x8xf32>
    %116 = arith.subf %112, %115 : vector<8x8xf32>
    %117 = math.exp %116 : vector<8x8xf32>
    %cst_34 = arith.constant dense<0.000000e+00> : vector<8xf32>
    %118 = vector.multi_reduction <add>, %117, %cst_34 [1] : vector<8x8xf32> to vector<8xf32>
    %119 = vector.shape_cast %118 : vector<8xf32> to vector<8x1xf32>
    %120 = tpu.reciprocal %119 {approx = true} : vector<8x1xf32> -> vector<8x1xf32>
    %121 = vector.broadcast %120 : vector<8x1xf32> to vector<8x8xf32>
    %122 = arith.mulf %117, %121 : vector<8x8xf32>
    %cst_35 = arith.constant dense<0.000000e+00> : vector<8x32xf32>
    %123 = tpu.matmul %122, %104, %cst_35 {dimension_numbers = #tpu.dot_dimension_numbers<[1], [0], [0], [1], [0, 0, 1, 1], [], []>} : vector<8x8xf32>, vector<8x32xf32>, vector<8x32xf32> -> vector<8x32xf32>
    %124 = vector.extract_strided_slice %1 {offsets = [0, 96], sizes = [8, 32], strides = [1, 1]} : vector<8x384xf32> to vector<8x32xf32>
    %125 = vector.extract_strided_slice %124 {offsets = [0, 0], sizes = [8, 16], strides = [1, 1]} : vector<8x32xf32> to vector<8x16xf32>
    %126 = vector.extract_strided_slice %124 {offsets = [0, 16], sizes = [8, 16], strides = [1, 1]} : vector<8x32xf32> to vector<8x16xf32>
    %cst_36 = arith.constant 0.000000e+00 : f32
    %127 = vector.broadcast %cst_36 : f32 to vector<8x16xf32>
    %128 = arith.subf %127, %126 : vector<8x16xf32>
    %129 = tpu.concatenate %128, %125 in 1 : vector<8x16xf32>, vector<8x16xf32> -> vector<8x32xf32>
    %130 = arith.mulf %124, %4 : vector<8x32xf32>
    %131 = arith.mulf %129, %5 : vector<8x32xf32>
    %132 = arith.addf %130, %131 : vector<8x32xf32>
    %133 = vector.extract_strided_slice %1 {offsets = [0, 224], sizes = [8, 32], strides = [1, 1]} : vector<8x384xf32> to vector<8x32xf32>
    %134 = vector.extract_strided_slice %133 {offsets = [0, 0], sizes = [8, 16], strides = [1, 1]} : vector<8x32xf32> to vector<8x16xf32>
    %135 = vector.extract_strided_slice %133 {offsets = [0, 16], sizes = [8, 16], strides = [1, 1]} : vector<8x32xf32> to vector<8x16xf32>
    %cst_37 = arith.constant 0.000000e+00 : f32
    %136 = vector.broadcast %cst_37 : f32 to vector<8x16xf32>
    %137 = arith.subf %136, %135 : vector<8x16xf32>
    %138 = tpu.concatenate %137, %134 in 1 : vector<8x16xf32>, vector<8x16xf32> -> vector<8x32xf32>
    %139 = arith.mulf %133, %4 : vector<8x32xf32>
    %140 = arith.mulf %138, %5 : vector<8x32xf32>
    %141 = arith.addf %139, %140 : vector<8x32xf32>
    %142 = vector.extract_strided_slice %1 {offsets = [0, 352], sizes = [8, 32], strides = [1, 1]} : vector<8x384xf32> to vector<8x32xf32>
    %cst_38 = arith.constant dense<0.000000e+00> : vector<8x8xf32>
    %143 = tpu.matmul %132, %141, %cst_38 {dimension_numbers = #tpu.dot_dimension_numbers<[1], [1], [0], [0], [0, 0, 1, 0], [], []>} : vector<8x32xf32>, vector<8x32xf32>, vector<8x8xf32> -> vector<8x8xf32>
    %cst_39 = arith.constant 0.176776692 : f32
    %144 = vector.broadcast %cst_39 : f32 to vector<8x8xf32>
    %145 = arith.mulf %143, %144 : vector<8x8xf32>
    %146 = vector.shape_cast %9 : vector<8xi1> to vector<1x8xi1>
    %cst_40 = arith.constant -1.000000e+09 : f32
    %147 = vector.shape_cast %146 : vector<1x8xi1> to vector<1x8xi1>
    %148 = vector.broadcast %147 : vector<1x8xi1> to vector<8x8xi1>
    %149 = vector.broadcast %cst_40 : f32 to vector<8x8xf32>
    %150 = arith.select %148, %145, %149 : vector<8x8xi1>, vector<8x8xf32>
    %cst_41 = arith.constant dense<0xFF800000> : vector<8xf32>
    %151 = vector.multi_reduction <maximumf>, %150, %cst_41 [1] : vector<8x8xf32> to vector<8xf32>
    %152 = vector.shape_cast %151 : vector<8xf32> to vector<8x1xf32>
    %153 = vector.broadcast %152 : vector<8x1xf32> to vector<8x8xf32>
    %154 = arith.subf %150, %153 : vector<8x8xf32>
    %155 = math.exp %154 : vector<8x8xf32>
    %cst_42 = arith.constant dense<0.000000e+00> : vector<8xf32>
    %156 = vector.multi_reduction <add>, %155, %cst_42 [1] : vector<8x8xf32> to vector<8xf32>
    %157 = vector.shape_cast %156 : vector<8xf32> to vector<8x1xf32>
    %158 = tpu.reciprocal %157 {approx = true} : vector<8x1xf32> -> vector<8x1xf32>
    %159 = vector.broadcast %158 : vector<8x1xf32> to vector<8x8xf32>
    %160 = arith.mulf %155, %159 : vector<8x8xf32>
    %cst_43 = arith.constant dense<0.000000e+00> : vector<8x32xf32>
    %161 = tpu.matmul %160, %142, %cst_43 {dimension_numbers = #tpu.dot_dimension_numbers<[1], [0], [0], [1], [0, 0, 1, 1], [], []>} : vector<8x8xf32>, vector<8x32xf32>, vector<8x32xf32> -> vector<8x32xf32>
    %162 = tpu.concatenate %47, %85, %123, %161 in 1 : vector<8x32xf32>, vector<8x32xf32>, vector<8x32xf32>, vector<8x32xf32> -> vector<8x128xf32>
    %c0_44 = arith.constant 0 : index
    %c0_45 = arith.constant 0 : index
    %163 = vector.load %arg6[%c0_44, %c0_45] : memref<128x128xf32, #tpu.memory_space<vmem>>, vector<128x128xf32>
    %cst_46 = arith.constant dense<0.000000e+00> : vector<8x128xf32>
    %164 = tpu.matmul %162, %163, %cst_46 {dimension_numbers = #tpu.dot_dimension_numbers<[1], [0], [0], [1], [0, 0, 1, 1], [], []>} : vector<8x128xf32>, vector<128x128xf32>, vector<8x128xf32> -> vector<8x128xf32>
    %165 = arith.addf %3, %164 : vector<8x128xf32>
    %c0_47 = arith.constant 0 : index
    %c0_48 = arith.constant 0 : index
    %c0_49 = arith.constant 0 : index
    %166 = vector.load %arg7[%c0_47, %c0_48, %c0_49] : memref<1x8x128xf32, #tpu.memory_space<vmem>>, vector<1x8x128xf32>
    %167 = vector.shape_cast %166 : vector<1x8x128xf32> to vector<8x128xf32>
    %168 = vector.shape_cast %165 : vector<8x128xf32> to vector<1x8x128xf32>
    tpu.vector_store %arg7[%c0_47, %c0_48, %c0_49], %168 {strides = array<i32>} : memref<1x8x128xf32, #tpu.memory_space<vmem>>, vector<1x8x128xf32>,
    return
  }
  func.func @transform_0(%arg0: i32) -> (i32, i32, i32) {
    %c0_i32 = arith.constant 0 : i32
    %c0_i32_0 = arith.constant 0 : i32
    %c0_i32_1 = arith.constant 0 : i32
    return %arg0, %c0_i32, %c0_i32_0 : i32, i32, i32
  }
  func.func @transform_1(%arg0: i32) -> (i32, i32, i32) {
    %c0_i32 = arith.constant 0 : i32
    %c0_i32_0 = arith.constant 0 : i32
    %c0_i32_1 = arith.constant 0 : i32
    return %arg0, %c0_i32, %c0_i32_0 : i32, i32, i32
  }
  func.func @transform_2(%arg0: i32) -> (i32, i32) {
    %c0_i32 = arith.constant 0 : i32
    %c0_i32_0 = arith.constant 0 : i32
    %c0_i32_1 = arith.constant 0 : i32
    return %c0_i32, %c0_i32_0 : i32, i32
  }
  func.func @transform_3(%arg0: i32) -> (i32, i32) {
    %c0_i32 = arith.constant 0 : i32
    %c0_i32_0 = arith.constant 0 : i32
    %c0_i32_1 = arith.constant 0 : i32
    return %c0_i32, %c0_i32_0 : i32, i32
  }
  func.func @transform_4(%arg0: i32) -> (i32, i32, i32) {
    %c0_i32 = arith.constant 0 : i32
    %c0_i32_0 = arith.constant 0 : i32
    %c0_i32_1 = arith.constant 0 : i32
    return %arg0, %c0_i32, %c0_i32_0 : i32, i32, i32
  }
  func.func @transform_5(%arg0: i32) -> (i32, i32) {
    %c0_i32 = arith.constant 0 : i32
    %c0_i32_0 = arith.constant 0 : i32
    %c0_i32_1 = arith.constant 0 : i32
    return %c0_i32, %c0_i32_0 : i32, i32
  }
  func.func @transform_6(%arg0: i32) -> (i32, i32, i32) {
    %c0_i32 = arith.constant 0 : i32
    %c0_i32_0 = arith.constant 0 : i32
    %c0_i32_1 = arith.constant 0 : i32
    return %arg0, %c0_i32, %c0_i32_0 : i32, i32, i32
  }
}

module attributes {stable_mosaic.version = 11 : i64} {
  func.func @_final_pool_kernel(%arg0: memref<2x8x128xf32, #tpu.memory_space<vmem>>, %arg1: memref<1x128xf32, #tpu.memory_space<vmem>>, %arg2: memref<2x8xf32, #tpu.memory_space<vmem>>, %arg3: memref<2x128xf32, #tpu.memory_space<vmem>>) attributes {dimension_semantics = [], scalar_prefetch = 0 : i64, scratch_operands = 0 : i64, tpu.core_type = #tpu.core_type<tc>} {
    %c0 = arith.constant 0 : index
    %c0_0 = arith.constant 0 : index
    %c0_1 = arith.constant 0 : index
    %0 = vector.load %arg0[%c0, %c0_0, %c0_1] : memref<2x8x128xf32, #tpu.memory_space<vmem>>, vector<2x8x128xf32>
    %1 = arith.mulf %0, %0 : vector<2x8x128xf32>
    %cst = arith.constant dense<0.000000e+00> : vector<2x8xf32>
    %2 = vector.multi_reduction <add>, %1, %cst [2] : vector<2x8x128xf32> to vector<2x8xf32>
    %3 = vector.shape_cast %2 : vector<2x8xf32> to vector<2x8x1xf32>
    %cst_2 = arith.constant 1.280000e+02 : f32
    %4 = vector.broadcast %cst_2 : f32 to vector<2x8x1xf32>
    %5 = arith.divf %3, %4 : vector<2x8x1xf32>
    %cst_3 = arith.constant 9.99999974E-6 : f32
    %6 = vector.broadcast %cst_3 : f32 to vector<2x8x1xf32>
    %7 = arith.addf %5, %6 : vector<2x8x1xf32>
    %8 = math.rsqrt %7 : vector<2x8x1xf32>
    %9 = vector.broadcast %8 : vector<2x8x1xf32> to vector<2x8x128xf32>
    %10 = arith.mulf %0, %9 : vector<2x8x128xf32>
    %c0_4 = arith.constant 0 : index
    %c0_5 = arith.constant 0 : index
    %11 = vector.load %arg1[%c0_4, %c0_5] : memref<1x128xf32, #tpu.memory_space<vmem>>, vector<1x128xf32>
    %12 = vector.shape_cast %11 : vector<1x128xf32> to vector<1x1x128xf32>
    %13 = vector.broadcast %12 : vector<1x1x128xf32> to vector<2x8x128xf32>
    %14 = arith.mulf %10, %13 : vector<2x8x128xf32>
    %c0_6 = arith.constant 0 : index
    %c0_7 = arith.constant 0 : index
    %15 = vector.load %arg2[%c0_6, %c0_7] : memref<2x8xf32, #tpu.memory_space<vmem>>, vector<2x8xf32>
    %16 = vector.shape_cast %15 : vector<2x8xf32> to vector<2x8x1xf32>
    %17 = vector.broadcast %16 : vector<2x8x1xf32> to vector<2x8x128xf32>
    %18 = arith.mulf %14, %17 : vector<2x8x128xf32>
    %cst_8 = arith.constant dense<0.000000e+00> : vector<2x128xf32>
    %19 = vector.multi_reduction <add>, %18, %cst_8 [1] : vector<2x8x128xf32> to vector<2x128xf32>
    %cst_9 = arith.constant dense<0.000000e+00> : vector<2xf32>
    %20 = vector.multi_reduction <add>, %15, %cst_9 [1] : vector<2x8xf32> to vector<2xf32>
    %21 = vector.shape_cast %20 : vector<2xf32> to vector<2x1xf32>
    %cst_10 = arith.constant 1.000000e+00 : f32
    %22 = vector.broadcast %cst_10 : f32 to vector<2x1xf32>
    %23 = arith.maximumf %21, %22 : vector<2x1xf32>
    %24 = vector.broadcast %23 : vector<2x1xf32> to vector<2x128xf32>
    %25 = arith.divf %19, %24 : vector<2x128xf32>
    %c0_11 = arith.constant 0 : index
    %c0_12 = arith.constant 0 : index
    %26 = vector.load %arg3[%c0_11, %c0_12] : memref<2x128xf32, #tpu.memory_space<vmem>>, vector<2x128xf32>
    tpu.vector_store %arg3[%c0_11, %c0_12], %25 {strides = array<i32>} : memref<2x128xf32, #tpu.memory_space<vmem>>, vector<2x128xf32>,
    return
  }
}

</mosaic_0001>

<bundles_post_ra>
// kernel: encode.9
= control target key start
LH: loop header
LB: loop body
LE: loop exit
PB: predicated region body
PF: predicated region fallthrough
CT: control target
= control target key end

     0   :  { %9 = vsyncpa [#allocation3], 0  ;;  %s630_s0 = inlined_call_operand.vmem [shape: f32[16,128], index: 0, kind: input, shape index: {}]   ;;  %s631_s1 = inlined_call_operand.vmem [shape: f32[1,128], index: 1, kind: input, shape index: {}]   ;;  %s632_s2 = inlined_call_operand.hbm [shape: f32[128,512], index: 2, kind: input, shape index: {}]   ;;  %s633_s3 = inlined_call_operand.hbm [shape: f32[256,128], index: 3, kind: input, shape index: {}]   ;;  %s634_s4 = inlined_call_operand.vmem [shape: f32[16,128], index: 4, kind: output, shape index: {}]  }
   0x1   :  { %s19_s17 = sshll.u32 %s632_s2, 4  ;;  %s20_s17 = int_to_ptr.hbm [resolvable:$true] %s19_s17 }
   0x2   :  { %10 = vsyncpa [#allocation5], 0  ;;  %s542_s18 = smov [#allocation2]   ;;  %s32_s22 = sshll.u32 %s633_s3, 4  ;;  %s33_s22 = int_to_ptr.hbm [resolvable:$true] %s32_s22 }
   0x3   :  { %s21_s19 = sshll.u32 %s542_s18, 4  ;;  %s543_s23 = smov 512   ;;  %s22_s19 = int_to_ptr.vmem [resolvable:$true] %s21_s19 }
   0x4   :  { %s544_s24 = smov 32   ;;  %s545_s25 = smov [#allocation4]  }
   0x5   :  { %27 = dma.hbm_to_vmem [thread:$0]  %s20_s17, 8192, %s22_s19, [#allocation3], %s543_s23, %s543_s23, %s544_s24  }
   0x6   :  { %s34_s26 = sshll.u32 %s545_s25, 4  ;;  %s546_s27 = smov 128   ;;  %s35_s26 = int_to_ptr.vmem [resolvable:$true] %s34_s26 }
   0x7   :  { %s547_s28 = smov 8  }
   0x8   :  { %40 = dma.hbm_to_vmem [thread:$0]  %s33_s22, 4096, %s35_s26, [#allocation5], %s546_s27, %s546_s27, %s547_s28  }
   0x9   :  { %538 = dma.done.wait [#allocation3], 8192  }
   0xa   :  { %539 = vsyncadd [#allocation3], 4294959104 }
   0xb   :  { %540 = dma.done.wait [#allocation5], 4096  }
   0xc   :  { %541 = vsyncadd [#allocation5], 4294963200  ;;  %v583_v0 = vld [vmem:[%s630_s0] sm:$0xff]  ;;  %v157_v3 = vld [vmem:[#allocation2 + $0x1e8] sm:$0xff]  ;;  %v548_v24 = vmov 128.0  }
   0xd   :  { %v156_v1 = vld [vmem:[#allocation2 + $0x1e0] sm:$0xff]  ;;  %v51_v2 = vmul.f32 %v583_v0, %v583_v0  ;;  %v158_v4 = vld [vmem:[#allocation2 + $0x1f0] sm:$0xff]  ;;  %v159_v5 = vld [vmem:[#allocation2 + $0x1f8] sm:$0xff]  ;;  %183 = vmatpush.msra.mxu1 %v157_v3  ;;  %468 = vrcp.f32 %v548_v24 }
   0xe   :  { %160 = vmatpush.msra.mxu0 %v156_v1  ;;  %v590_v6 = vld [vmem:[%s630_s0 + $0x8] sm:$0xff]  ;;  %206 = vmatpush.msra.mxu2 %v158_v4  ;;  %v152_v7 = vld [vmem:[#allocation2 + $0x1c0] sm:$0xff]  ;;  %v154_v9 = vld [vmem:[#allocation2 + $0x1d0] sm:$0xff] }
   0xf   :  { %v153_v8 = vld [vmem:[#allocation2 + $0x1c8] sm:$0xff]  ;;  %53 = vadd.xlane.f32.xlu0 %v51_v2  ;;  %229 = vmatpush.msra.mxu3 %v159_v5  ;;  %v155_v10 = vld [vmem:[#allocation2 + $0x1d8] sm:$0xff]  ;;  %v148_v11 = vld [vmem:[#allocation2 + $0x1a0] sm:$0xff]  ;;  %v52_v15 = vmul.f32 %v590_v6, %v590_v6 }
  0x10   :  { %v149_v12 = vld [vmem:[#allocation2 + $0x1a8] sm:$0xff]  ;;  %161 = vmatpush.msra.mxu0 %v152_v7  ;;  %184 = vmatpush.msra.mxu1 %v153_v8  ;;  %v150_v13 = vld [vmem:[#allocation2 + $0x1b0] sm:$0xff]  ;;  %v151_v14 = vld [vmem:[#allocation2 + $0x1b8] sm:$0xff] }
  0x11   :  { %207 = vmatpush.msra.mxu2 %v154_v9  ;;  %230 = vmatpush.msra.mxu3 %v155_v10  ;;  %v144_v16 = vld [vmem:[#allocation2 + $0x180] sm:$0xff]  ;;  %v145_v17 = vld [vmem:[#allocation2 + $0x188] sm:$0xff]  ;;  %v146_v18 = vld [vmem:[#allocation2 + $0x190] sm:$0xff] }
  0x12   :  { %162 = vmatpush.msra.mxu0 %v148_v11  ;;  %185 = vmatpush.msra.mxu1 %v149_v12  ;;  %v147_v19 = vld [vmem:[#allocation2 + $0x198] sm:$0xff]  ;;  %v140_v20 = vld [vmem:[#allocation2 + $0x160] sm:$0xff]  ;;  %v141_v21 = vld [vmem:[#allocation2 + $0x168] sm:$0xff] }
  0x13   :  { %208 = vmatpush.msra.mxu2 %v150_v13  ;;  %231 = vmatpush.msra.mxu3 %v151_v14  ;;  %v142_v22 = vld [vmem:[#allocation2 + $0x170] sm:$0xff]  ;;  %v143_v23 = vld [vmem:[#allocation2 + $0x178] sm:$0xff]  ;;  %v136_v25 = vld [vmem:[#allocation2 + $0x140] sm:$0xff]  ;;  %v594_v37 = vpop.eup %468 }
  0x14   :  { %163 = vmatpush.msra.mxu0 %v144_v16  ;;  %186 = vmatpush.msra.mxu1 %v145_v17  ;;  %v137_v26 = vld [vmem:[#allocation2 + $0x148] sm:$0xff]  ;;  %v138_v27 = vld [vmem:[#allocation2 + $0x150] sm:$0xff]  ;;  %v139_v28 = vld [vmem:[#allocation2 + $0x158] sm:$0xff]  ;;  %v58_v45 = vmul.f32 128.0, %v594_v37  ;;  %vm62_vm0 = vweird.f32 %v594_v37 }
  0x15   :  { %209 = vmatpush.msra.mxu2 %v146_v18  ;;  %232 = vmatpush.msra.mxu3 %v147_v19  ;;  %v132_v29 = vld [vmem:[#allocation2 + $0x120] sm:$0xff]  ;;  %v133_v30 = vld [vmem:[#allocation2 + $0x128] sm:$0xff]  ;;  %v134_v31 = vld [vmem:[#allocation2 + $0x130] sm:$0xff] }
  0x16   :  { %164 = vmatpush.msra.mxu0 %v140_v20  ;;  %187 = vmatpush.msra.mxu1 %v141_v21  ;;  %v135_v32 = vld [vmem:[#allocation2 + $0x138] sm:$0xff]  ;;  %v128_v33 = vld [vmem:[#allocation2 + $0x100] sm:$0xff]  ;;  %v129_v34 = vld [vmem:[#allocation2 + $0x108] sm:$0xff]  ;;  %v59_v54 = vsub.f32 1.0, %v58_v45 }
  0x17   :  { %55 = vadd.xlane.f32.xlu0 %v52_v15  ;;  %210 = vmatpush.msra.mxu2 %v142_v22  ;;  %v130_v35 = vld [vmem:[#allocation2 + $0x110] sm:$0xff]  ;;  %v131_v36 = vld [vmem:[#allocation2 + $0x118] sm:$0xff]  ;;  %v124_v38 = vld [vmem:[#allocation2 + $0xe0] sm:$0xff] }
  0x18   :  { %233 = vmatpush.msra.mxu3 %v143_v23  ;;  %165 = vmatpush.msra.mxu0 %v136_v25  ;;  %v125_v39 = vld [vmem:[#allocation2 + $0xe8] sm:$0xff]  ;;  %v126_v40 = vld [vmem:[#allocation2 + $0xf0] sm:$0xff]  ;;  %v127_v41 = vld [vmem:[#allocation2 + $0xf8] sm:$0xff]  ;;  %v60_v63 = vmul.f32 %v594_v37, %v59_v54 }
  0x19   :  { %188 = vmatpush.msra.mxu1 %v137_v26  ;;  %211 = vmatpush.msra.mxu2 %v138_v27  ;;  %v120_v42 = vld [vmem:[#allocation2 + $0xc0] sm:$0xff]  ;;  %v121_v43 = vld [vmem:[#allocation2 + $0xc8] sm:$0xff]  ;;  %v122_v44 = vld [vmem:[#allocation2 + $0xd0] sm:$0xff] }
  0x1a   :  { %234 = vmatpush.msra.mxu3 %v139_v28  ;;  %166 = vmatpush.msra.mxu0 %v132_v29  ;;  %v123_v46 = vld [vmem:[#allocation2 + $0xd8] sm:$0xff]  ;;  %v116_v47 = vld [vmem:[#allocation2 + $0xa0] sm:$0xff]  ;;  %v117_v48 = vld [vmem:[#allocation2 + $0xa8] sm:$0xff]  ;;  %v61_v10 = vadd.f32 %v594_v37, %v60_v63 }
  0x1b   :  { %189 = vmatpush.msra.mxu1 %v133_v30  ;;  %212 = vmatpush.msra.mxu2 %v134_v31  ;;  %v118_v49 = vld [vmem:[#allocation2 + $0xb0] sm:$0xff]  ;;  %v119_v50 = vld [vmem:[#allocation2 + $0xb8] sm:$0xff]  ;;  %v112_v51 = vld [vmem:[#allocation2 + $0x80] sm:$0xff] }
  0x1c   :  { %235 = vmatpush.msra.mxu3 %v135_v32  ;;  %167 = vmatpush.msra.mxu0 %v128_v33  ;;  %v113_v52 = vld [vmem:[#allocation2 + $0x88] sm:$0xff]  ;;  %v114_v53 = vld [vmem:[#allocation2 + $0x90] sm:$0xff]  ;;  %v115_v55 = vld [vmem:[#allocation2 + $0x98] sm:$0xff]  ;;  %v63_v12 = vsel %vm62_vm0, %v594_v37, %v61_v10 }
  0x1d   :  { %190 = vmatpush.msra.mxu1 %v129_v34  ;;  %213 = vmatpush.msra.mxu2 %v130_v35  ;;  %v108_v56 = vld [vmem:[#allocation2 + $0x60] sm:$0xff]  ;;  %v109_v57 = vld [vmem:[#allocation2 + $0x68] sm:$0xff]  ;;  %v110_v58 = vld [vmem:[#allocation2 + $0x70] sm:$0xff] }
  0x1e   :  { %236 = vmatpush.msra.mxu3 %v131_v36  ;;  %168 = vmatpush.msra.mxu0 %v124_v38  ;;  %v111_v59 = vld [vmem:[#allocation2 + $0x78] sm:$0xff]  ;;  %v104_v60 = vld [vmem:[#allocation2 + $0x40] sm:$0xff]  ;;  %v105_v61 = vld [vmem:[#allocation2 + $0x48] sm:$0xff] }
  0x1f   :  { %191 = vmatpush.msra.mxu1 %v125_v39  ;;  %214 = vmatpush.msra.mxu2 %v126_v40  ;;  %v106_v62 = vld [vmem:[#allocation2 + $0x50] sm:$0xff]  ;;  %v107_v1 = vld [vmem:[#allocation2 + $0x58] sm:$0xff]  ;;  %v100_v2 = vld [vmem:[#allocation2 + $0x20] sm:$0xff] }
  0x20   :  { %237 = vmatpush.msra.mxu3 %v127_v41  ;;  %169 = vmatpush.msra.mxu0 %v120_v42  ;;  %v101_v3 = vld [vmem:[#allocation2 + $0x28] sm:$0xff]  ;;  %v102_v4 = vld [vmem:[#allocation2 + $0x30] sm:$0xff]  ;;  %v103_v5 = vld [vmem:[#allocation2 + $0x38] sm:$0xff] }
  0x21   :  { %192 = vmatpush.msra.mxu1 %v121_v43  ;;  %215 = vmatpush.msra.mxu2 %v122_v44  ;;  %v96_v7 = vld [vmem:[#allocation2] sm:$0xff]  ;;  %v97_v8 = vld [vmem:[#allocation2 + $0x8] sm:$0xff]  ;;  %v98_v9 = vld [vmem:[#allocation2 + $0x10] sm:$0xff] }
  0x22   :  { %238 = vmatpush.msra.mxu3 %v123_v46  ;;  %170 = vmatpush.msra.mxu0 %v116_v47  ;;  %v99_v11 = vld [vmem:[#allocation2 + $0x18] sm:$0xff]  ;;  %v467_v27 = vld [vmem:[%s631_s1] ss:$0 sm:$0xff]  ;;  %v350_v40 = vld [vmem:[#allocation4 + $0x70] sm:$0xff] }
  0x23   :  { %193 = vmatpush.msra.mxu1 %v117_v48  ;;  %216 = vmatpush.msra.mxu2 %v118_v49  ;;  %v351_v38 = vld [vmem:[#allocation4 + $0x78] sm:$0xff]  ;;  %v366_v41 = vld [vmem:[#allocation4 + $0xf0] sm:$0xff]  ;;  %v349_v42 = vld [vmem:[#allocation4 + $0x68] sm:$0xff] }
  0x24   :  { %239 = vmatpush.msra.mxu3 %v119_v50  ;;  %171 = vmatpush.msra.mxu0 %v112_v51  ;;  %v367_v39 = vld [vmem:[#allocation4 + $0xf8] sm:$0xff]  ;;  %v365_v43 = vld [vmem:[#allocation4 + $0xe8] sm:$0xff]  ;;  %v348_v44 = vld [vmem:[#allocation4 + $0x60] sm:$0xff] }
  0x25   :  { %194 = vmatpush.msra.mxu1 %v113_v52  ;;  %217 = vmatpush.msra.mxu2 %v114_v53  ;;  %v364_v45 = vld [vmem:[#allocation4 + $0xe0] sm:$0xff]  ;;  %v347_v46 = vld [vmem:[#allocation4 + $0x58] sm:$0xff]  ;;  %v346_v48 = vld [vmem:[#allocation4 + $0x50] sm:$0xff] }
  0x26   :  { %240 = vmatpush.msra.mxu3 %v115_v55  ;;  %172 = vmatpush.msra.mxu0 %v108_v56  ;;  %v363_v47 = vld [vmem:[#allocation4 + $0xd8] sm:$0xff]  ;;  %v362_v49 = vld [vmem:[#allocation4 + $0xd0] sm:$0xff]  ;;  %v345_v50 = vld [vmem:[#allocation4 + $0x48] sm:$0xff] }
  0x27   :  { %195 = vmatpush.msra.mxu1 %v109_v57  ;;  %218 = vmatpush.msra.mxu2 %v110_v58  ;;  %v361_v51 = vld [vmem:[#allocation4 + $0xc8] sm:$0xff]  ;;  %v344_v52 = vld [vmem:[#allocation4 + $0x40] sm:$0xff]  ;;  %v343_v54 = vld [vmem:[#allocation4 + $0x38] sm:$0xff] }
  0x28   :  { %241 = vmatpush.msra.mxu3 %v111_v59  ;;  %173 = vmatpush.msra.mxu0 %v104_v60  ;;  %v360_v53 = vld [vmem:[#allocation4 + $0xc0] sm:$0xff]  ;;  %v359_v55 = vld [vmem:[#allocation4 + $0xb8] sm:$0xff]  ;;  %v342_v56 = vld [vmem:[#allocation4 + $0x30] sm:$0xff] }
  0x29   :  { %196 = vmatpush.msra.mxu1 %v105_v61  ;;  %219 = vmatpush.msra.mxu2 %v106_v62  ;;  %v358_v57 = vld [vmem:[#allocation4 + $0xb0] sm:$0xff]  ;;  %v341_v58 = vld [vmem:[#allocation4 + $0x28] sm:$0xff]  ;;  %v340_v60 = vld [vmem:[#allocation4 + $0x20] sm:$0xff] }
  0x2a   :  { %242 = vmatpush.msra.mxu3 %v107_v1  ;;  %174 = vmatpush.msra.mxu0 %v100_v2  ;;  %v357_v59 = vld [vmem:[#allocation4 + $0xa8] sm:$0xff]  ;;  %v356_v61 = vld [vmem:[#allocation4 + $0xa0] sm:$0xff]  ;;  %v339_v62 = vld [vmem:[#allocation4 + $0x18] sm:$0xff] }
  0x2b   :  { %197 = vmatpush.msra.mxu1 %v101_v3  ;;  %220 = vmatpush.msra.mxu2 %v102_v4  ;;  %v355_v63 = vld [vmem:[#allocation4 + $0x98] sm:$0xff]  ;;  %v338_v1 = vld [vmem:[#allocation4 + $0x10] sm:$0xff]  ;;  %v336_v10 = vld [vmem:[#allocation4] sm:$0xff] }
  0x2c   :  { %243 = vmatpush.msra.mxu3 %v103_v5  ;;  %175 = vmatpush.msra.mxu0 %v96_v7  ;;  %v354_v2 = vld [vmem:[#allocation4 + $0x90] sm:$0xff] }
  0x2d   :  { %198 = vmatpush.msra.mxu1 %v97_v8  ;;  %221 = vmatpush.msra.mxu2 %v98_v9  ;;  %v337_v8 = vld [vmem:[#allocation4 + $0x8] sm:$0xff] }
  0x2e   :  { %244 = vmatpush.msra.mxu3 %v99_v11  ;;  %368 = vmatpush.msrb.mxu0 %v351_v38  ;;  %v353_v9 = vld [vmem:[#allocation4 + $0x88] sm:$0xff]  ;;  %v352_v11 = vld [vmem:[#allocation4 + $0x80] sm:$0xff] }
  0x2f   :  { %391 = vmatpush.msrb.mxu1 %v367_v39  ;;  %428 = vmatpush.msrb.mxu2 %v351_v38 }
  0x30   :  { %444 = vmatpush.msrb.mxu3 %v367_v39  ;;  %369 = vmatpush.msrb.mxu0 %v350_v40 }
  0x31   :  { %392 = vmatpush.msrb.mxu1 %v366_v41  ;;  %429 = vmatpush.msrb.mxu2 %v350_v40 }
  0x32   :  { %445 = vmatpush.msrb.mxu3 %v366_v41  ;;  %370 = vmatpush.msrb.mxu0 %v349_v42 }
  0x33   :  { %393 = vmatpush.msrb.mxu1 %v365_v43  ;;  %430 = vmatpush.msrb.mxu2 %v349_v42 }
  0x34   :  { %446 = vmatpush.msrb.mxu3 %v365_v43  ;;  %371 = vmatpush.msrb.mxu0 %v348_v44 }
  0x35   :  { %394 = vmatpush.msrb.mxu1 %v364_v45  ;;  %431 = vmatpush.msrb.mxu2 %v348_v44 }
  0x36   :  { %447 = vmatpush.msrb.mxu3 %v364_v45  ;;  %372 = vmatpush.msrb.mxu0 %v347_v46 }
  0x37   :  { %395 = vmatpush.msrb.mxu1 %v363_v47  ;;  %432 = vmatpush.msrb.mxu2 %v347_v46 }
  0x38   :  { %448 = vmatpush.msrb.mxu3 %v363_v47  ;;  %373 = vmatpush.msrb.mxu0 %v346_v48 }
  0x39   :  { %396 = vmatpush.msrb.mxu1 %v362_v49  ;;  %433 = vmatpush.msrb.mxu2 %v346_v48 }
  0x3a   :  { %449 = vmatpush.msrb.mxu3 %v362_v49  ;;  %374 = vmatpush.msrb.mxu0 %v345_v50 }
  0x3b   :  { %397 = vmatpush.msrb.mxu1 %v361_v51  ;;  %434 = vmatpush.msrb.mxu2 %v345_v50 }
  0x3c   :  { %450 = vmatpush.msrb.mxu3 %v361_v51  ;;  %375 = vmatpush.msrb.mxu0 %v344_v52 }
  0x3d   :  { %398 = vmatpush.msrb.mxu1 %v360_v53  ;;  %435 = vmatpush.msrb.mxu2 %v344_v52 }
  0x3e   :  { %451 = vmatpush.msrb.mxu3 %v360_v53  ;;  %376 = vmatpush.msrb.mxu0 %v343_v54 }
  0x3f   :  { %399 = vmatpush.msrb.mxu1 %v359_v55  ;;  %436 = vmatpush.msrb.mxu2 %v343_v54 }
  0x40   :  { %452 = vmatpush.msrb.mxu3 %v359_v55  ;;  %377 = vmatpush.msrb.mxu0 %v342_v56 }
  0x41   :  { %400 = vmatpush.msrb.mxu1 %v358_v57  ;;  %437 = vmatpush.msrb.mxu2 %v342_v56 }
  0x42   :  { %453 = vmatpush.msrb.mxu3 %v358_v57  ;;  %378 = vmatpush.msrb.mxu0 %v341_v58 }
  0x43   :  { %401 = vmatpush.msrb.mxu1 %v357_v59  ;;  %438 = vmatpush.msrb.mxu2 %v341_v58 }
  0x44   :  { %454 = vmatpush.msrb.mxu3 %v357_v59  ;;  %379 = vmatpush.msrb.mxu0 %v340_v60 }
  0x45   :  { %402 = vmatpush.msrb.mxu1 %v356_v61  ;;  %439 = vmatpush.msrb.mxu2 %v340_v60 }
  0x46   :  { %455 = vmatpush.msrb.mxu3 %v356_v61  ;;  %380 = vmatpush.msrb.mxu0 %v339_v62 }
  0x47   :  { %403 = vmatpush.msrb.mxu1 %v355_v63  ;;  %440 = vmatpush.msrb.mxu2 %v339_v62 }
  0x48   :  { %456 = vmatpush.msrb.mxu3 %v355_v63  ;;  %381 = vmatpush.msrb.mxu0 %v338_v1 }
  0x49   :  { %404 = vmatpush.msrb.mxu1 %v354_v2  ;;  %441 = vmatpush.msrb.mxu2 %v338_v1 }
  0x4a   :  { %457 = vmatpush.msrb.mxu3 %v354_v2  ;;  %382 = vmatpush.msrb.mxu0 %v337_v8 }
  0x4b   :  { %405 = vmatpush.msrb.mxu1 %v353_v9  ;;  %442 = vmatpush.msrb.mxu2 %v337_v8 }
  0x4c   :  { %458 = vmatpush.msrb.mxu3 %v353_v9  ;;  %383 = vmatpush.msrb.mxu0 %v336_v10 }
  0x4d   :  { %406 = vmatpush.msrb.mxu1 %v352_v11  ;;  %443 = vmatpush.msrb.mxu2 %v336_v10 }
  0x4e   :  { %459 = vmatpush.msrb.mxu3 %v352_v11 }
  0x82   :  { %v54_v13 = vpop.xlane.xlu0 %53 }
  0x83   :  { %v64_v14 = vmul.f32 %v63_v12, %v54_v13 }
  0x85   :  { %v66_v15 = vadd.f32 1e-05, %v64_v14 }
  0x87   :  { %470 = vrsqrt.f32 %v66_v15  ;;  %vm74_vm2 = vweird.f32 %v66_v15 }
  0x8a   :  { %v56_v16 = vpop.xlane.xlu0 %55 }
  0x8b   :  { %v65_v17 = vmul.f32 %v63_v12, %v56_v16 }
  0x8d   :  { %v471_v18 = vpop.eup %470  ;;  %v67_v19 = vadd.f32 1e-05, %v65_v17 }
  0x8e   :  { %v69_v20 = vmul.f32 %v471_v18, %v66_v15  ;;  %vm75_vm1 = vweird.f32 %v471_v18 }
  0x8f   :  { %472 = vrsqrt.f32 %v67_v19  ;;  %vm76_vm3 = vmor %vm74_vm2, %vm75_vm1  ;;  %vm84_vm5 = vweird.f32 %v67_v19 }
  0x90   :  { %v70_v21 = vmul.f32 %v471_v18, %v69_v20 }
  0x92   :  { %v71_v22 = vmul.f32 0.5, %v70_v21 }
  0x94   :  { %v72_v23 = vsub.f32 1.5, %v71_v22 }
  0x95   :  { %v473_v24 = vpop.eup %472 }
  0x96   :  { %v73_v25 = vmul.f32 %v471_v18, %v72_v23  ;;  %v79_v26 = vmul.f32 %v473_v24, %v67_v19  ;;  %vm85_vm4 = vweird.f32 %v473_v24 }
  0x97   :  { %vm86_vm6 = vmor %vm84_vm5, %vm85_vm4 }
  0x98   :  { %v77_v28 = vsel %vm76_vm3, %v471_v18, %v73_v25  ;;  %v80_v29 = vmul.f32 %v473_v24, %v79_v26 }
  0x99   :  { %v88_v30 = vmul.f32 %v77_v28, %v583_v0 }
  0x9a   :  { %v81_v31 = vmul.f32 0.5, %v80_v29 }
  0x9b   :  { %v94_v32 = vmul.f32 %v467_v27, %v88_v30 }
  0x9c   :  { %v82_v33 = vsub.f32 1.5, %v81_v31 }
  0x9d   :  { %176 = vmatmul.f32.vlgmr.msra.gmra.mxu0 %v94_v32  ;;  %199 = vmatmul.f32.vlgmr.msra.gmra.mxu1 %v94_v32 }
  0x9e   :  { %v83_v34 = vmul.f32 %v473_v24, %v82_v33  ;;  %222 = vmatmul.f32.vlgmr.msra.gmra.mxu2 %v94_v32  ;;  %245 = vmatmul.f32.vlgmr.msra.gmra.mxu3 %v94_v32 }
  0xa0   :  { %v87_v35 = vsel %vm86_vm6, %v473_v24, %v83_v34 }
  0xa1   :  { %v89_v36 = vmul.f32 %v87_v35, %v590_v6 }
  0xa3   :  { %v95_v37 = vmul.f32 %v467_v27, %v89_v36 }
  0xa5   :  { %179 = vmatmul.f32.gmra.mxu0 %v95_v37  ;;  %202 = vmatmul.f32.gmra.mxu1 %v95_v37 }
  0xa6   :  { %225 = vmatmul.f32.gmra.mxu2 %v95_v37  ;;  %248 = vmatmul.f32.gmra.mxu3 %v95_v37 }
 0x11a   :  { %v606_v3 = vpop.f32.mrf.mxu0  ;;  %v608_v4 = vpop.f32.mrf.mxu1 }
 0x11b   :  { %v424_v5 = vmul.f32 -1.442695, %v606_v3  ;;  %v425_v7 = vmul.f32 -1.442695, %v608_v4 }
 0x11d   :  { %474 = vpow2.f32 %v424_v5 }
 0x11e   :  { %476 = vpow2.f32 %v425_v7 }
 0x121   :  { %v223_v45 = vpop.f32.mrf.mxu2  ;;  %v246_v54 = vpop.f32.mrf.mxu3 }
 0x122   :  { %v612_v12 = vpop.f32.mrf.mxu0  ;;  %v614_v13 = vpop.f32.mrf.mxu1 }
 0x123   :  { %v475_v14 = vpop.eup %474  ;;  %v426_v15 = vmul.f32 -1.442695, %v612_v12  ;;  %v427_v18 = vmul.f32 -1.442695, %v614_v13 }
 0x124   :  { %v477_v16 = vpop.eup %476  ;;  %v264_v17 = vadd.f32 1.0, %v475_v14 }
 0x125   :  { %v265_v19 = vadd.f32 1.0, %v477_v16  ;;  %478 = vpow2.f32 %v426_v15 }
 0x126   :  { %480 = vrcp.f32 %v264_v17  ;;  %v277_v29 = vand.u32 2147483647, %v264_v17  ;;  %v279_v30 = vand.u32 2147483648, %v264_v17  ;;  %vm273_vm9 = vweird.f32 %v264_v17 }
 0x127   :  { %482 = vrcp.f32 %v265_v19  ;;  %v294_v33 = vand.u32 2147483648, %v265_v19  ;;  %v292_v35 = vand.u32 2147483647, %v265_v19  ;;  %vm288_vm11 = vweird.f32 %v265_v19 }
 0x128   :  { %484 = vpow2.f32 %v427_v18  ;;  %v280_v38 = vor.u32 1.1754944e-38, %v279_v30  ;;  %vm278_vm12 = vcmp.eq.f32.partialorder %v277_v29, 8.507059e+37 }
 0x129   :  { %v295_v41 = vor.u32 1.1754944e-38, %v294_v33  ;;  %vm293_vm14 = vcmp.eq.f32.partialorder %v292_v35, 8.507059e+37  ;;  %v226_v8 = vpop.f32.mrf.mxu2  ;;  %v249_v14 = vpop.f32.mrf.mxu3 }
 0x12b   :  { %v479_v20 = vpop.eup %478 }
 0x12c   :  { %v481_v21 = vpop.eup %480  ;;  %v266_v22 = vadd.f32 1.0, %v479_v20 }
 0x12d   :  { %v483_v23 = vpop.eup %482  ;;  %v269_v24 = vmul.f32 %v481_v21, %v264_v17  ;;  %vm274_vm7 = vweird.f32 %v481_v21 }
 0x12e   :  { %v485_v25 = vpop.eup %484  ;;  %v284_v26 = vmul.f32 %v483_v23, %v265_v19  ;;  %486 = vrcp.f32 %v266_v22  ;;  %vm289_vm8 = vweird.f32 %v483_v23  ;;  %vm275_vm10 = vmor %vm273_vm9, %vm274_vm7  ;;  %v309_v51 = vand.u32 2147483648, %v266_v22 }
 0x12f   :  { %v270_v27 = vsub.f32 1.0, %v269_v24  ;;  %v267_v28 = vadd.f32 1.0, %v485_v25  ;;  %vm290_vm13 = vmor %vm288_vm11, %vm289_vm8  ;;  %v307_v56 = vand.u32 2147483647, %v266_v22  ;;  %vm303_vm0 = vweird.f32 %v266_v22 }
 0x130   :  { %v285_v31 = vsub.f32 1.0, %v284_v26  ;;  %v310_v61 = vor.u32 1.1754944e-38, %v309_v51 }
 0x131   :  { %v271_v32 = vmul.f32 %v481_v21, %v270_v27  ;;  %488 = vrcp.f32 %v267_v28  ;;  %v324_v60 = vand.u32 2147483648, %v267_v28  ;;  %v322_v63 = vand.u32 2147483647, %v267_v28 }
 0x132   :  { %v286_v34 = vmul.f32 %v483_v23, %v285_v31  ;;  %vm308_vm3 = vcmp.eq.f32.partialorder %v307_v56, 8.507059e+37  ;;  %vm318_vm4 = vweird.f32 %v267_v28 }
 0x133   :  { %v272_v36 = vadd.f32 %v481_v21, %v271_v32  ;;  %v325_v5 = vor.u32 1.1754944e-38, %v324_v60  ;;  %vm323_vm6 = vcmp.eq.f32.partialorder %v322_v63, 8.507059e+37 }
 0x134   :  { %v487_v37 = vpop.eup %486  ;;  %v287_v39 = vadd.f32 %v483_v23, %v286_v34 }
 0x135   :  { %v276_v40 = vsel %vm275_vm10, %v481_v21, %v272_v36  ;;  %v299_v42 = vmul.f32 %v487_v37, %v266_v22  ;;  %vm304_vm15 = vweird.f32 %v487_v37 }
 0x136   :  { %v281_v43 = vsel %vm278_vm12, %v280_v38, %v276_v40  ;;  %v291_v44 = vsel %vm290_vm13, %v483_v23, %v287_v39  ;;  %vm305_vm1 = vmor %vm303_vm0, %vm304_vm15 }
 0x137   :  { %v489_v46 = vpop.eup %488  ;;  %v328_v47 = vmul.f32 %v281_v43, %v606_v3  ;;  %v296_v48 = vsel %vm293_vm14, %v295_v41, %v291_v44  ;;  %v300_v49 = vsub.f32 1.0, %v299_v42 }
 0x138   :  { %v329_v50 = vmul.f32 %v296_v48, %v608_v4  ;;  %v314_v52 = vmul.f32 %v489_v46, %v267_v28  ;;  %vm319_vm2 = vweird.f32 %v489_v46 }
 0x139   :  { %v332_v53 = vmul.f32 %v328_v47, %v223_v45  ;;  %v301_v55 = vmul.f32 %v487_v37, %v300_v49  ;;  %vm320_vm5 = vmor %vm318_vm4, %vm319_vm2 }
 0x13a   :  { %v333_v57 = vmul.f32 %v329_v50, %v246_v54  ;;  %v315_v58 = vsub.f32 1.0, %v314_v52 }
 0x13b   :  { %v302_v59 = vadd.f32 %v487_v37, %v301_v55  ;;  %384 = vmatmul.f32.vlgmr.msrb.gmra.mxu0 %v332_v53 }
 0x13c   :  { %v316_v62 = vmul.f32 %v489_v46, %v315_v58  ;;  %407 = vmatmul.f32.vlgmr.msrb.gmra.mxu1 %v333_v57 }
 0x13d   :  { %v306_v1 = vsel %vm305_vm1, %v487_v37, %v302_v59 }
 0x13e   :  { %v311_v2 = vsel %vm308_vm3, %v310_v61, %v306_v1  ;;  %v317_v3 = vadd.f32 %v489_v46, %v316_v62 }
 0x13f   :  { %v330_v4 = vmul.f32 %v311_v2, %v612_v12 }
 0x140   :  { %v321_v7 = vsel %vm320_vm5, %v489_v46, %v317_v3 }
 0x141   :  { %v326_v9 = vsel %vm323_vm6, %v325_v5, %v321_v7  ;;  %v334_v10 = vmul.f32 %v330_v4, %v226_v8 }
 0x142   :  { %v331_v11 = vmul.f32 %v326_v9, %v614_v13 }
 0x143   :  { %387 = vmatmul.f32.vlgmr.msrb.gmra.mxu2 %v334_v10 }
 0x144   :  { %v335_v15 = vmul.f32 %v331_v11, %v249_v14 }
 0x146   :  { %410 = vmatmul.f32.vlgmr.msrb.gmra.mxu3 %v335_v15 }
 0x1b8   :  { %v385_v16 = vpop.f32.mrf.mxu0 }
 0x1b9   :  { %v408_v17 = vpop.f32.mrf.mxu1 }
 0x1ba   :  { %v409_v18 = vadd.f32 %v408_v17, %v385_v16 }
 0x1bc   :  { %v414_v19 = vadd.f32 %v409_v18, %v583_v0 }
 0x1be   :  { %416 = vst [vmem:[%s634_s4] sm:$0xff] %v414_v19 }
 0x1c6   :  { %v388_v12 = vpop.f32.mrf.mxu2 }
 0x1c9   :  { %v411_v20 = vpop.f32.mrf.mxu3 }
 0x1ca   :  { %v412_v21 = vadd.f32 %v411_v20, %v388_v12 }
 0x1cc   :  { %v415_v22 = vadd.f32 %v412_v21, %v590_v6 }
 0x1ce   :  { %417 = vst [vmem:[%s634_s4 + $0x8] sm:$0xff] %v415_v22 }
 0x1cf   :  { %422 = vsyncpa [#allocation3], 1 }
 0x1d0   :  { %423 = vsyncpa [#allocation5], 1 }

// kernel: encode.7
= control target key start
LH: loop header
LB: loop body
LE: loop exit
PB: predicated region body
PF: predicated region fallthrough
CT: control target
= control target key end

     0   :  { %8 = vsyncpa [#allocation3], 0  ;;  %s258_s15 = smov [#allocation2]   ;;  %s259_s17 = smov 384   ;;  %s329_s0 = inlined_call_operand.vmem [shape: f32[16,128], index: 0, kind: input, shape index: {}]   ;;  %s330_s1 = inlined_call_operand.vmem [shape: f32[1,128], index: 1, kind: input, shape index: {}]   ;;  %s331_s2 = inlined_call_operand.hbm [shape: f32[128,384], index: 2, kind: input, shape index: {}]   ;;  %s332_s3 = inlined_call_operand.vmem [shape: f32[16,384], index: 3, kind: output, shape index: {}]  }
   0x1   :  { %s17_s14 = sshll.u32 %s331_s2, 4  ;;  %s19_s16 = sshll.u32 %s258_s15, 4  ;;  %s18_s14 = int_to_ptr.hbm [resolvable:$true] %s17_s14  ;;  %s20_s16 = int_to_ptr.vmem [resolvable:$true] %s19_s16 }
   0x2   :  { %s260_s18 = smov 24  }
   0x3   :  { %25 = dma.hbm_to_vmem [thread:$0]  %s18_s14, 6144, %s20_s16, [#allocation3], %s259_s17, %s259_s17, %s260_s18  }
   0x4   :  { %256 = dma.done.wait [#allocation3], 6144  }
   0x5   :  { %257 = vsyncadd [#allocation3], 4294961152  ;;  %v288_v0 = vld [vmem:[%s329_s0] sm:$0xff]  ;;  %v122_v1 = vld [vmem:[#allocation2 + $0x168] sm:$0xff]  ;;  %v261_v19 = vmov 128.0  }
   0x6   :  { %v32_v2 = vmul.f32 %v288_v0, %v288_v0  ;;  %125 = vmatpush.msra.mxu0 %v122_v1  ;;  %v123_v3 = vld [vmem:[#allocation2 + $0x170] sm:$0xff]  ;;  %v124_v4 = vld [vmem:[#allocation2 + $0x178] sm:$0xff]  ;;  %205 = vmatpush.msra.mxu3 %v122_v1  ;;  %v121_v7 = vld [vmem:[#allocation2 + $0x160] sm:$0xff]  ;;  %226 = vrcp.f32 %v261_v19 }
   0x7   :  { %v119_v5 = vld [vmem:[#allocation2 + $0x150] sm:$0xff]  ;;  %148 = vmatpush.msra.mxu1 %v123_v3  ;;  %171 = vmatpush.msra.mxu2 %v124_v4  ;;  %v120_v6 = vld [vmem:[#allocation2 + $0x158] sm:$0xff]  ;;  %v117_v9 = vld [vmem:[#allocation2 + $0x140] sm:$0xff] }
   0x8   :  { %v116_v8 = vld [vmem:[#allocation2 + $0x138] sm:$0xff]  ;;  %34 = vadd.xlane.f32.xlu0 %v32_v2  ;;  %126 = vmatpush.msra.mxu0 %v119_v5  ;;  %v118_v10 = vld [vmem:[#allocation2 + $0x148] sm:$0xff]  ;;  %v113_v13 = vld [vmem:[#allocation2 + $0x120] sm:$0xff] }
   0x9   :  { %v295_v11 = vld [vmem:[%s329_s0 + $0x8] sm:$0xff]  ;;  %149 = vmatpush.msra.mxu1 %v120_v6  ;;  %172 = vmatpush.msra.mxu2 %v121_v7  ;;  %v115_v15 = vld [vmem:[#allocation2 + $0x130] sm:$0xff]  ;;  %v112_v18 = vld [vmem:[#allocation2 + $0x118] sm:$0xff] }
   0xa   :  { %127 = vmatpush.msra.mxu0 %v116_v8  ;;  %206 = vmatpush.msra.mxu3 %v119_v5  ;;  %v33_v12 = vmul.f32 %v295_v11, %v295_v11  ;;  %v114_v14 = vld [vmem:[#allocation2 + $0x128] sm:$0xff]  ;;  %v111_v17 = vld [vmem:[#allocation2 + $0x110] sm:$0xff]  ;;  %v108_v21 = vld [vmem:[#allocation2 + $0xf8] sm:$0xff] }
   0xb   :  { %150 = vmatpush.msra.mxu1 %v117_v9  ;;  %173 = vmatpush.msra.mxu2 %v118_v10  ;;  %v110_v16 = vld [vmem:[#allocation2 + $0x108] sm:$0xff]  ;;  %v107_v20 = vld [vmem:[#allocation2 + $0xf0] sm:$0xff]  ;;  %v109_v22 = vld [vmem:[#allocation2 + $0x100] sm:$0xff] }
   0xc   :  { %207 = vmatpush.msra.mxu3 %v116_v8  ;;  %128 = vmatpush.msra.mxu0 %v113_v13  ;;  %v104_v23 = vld [vmem:[#allocation2 + $0xd8] sm:$0xff]  ;;  %v105_v24 = vld [vmem:[#allocation2 + $0xe0] sm:$0xff]  ;;  %v106_v25 = vld [vmem:[#allocation2 + $0xe8] sm:$0xff]  ;;  %v299_v29 = vpop.eup %226 }
   0xd   :  { %151 = vmatpush.msra.mxu1 %v114_v14  ;;  %174 = vmatpush.msra.mxu2 %v115_v15  ;;  %v101_v26 = vld [vmem:[#allocation2 + $0xc0] sm:$0xff]  ;;  %v102_v27 = vld [vmem:[#allocation2 + $0xc8] sm:$0xff]  ;;  %v103_v28 = vld [vmem:[#allocation2 + $0xd0] sm:$0xff]  ;;  %v39_v36 = vmul.f32 128.0, %v299_v29  ;;  %vm43_vm0 = vweird.f32 %v299_v29 }
   0xe   :  { %208 = vmatpush.msra.mxu3 %v113_v13  ;;  %129 = vmatpush.msra.mxu0 %v110_v16  ;;  %v98_v30 = vld [vmem:[#allocation2 + $0xa8] sm:$0xff]  ;;  %v99_v31 = vld [vmem:[#allocation2 + $0xb0] sm:$0xff]  ;;  %v100_v32 = vld [vmem:[#allocation2 + $0xb8] sm:$0xff] }
   0xf   :  { %152 = vmatpush.msra.mxu1 %v111_v17  ;;  %175 = vmatpush.msra.mxu2 %v112_v18  ;;  %v95_v33 = vld [vmem:[#allocation2 + $0x90] sm:$0xff]  ;;  %v96_v34 = vld [vmem:[#allocation2 + $0x98] sm:$0xff]  ;;  %v97_v35 = vld [vmem:[#allocation2 + $0xa0] sm:$0xff]  ;;  %v40_v43 = vsub.f32 1.0, %v39_v36 }
  0x10   :  { %36 = vadd.xlane.f32.xlu0 %v33_v12  ;;  %209 = vmatpush.msra.mxu3 %v110_v16  ;;  %v92_v37 = vld [vmem:[#allocation2 + $0x78] sm:$0xff]  ;;  %v93_v38 = vld [vmem:[#allocation2 + $0x80] sm:$0xff]  ;;  %v94_v39 = vld [vmem:[#allocation2 + $0x88] sm:$0xff] }
  0x11   :  { %130 = vmatpush.msra.mxu0 %v107_v20  ;;  %153 = vmatpush.msra.mxu1 %v108_v21  ;;  %v89_v40 = vld [vmem:[#allocation2 + $0x60] sm:$0xff]  ;;  %v90_v41 = vld [vmem:[#allocation2 + $0x68] sm:$0xff]  ;;  %v91_v42 = vld [vmem:[#allocation2 + $0x70] sm:$0xff]  ;;  %v41_v50 = vmul.f32 %v299_v29, %v40_v43 }
  0x12   :  { %176 = vmatpush.msra.mxu2 %v109_v22  ;;  %210 = vmatpush.msra.mxu3 %v107_v20  ;;  %v86_v44 = vld [vmem:[#allocation2 + $0x48] sm:$0xff]  ;;  %v87_v45 = vld [vmem:[#allocation2 + $0x50] sm:$0xff]  ;;  %v88_v46 = vld [vmem:[#allocation2 + $0x58] sm:$0xff] }
  0x13   :  { %131 = vmatpush.msra.mxu0 %v104_v23  ;;  %154 = vmatpush.msra.mxu1 %v105_v24  ;;  %v83_v47 = vld [vmem:[#allocation2 + $0x30] sm:$0xff]  ;;  %v84_v48 = vld [vmem:[#allocation2 + $0x38] sm:$0xff]  ;;  %v85_v49 = vld [vmem:[#allocation2 + $0x40] sm:$0xff]  ;;  %v42_v57 = vadd.f32 %v299_v29, %v41_v50 }
  0x14   :  { %177 = vmatpush.msra.mxu2 %v106_v25  ;;  %211 = vmatpush.msra.mxu3 %v104_v23  ;;  %v80_v51 = vld [vmem:[#allocation2 + $0x18] sm:$0xff]  ;;  %v81_v52 = vld [vmem:[#allocation2 + $0x20] sm:$0xff]  ;;  %v82_v53 = vld [vmem:[#allocation2 + $0x28] sm:$0xff] }
  0x15   :  { %132 = vmatpush.msra.mxu0 %v101_v26  ;;  %155 = vmatpush.msra.mxu1 %v102_v27  ;;  %v77_v54 = vld [vmem:[#allocation2] sm:$0xff]  ;;  %v78_v55 = vld [vmem:[#allocation2 + $0x8] sm:$0xff]  ;;  %v79_v56 = vld [vmem:[#allocation2 + $0x10] sm:$0xff]  ;;  %v44_v58 = vsel %vm43_vm0, %v299_v29, %v42_v57 }
  0x16   :  { %178 = vmatpush.msra.mxu2 %v103_v28  ;;  %212 = vmatpush.msra.mxu3 %v101_v26  ;;  %v225_v10 = vld [vmem:[%s330_s1] ss:$0 sm:$0xff] }
  0x17   :  { %133 = vmatpush.msra.mxu0 %v98_v30  ;;  %156 = vmatpush.msra.mxu1 %v99_v31 }
  0x18   :  { %179 = vmatpush.msra.mxu2 %v100_v32  ;;  %213 = vmatpush.msra.mxu3 %v98_v30 }
  0x19   :  { %134 = vmatpush.msra.mxu0 %v95_v33  ;;  %157 = vmatpush.msra.mxu1 %v96_v34 }
  0x1a   :  { %180 = vmatpush.msra.mxu2 %v97_v35  ;;  %214 = vmatpush.msra.mxu3 %v95_v33 }
  0x1b   :  { %135 = vmatpush.msra.mxu0 %v92_v37  ;;  %158 = vmatpush.msra.mxu1 %v93_v38 }
  0x1c   :  { %181 = vmatpush.msra.mxu2 %v94_v39  ;;  %215 = vmatpush.msra.mxu3 %v92_v37 }
  0x1d   :  { %136 = vmatpush.msra.mxu0 %v89_v40  ;;  %159 = vmatpush.msra.mxu1 %v90_v41 }
  0x1e   :  { %182 = vmatpush.msra.mxu2 %v91_v42  ;;  %216 = vmatpush.msra.mxu3 %v89_v40 }
  0x1f   :  { %137 = vmatpush.msra.mxu0 %v86_v44  ;;  %160 = vmatpush.msra.mxu1 %v87_v45 }
  0x20   :  { %183 = vmatpush.msra.mxu2 %v88_v46  ;;  %217 = vmatpush.msra.mxu3 %v86_v44 }
  0x21   :  { %138 = vmatpush.msra.mxu0 %v83_v47  ;;  %161 = vmatpush.msra.mxu1 %v84_v48 }
  0x22   :  { %184 = vmatpush.msra.mxu2 %v85_v49  ;;  %218 = vmatpush.msra.mxu3 %v83_v47 }
  0x23   :  { %139 = vmatpush.msra.mxu0 %v80_v51  ;;  %162 = vmatpush.msra.mxu1 %v81_v52 }
  0x24   :  { %185 = vmatpush.msra.mxu2 %v82_v53  ;;  %219 = vmatpush.msra.mxu3 %v80_v51 }
  0x25   :  { %140 = vmatpush.msra.mxu0 %v77_v54  ;;  %163 = vmatpush.msra.mxu1 %v78_v55 }
  0x26   :  { %186 = vmatpush.msra.mxu2 %v79_v56  ;;  %220 = vmatpush.msra.mxu3 %v77_v54 }
  0x7b   :  { %v35_v59 = vpop.xlane.xlu0 %34 }
  0x7c   :  { %v45_v60 = vmul.f32 %v44_v58, %v35_v59 }
  0x7e   :  { %v47_v61 = vadd.f32 1e-05, %v45_v60 }
  0x80   :  { %228 = vrsqrt.f32 %v47_v61  ;;  %vm55_vm2 = vweird.f32 %v47_v61 }
  0x83   :  { %v37_v62 = vpop.xlane.xlu0 %36 }
  0x84   :  { %v46_v63 = vmul.f32 %v44_v58, %v37_v62 }
  0x86   :  { %v229_v1 = vpop.eup %228  ;;  %v48_v2 = vadd.f32 1e-05, %v46_v63 }
  0x87   :  { %v50_v3 = vmul.f32 %v229_v1, %v47_v61  ;;  %vm56_vm1 = vweird.f32 %v229_v1 }
  0x88   :  { %230 = vrsqrt.f32 %v48_v2  ;;  %vm57_vm3 = vmor %vm55_vm2, %vm56_vm1  ;;  %vm65_vm5 = vweird.f32 %v48_v2 }
  0x89   :  { %v51_v4 = vmul.f32 %v229_v1, %v50_v3 }
  0x8b   :  { %v52_v5 = vmul.f32 0.5, %v51_v4 }
  0x8d   :  { %v53_v6 = vsub.f32 1.5, %v52_v5 }
  0x8e   :  { %v231_v7 = vpop.eup %230 }
  0x8f   :  { %v54_v8 = vmul.f32 %v229_v1, %v53_v6  ;;  %v60_v9 = vmul.f32 %v231_v7, %v48_v2  ;;  %vm66_vm4 = vweird.f32 %v231_v7 }
  0x90   :  { %vm67_vm6 = vmor %vm65_vm5, %vm66_vm4 }
  0x91   :  { %v61_v12 = vmul.f32 %v231_v7, %v60_v9  ;;  %v58_v13 = vsel %vm57_vm3, %v229_v1, %v54_v8 }
  0x92   :  { %v69_v14 = vmul.f32 %v58_v13, %v288_v0 }
  0x93   :  { %v62_v15 = vmul.f32 0.5, %v61_v12 }
  0x94   :  { %v75_v16 = vmul.f32 %v225_v10, %v69_v14 }
  0x95   :  { %v63_v17 = vsub.f32 1.5, %v62_v15 }
  0x96   :  { %141 = vmatmul.f32.vlgmr.msra.gmra.mxu0 %v75_v16  ;;  %164 = vmatmul.f32.vlgmr.msra.gmra.mxu1 %v75_v16 }
  0x97   :  { %v64_v18 = vmul.f32 %v231_v7, %v63_v17  ;;  %187 = vmatmul.f32.vlgmr.msra.gmra.mxu2 %v75_v16 }
  0x99   :  { %v68_v19 = vsel %vm67_vm6, %v231_v7, %v64_v18 }
  0x9a   :  { %v70_v20 = vmul.f32 %v68_v19, %v295_v11 }
  0x9c   :  { %v76_v21 = vmul.f32 %v225_v10, %v70_v20 }
  0x9e   :  { %144 = vmatmul.f32.vlgmr.msra.gmra.mxu3 %v76_v21  ;;  %167 = vmatmul.f32.gmra.mxu1 %v76_v21 }
  0x9f   :  { %190 = vmatmul.f32.gmra.mxu2 %v76_v21 }
 0x113   :  { %v142_v22 = vpop.f32.mrf.mxu0  ;;  %v165_v23 = vpop.f32.mrf.mxu1 }
 0x114   :  { %194 = vst [vmem:[%s332_s3] sm:$0xff] %v142_v22 }
 0x115   :  { %195 = vst [vmem:[%s332_s3 + $0x8] sm:$0xff] %v165_v23 }
 0x11a   :  { %v188_v0 = vpop.f32.mrf.mxu2 }
 0x11b   :  { %196 = vst [vmem:[%s332_s3 + $0x10] sm:$0xff] %v188_v0  ;;  %v168_v11 = vpop.f32.mrf.mxu1 }
 0x11c   :  { %198 = vst [vmem:[%s332_s3 + $0x20] sm:$0xff] %v168_v11 }
 0x121   :  { %v145_v24 = vpop.f32.mrf.mxu3 }
 0x122   :  { %197 = vst [vmem:[%s332_s3 + $0x18] sm:$0xff] %v145_v24  ;;  %v191_v25 = vpop.f32.mrf.mxu2 }
 0x123   :  { %199 = vst [vmem:[%s332_s3 + $0x28] sm:$0xff] %v191_v25 }
 0x124   :  { %204 = vsyncpa [#allocation3], 1 }

// kernel: encode.12
= control target key start
LH: loop header
LB: loop body
LE: loop exit
PB: predicated region body
PF: predicated region fallthrough
CT: control target
= control target key end

     0   :  { %9 = vsyncpa [#allocation3], 0  ;;  %s496_s18 = smov [#allocation2]   ;;  %s497_s20 = smov 512   ;;  %s674_s0 = inlined_call_operand.vmem [shape: f32[16,128], index: 0, kind: input, shape index: {}]   ;;  %s675_s1 = inlined_call_operand.vmem [shape: f32[1,128], index: 1, kind: input, shape index: {}]   ;;  %s676_s2 = inlined_call_operand.hbm [shape: f32[128,512], index: 2, kind: input, shape index: {}]   ;;  %s677_s3 = inlined_call_operand.vmem [shape: f32[256,128], index: 3, kind: input, shape index: {}]   ;;  %s678_s4 = inlined_call_operand.vmem [shape: f32[16,128], index: 4, kind: output, shape index: {}]  }
   0x1   :  { %s18_s17 = sshll.u32 %s676_s2, 4  ;;  %s20_s19 = sshll.u32 %s496_s18, 4  ;;  %s19_s17 = int_to_ptr.hbm [resolvable:$true] %s18_s17  ;;  %s21_s19 = int_to_ptr.vmem [resolvable:$true] %s20_s19 }
   0x2   :  { %s498_s21 = smov 32  }
   0x3   :  { %26 = dma.hbm_to_vmem [thread:$0]  %s19_s17, 8192, %s21_s19, [#allocation3], %s497_s20, %s497_s20, %s498_s21  }
   0x4   :  { %494 = dma.done.wait [#allocation3], 8192  }
   0x5   :  { %495 = vsyncadd [#allocation3], 4294959104  ;;  %v531_v0 = vld [vmem:[%s674_s0] sm:$0xff]  ;;  %v141_v3 = vld [vmem:[#allocation2 + $0x1e8] sm:$0xff]  ;;  %v499_v24 = vmov 128.0  }
   0x6   :  { %v140_v1 = vld [vmem:[#allocation2 + $0x1e0] sm:$0xff]  ;;  %v35_v2 = vmul.f32 %v531_v0, %v531_v0  ;;  %v142_v4 = vld [vmem:[#allocation2 + $0x1f0] sm:$0xff]  ;;  %v143_v5 = vld [vmem:[#allocation2 + $0x1f8] sm:$0xff]  ;;  %167 = vmatpush.msra.mxu1 %v141_v3  ;;  %448 = vrcp.f32 %v499_v24 }
   0x7   :  { %144 = vmatpush.msra.mxu0 %v140_v1  ;;  %v538_v6 = vld [vmem:[%s674_s0 + $0x8] sm:$0xff]  ;;  %190 = vmatpush.msra.mxu2 %v142_v4  ;;  %v136_v7 = vld [vmem:[#allocation2 + $0x1c0] sm:$0xff]  ;;  %v138_v9 = vld [vmem:[#allocation2 + $0x1d0] sm:$0xff] }
   0x8   :  { %v137_v8 = vld [vmem:[#allocation2 + $0x1c8] sm:$0xff]  ;;  %37 = vadd.xlane.f32.xlu0 %v35_v2  ;;  %213 = vmatpush.msra.mxu3 %v143_v5  ;;  %v139_v10 = vld [vmem:[#allocation2 + $0x1d8] sm:$0xff]  ;;  %v132_v11 = vld [vmem:[#allocation2 + $0x1a0] sm:$0xff]  ;;  %v36_v15 = vmul.f32 %v538_v6, %v538_v6 }
   0x9   :  { %v133_v12 = vld [vmem:[#allocation2 + $0x1a8] sm:$0xff]  ;;  %145 = vmatpush.msra.mxu0 %v136_v7  ;;  %168 = vmatpush.msra.mxu1 %v137_v8  ;;  %v134_v13 = vld [vmem:[#allocation2 + $0x1b0] sm:$0xff]  ;;  %v135_v14 = vld [vmem:[#allocation2 + $0x1b8] sm:$0xff] }
   0xa   :  { %191 = vmatpush.msra.mxu2 %v138_v9  ;;  %214 = vmatpush.msra.mxu3 %v139_v10  ;;  %v128_v16 = vld [vmem:[#allocation2 + $0x180] sm:$0xff]  ;;  %v129_v17 = vld [vmem:[#allocation2 + $0x188] sm:$0xff]  ;;  %v130_v18 = vld [vmem:[#allocation2 + $0x190] sm:$0xff] }
   0xb   :  { %146 = vmatpush.msra.mxu0 %v132_v11  ;;  %169 = vmatpush.msra.mxu1 %v133_v12  ;;  %v131_v19 = vld [vmem:[#allocation2 + $0x198] sm:$0xff]  ;;  %v124_v20 = vld [vmem:[#allocation2 + $0x160] sm:$0xff]  ;;  %v125_v21 = vld [vmem:[#allocation2 + $0x168] sm:$0xff] }
   0xc   :  { %192 = vmatpush.msra.mxu2 %v134_v13  ;;  %215 = vmatpush.msra.mxu3 %v135_v14  ;;  %v126_v22 = vld [vmem:[#allocation2 + $0x170] sm:$0xff]  ;;  %v127_v23 = vld [vmem:[#allocation2 + $0x178] sm:$0xff]  ;;  %v120_v25 = vld [vmem:[#allocation2 + $0x140] sm:$0xff]  ;;  %v542_v37 = vpop.eup %448 }
   0xd   :  { %147 = vmatpush.msra.mxu0 %v128_v16  ;;  %170 = vmatpush.msra.mxu1 %v129_v17  ;;  %v121_v26 = vld [vmem:[#allocation2 + $0x148] sm:$0xff]  ;;  %v122_v27 = vld [vmem:[#allocation2 + $0x150] sm:$0xff]  ;;  %v123_v28 = vld [vmem:[#allocation2 + $0x158] sm:$0xff]  ;;  %v42_v45 = vmul.f32 128.0, %v542_v37  ;;  %vm46_vm0 = vweird.f32 %v542_v37 }
   0xe   :  { %193 = vmatpush.msra.mxu2 %v130_v18  ;;  %216 = vmatpush.msra.mxu3 %v131_v19  ;;  %v116_v29 = vld [vmem:[#allocation2 + $0x120] sm:$0xff]  ;;  %v117_v30 = vld [vmem:[#allocation2 + $0x128] sm:$0xff]  ;;  %v118_v31 = vld [vmem:[#allocation2 + $0x130] sm:$0xff] }
   0xf   :  { %148 = vmatpush.msra.mxu0 %v124_v20  ;;  %171 = vmatpush.msra.mxu1 %v125_v21  ;;  %v119_v32 = vld [vmem:[#allocation2 + $0x138] sm:$0xff]  ;;  %v112_v33 = vld [vmem:[#allocation2 + $0x100] sm:$0xff]  ;;  %v113_v34 = vld [vmem:[#allocation2 + $0x108] sm:$0xff]  ;;  %v43_v54 = vsub.f32 1.0, %v42_v45 }
  0x10   :  { %39 = vadd.xlane.f32.xlu0 %v36_v15  ;;  %194 = vmatpush.msra.mxu2 %v126_v22  ;;  %v114_v35 = vld [vmem:[#allocation2 + $0x110] sm:$0xff]  ;;  %v115_v36 = vld [vmem:[#allocation2 + $0x118] sm:$0xff]  ;;  %v108_v38 = vld [vmem:[#allocation2 + $0xe0] sm:$0xff] }
  0x11   :  { %217 = vmatpush.msra.mxu3 %v127_v23  ;;  %149 = vmatpush.msra.mxu0 %v120_v25  ;;  %v109_v39 = vld [vmem:[#allocation2 + $0xe8] sm:$0xff]  ;;  %v110_v40 = vld [vmem:[#allocation2 + $0xf0] sm:$0xff]  ;;  %v111_v41 = vld [vmem:[#allocation2 + $0xf8] sm:$0xff]  ;;  %v44_v63 = vmul.f32 %v542_v37, %v43_v54 }
  0x12   :  { %172 = vmatpush.msra.mxu1 %v121_v26  ;;  %195 = vmatpush.msra.mxu2 %v122_v27  ;;  %v104_v42 = vld [vmem:[#allocation2 + $0xc0] sm:$0xff]  ;;  %v105_v43 = vld [vmem:[#allocation2 + $0xc8] sm:$0xff]  ;;  %v106_v44 = vld [vmem:[#allocation2 + $0xd0] sm:$0xff] }
  0x13   :  { %218 = vmatpush.msra.mxu3 %v123_v28  ;;  %150 = vmatpush.msra.mxu0 %v116_v29  ;;  %v107_v46 = vld [vmem:[#allocation2 + $0xd8] sm:$0xff]  ;;  %v100_v47 = vld [vmem:[#allocation2 + $0xa0] sm:$0xff]  ;;  %v101_v48 = vld [vmem:[#allocation2 + $0xa8] sm:$0xff]  ;;  %v45_v10 = vadd.f32 %v542_v37, %v44_v63 }
  0x14   :  { %173 = vmatpush.msra.mxu1 %v117_v30  ;;  %196 = vmatpush.msra.mxu2 %v118_v31  ;;  %v102_v49 = vld [vmem:[#allocation2 + $0xb0] sm:$0xff]  ;;  %v103_v50 = vld [vmem:[#allocation2 + $0xb8] sm:$0xff]  ;;  %v96_v51 = vld [vmem:[#allocation2 + $0x80] sm:$0xff] }
  0x15   :  { %219 = vmatpush.msra.mxu3 %v119_v32  ;;  %151 = vmatpush.msra.mxu0 %v112_v33  ;;  %v97_v52 = vld [vmem:[#allocation2 + $0x88] sm:$0xff]  ;;  %v98_v53 = vld [vmem:[#allocation2 + $0x90] sm:$0xff]  ;;  %v99_v55 = vld [vmem:[#allocation2 + $0x98] sm:$0xff]  ;;  %v47_v12 = vsel %vm46_vm0, %v542_v37, %v45_v10 }
  0x16   :  { %174 = vmatpush.msra.mxu1 %v113_v34  ;;  %197 = vmatpush.msra.mxu2 %v114_v35  ;;  %v92_v56 = vld [vmem:[#allocation2 + $0x60] sm:$0xff]  ;;  %v93_v57 = vld [vmem:[#allocation2 + $0x68] sm:$0xff]  ;;  %v94_v58 = vld [vmem:[#allocation2 + $0x70] sm:$0xff] }
  0x17   :  { %220 = vmatpush.msra.mxu3 %v115_v36  ;;  %152 = vmatpush.msra.mxu0 %v108_v38  ;;  %v95_v59 = vld [vmem:[#allocation2 + $0x78] sm:$0xff]  ;;  %v88_v60 = vld [vmem:[#allocation2 + $0x40] sm:$0xff]  ;;  %v89_v61 = vld [vmem:[#allocation2 + $0x48] sm:$0xff] }
  0x18   :  { %175 = vmatpush.msra.mxu1 %v109_v39  ;;  %198 = vmatpush.msra.mxu2 %v110_v40  ;;  %v90_v62 = vld [vmem:[#allocation2 + $0x50] sm:$0xff]  ;;  %v91_v1 = vld [vmem:[#allocation2 + $0x58] sm:$0xff]  ;;  %v84_v2 = vld [vmem:[#allocation2 + $0x20] sm:$0xff] }
  0x19   :  { %221 = vmatpush.msra.mxu3 %v111_v41  ;;  %153 = vmatpush.msra.mxu0 %v104_v42  ;;  %v85_v3 = vld [vmem:[#allocation2 + $0x28] sm:$0xff]  ;;  %v86_v4 = vld [vmem:[#allocation2 + $0x30] sm:$0xff]  ;;  %v87_v5 = vld [vmem:[#allocation2 + $0x38] sm:$0xff] }
  0x1a   :  { %176 = vmatpush.msra.mxu1 %v105_v43  ;;  %199 = vmatpush.msra.mxu2 %v106_v44  ;;  %v80_v7 = vld [vmem:[#allocation2] sm:$0xff]  ;;  %v81_v8 = vld [vmem:[#allocation2 + $0x8] sm:$0xff]  ;;  %v82_v9 = vld [vmem:[#allocation2 + $0x10] sm:$0xff] }
  0x1b   :  { %222 = vmatpush.msra.mxu3 %v107_v46  ;;  %154 = vmatpush.msra.mxu0 %v100_v47  ;;  %v83_v11 = vld [vmem:[#allocation2 + $0x18] sm:$0xff]  ;;  %v447_v27 = vld [vmem:[%s675_s1] ss:$0 sm:$0xff]  ;;  %v334_v40 = vld [vmem:[%s677_s3 + $0x70] sm:$0xff] }
  0x1c   :  { %177 = vmatpush.msra.mxu1 %v101_v48  ;;  %200 = vmatpush.msra.mxu2 %v102_v49  ;;  %v335_v38 = vld [vmem:[%s677_s3 + $0x78] sm:$0xff]  ;;  %v350_v41 = vld [vmem:[%s677_s3 + $0xf0] sm:$0xff]  ;;  %v333_v42 = vld [vmem:[%s677_s3 + $0x68] sm:$0xff] }
  0x1d   :  { %223 = vmatpush.msra.mxu3 %v103_v50  ;;  %155 = vmatpush.msra.mxu0 %v96_v51  ;;  %v351_v39 = vld [vmem:[%s677_s3 + $0xf8] sm:$0xff]  ;;  %v349_v43 = vld [vmem:[%s677_s3 + $0xe8] sm:$0xff]  ;;  %v332_v44 = vld [vmem:[%s677_s3 + $0x60] sm:$0xff] }
  0x1e   :  { %178 = vmatpush.msra.mxu1 %v97_v52  ;;  %201 = vmatpush.msra.mxu2 %v98_v53  ;;  %v348_v45 = vld [vmem:[%s677_s3 + $0xe0] sm:$0xff]  ;;  %v331_v46 = vld [vmem:[%s677_s3 + $0x58] sm:$0xff]  ;;  %v330_v48 = vld [vmem:[%s677_s3 + $0x50] sm:$0xff] }
  0x1f   :  { %224 = vmatpush.msra.mxu3 %v99_v55  ;;  %156 = vmatpush.msra.mxu0 %v92_v56  ;;  %v347_v47 = vld [vmem:[%s677_s3 + $0xd8] sm:$0xff]  ;;  %v346_v49 = vld [vmem:[%s677_s3 + $0xd0] sm:$0xff]  ;;  %v329_v50 = vld [vmem:[%s677_s3 + $0x48] sm:$0xff] }
  0x20   :  { %179 = vmatpush.msra.mxu1 %v93_v57  ;;  %202 = vmatpush.msra.mxu2 %v94_v58  ;;  %v345_v51 = vld [vmem:[%s677_s3 + $0xc8] sm:$0xff]  ;;  %v328_v52 = vld [vmem:[%s677_s3 + $0x40] sm:$0xff]  ;;  %v327_v54 = vld [vmem:[%s677_s3 + $0x38] sm:$0xff] }
  0x21   :  { %225 = vmatpush.msra.mxu3 %v95_v59  ;;  %157 = vmatpush.msra.mxu0 %v88_v60  ;;  %v344_v53 = vld [vmem:[%s677_s3 + $0xc0] sm:$0xff]  ;;  %v343_v55 = vld [vmem:[%s677_s3 + $0xb8] sm:$0xff]  ;;  %v326_v56 = vld [vmem:[%s677_s3 + $0x30] sm:$0xff] }
  0x22   :  { %180 = vmatpush.msra.mxu1 %v89_v61  ;;  %203 = vmatpush.msra.mxu2 %v90_v62  ;;  %v342_v57 = vld [vmem:[%s677_s3 + $0xb0] sm:$0xff]  ;;  %v325_v58 = vld [vmem:[%s677_s3 + $0x28] sm:$0xff]  ;;  %v324_v60 = vld [vmem:[%s677_s3 + $0x20] sm:$0xff] }
  0x23   :  { %226 = vmatpush.msra.mxu3 %v91_v1  ;;  %158 = vmatpush.msra.mxu0 %v84_v2  ;;  %v341_v59 = vld [vmem:[%s677_s3 + $0xa8] sm:$0xff]  ;;  %v340_v61 = vld [vmem:[%s677_s3 + $0xa0] sm:$0xff]  ;;  %v323_v62 = vld [vmem:[%s677_s3 + $0x18] sm:$0xff] }
  0x24   :  { %181 = vmatpush.msra.mxu1 %v85_v3  ;;  %204 = vmatpush.msra.mxu2 %v86_v4  ;;  %v339_v63 = vld [vmem:[%s677_s3 + $0x98] sm:$0xff]  ;;  %v322_v1 = vld [vmem:[%s677_s3 + $0x10] sm:$0xff]  ;;  %v320_v10 = vld [vmem:[%s677_s3] sm:$0xff] }
  0x25   :  { %227 = vmatpush.msra.mxu3 %v87_v5  ;;  %159 = vmatpush.msra.mxu0 %v80_v7  ;;  %v338_v2 = vld [vmem:[%s677_s3 + $0x90] sm:$0xff] }
  0x26   :  { %182 = vmatpush.msra.mxu1 %v81_v8  ;;  %205 = vmatpush.msra.mxu2 %v82_v9  ;;  %v321_v8 = vld [vmem:[%s677_s3 + $0x8] sm:$0xff] }
  0x27   :  { %228 = vmatpush.msra.mxu3 %v83_v11  ;;  %352 = vmatpush.msrb.mxu0 %v335_v38  ;;  %v337_v9 = vld [vmem:[%s677_s3 + $0x88] sm:$0xff]  ;;  %v336_v11 = vld [vmem:[%s677_s3 + $0x80] sm:$0xff] }
  0x28   :  { %375 = vmatpush.msrb.mxu1 %v351_v39  ;;  %411 = vmatpush.msrb.mxu2 %v335_v38 }
  0x29   :  { %427 = vmatpush.msrb.mxu3 %v351_v39  ;;  %353 = vmatpush.msrb.mxu0 %v334_v40 }
  0x2a   :  { %376 = vmatpush.msrb.mxu1 %v350_v41  ;;  %412 = vmatpush.msrb.mxu2 %v334_v40 }
  0x2b   :  { %428 = vmatpush.msrb.mxu3 %v350_v41  ;;  %354 = vmatpush.msrb.mxu0 %v333_v42 }
  0x2c   :  { %377 = vmatpush.msrb.mxu1 %v349_v43  ;;  %413 = vmatpush.msrb.mxu2 %v333_v42 }
  0x2d   :  { %429 = vmatpush.msrb.mxu3 %v349_v43  ;;  %355 = vmatpush.msrb.mxu0 %v332_v44 }
  0x2e   :  { %378 = vmatpush.msrb.mxu1 %v348_v45  ;;  %414 = vmatpush.msrb.mxu2 %v332_v44 }
  0x2f   :  { %430 = vmatpush.msrb.mxu3 %v348_v45  ;;  %356 = vmatpush.msrb.mxu0 %v331_v46 }
  0x30   :  { %379 = vmatpush.msrb.mxu1 %v347_v47  ;;  %415 = vmatpush.msrb.mxu2 %v331_v46 }
  0x31   :  { %431 = vmatpush.msrb.mxu3 %v347_v47  ;;  %357 = vmatpush.msrb.mxu0 %v330_v48 }
  0x32   :  { %380 = vmatpush.msrb.mxu1 %v346_v49  ;;  %416 = vmatpush.msrb.mxu2 %v330_v48 }
  0x33   :  { %432 = vmatpush.msrb.mxu3 %v346_v49  ;;  %358 = vmatpush.msrb.mxu0 %v329_v50 }
  0x34   :  { %381 = vmatpush.msrb.mxu1 %v345_v51  ;;  %417 = vmatpush.msrb.mxu2 %v329_v50 }
  0x35   :  { %433 = vmatpush.msrb.mxu3 %v345_v51  ;;  %359 = vmatpush.msrb.mxu0 %v328_v52 }
  0x36   :  { %382 = vmatpush.msrb.mxu1 %v344_v53  ;;  %418 = vmatpush.msrb.mxu2 %v328_v52 }
  0x37   :  { %434 = vmatpush.msrb.mxu3 %v344_v53  ;;  %360 = vmatpush.msrb.mxu0 %v327_v54 }
  0x38   :  { %383 = vmatpush.msrb.mxu1 %v343_v55  ;;  %419 = vmatpush.msrb.mxu2 %v327_v54 }
  0x39   :  { %435 = vmatpush.msrb.mxu3 %v343_v55  ;;  %361 = vmatpush.msrb.mxu0 %v326_v56 }
  0x3a   :  { %384 = vmatpush.msrb.mxu1 %v342_v57  ;;  %420 = vmatpush.msrb.mxu2 %v326_v56 }
  0x3b   :  { %436 = vmatpush.msrb.mxu3 %v342_v57  ;;  %362 = vmatpush.msrb.mxu0 %v325_v58 }
  0x3c   :  { %385 = vmatpush.msrb.mxu1 %v341_v59  ;;  %421 = vmatpush.msrb.mxu2 %v325_v58 }
  0x3d   :  { %437 = vmatpush.msrb.mxu3 %v341_v59  ;;  %363 = vmatpush.msrb.mxu0 %v324_v60 }
  0x3e   :  { %386 = vmatpush.msrb.mxu1 %v340_v61  ;;  %422 = vmatpush.msrb.mxu2 %v324_v60 }
  0x3f   :  { %438 = vmatpush.msrb.mxu3 %v340_v61  ;;  %364 = vmatpush.msrb.mxu0 %v323_v62 }
  0x40   :  { %387 = vmatpush.msrb.mxu1 %v339_v63  ;;  %423 = vmatpush.msrb.mxu2 %v323_v62 }
  0x41   :  { %439 = vmatpush.msrb.mxu3 %v339_v63  ;;  %365 = vmatpush.msrb.mxu0 %v322_v1 }
  0x42   :  { %388 = vmatpush.msrb.mxu1 %v338_v2  ;;  %424 = vmatpush.msrb.mxu2 %v322_v1 }
  0x43   :  { %440 = vmatpush.msrb.mxu3 %v338_v2  ;;  %366 = vmatpush.msrb.mxu0 %v321_v8 }
  0x44   :  { %389 = vmatpush.msrb.mxu1 %v337_v9  ;;  %425 = vmatpush.msrb.mxu2 %v321_v8 }
  0x45   :  { %441 = vmatpush.msrb.mxu3 %v337_v9  ;;  %367 = vmatpush.msrb.mxu0 %v320_v10 }
  0x46   :  { %390 = vmatpush.msrb.mxu1 %v336_v11  ;;  %426 = vmatpush.msrb.mxu2 %v320_v10 }
  0x47   :  { %442 = vmatpush.msrb.mxu3 %v336_v11 }
  0x7b   :  { %v38_v13 = vpop.xlane.xlu0 %37 }
  0x7c   :  { %v48_v14 = vmul.f32 %v47_v12, %v38_v13 }
  0x7e   :  { %v50_v15 = vadd.f32 1e-05, %v48_v14 }
  0x80   :  { %450 = vrsqrt.f32 %v50_v15  ;;  %vm58_vm2 = vweird.f32 %v50_v15 }
  0x83   :  { %v40_v16 = vpop.xlane.xlu0 %39 }
  0x84   :  { %v49_v17 = vmul.f32 %v47_v12, %v40_v16 }
  0x86   :  { %v451_v18 = vpop.eup %450  ;;  %v51_v19 = vadd.f32 1e-05, %v49_v17 }
  0x87   :  { %v53_v20 = vmul.f32 %v451_v18, %v50_v15  ;;  %vm59_vm1 = vweird.f32 %v451_v18 }
  0x88   :  { %452 = vrsqrt.f32 %v51_v19  ;;  %vm60_vm3 = vmor %vm58_vm2, %vm59_vm1  ;;  %vm68_vm5 = vweird.f32 %v51_v19 }
  0x89   :  { %v54_v21 = vmul.f32 %v451_v18, %v53_v20 }
  0x8b   :  { %v55_v22 = vmul.f32 0.5, %v54_v21 }
  0x8d   :  { %v56_v23 = vsub.f32 1.5, %v55_v22 }
  0x8e   :  { %v453_v24 = vpop.eup %452 }
  0x8f   :  { %v57_v25 = vmul.f32 %v451_v18, %v56_v23  ;;  %v63_v26 = vmul.f32 %v453_v24, %v51_v19  ;;  %vm69_vm4 = vweird.f32 %v453_v24 }
  0x90   :  { %vm70_vm6 = vmor %vm68_vm5, %vm69_vm4 }
  0x91   :  { %v61_v28 = vsel %vm60_vm3, %v451_v18, %v57_v25  ;;  %v64_v29 = vmul.f32 %v453_v24, %v63_v26 }
  0x92   :  { %v72_v30 = vmul.f32 %v61_v28, %v531_v0 }
  0x93   :  { %v65_v31 = vmul.f32 0.5, %v64_v29 }
  0x94   :  { %v78_v32 = vmul.f32 %v447_v27, %v72_v30 }
  0x95   :  { %v66_v33 = vsub.f32 1.5, %v65_v31 }
  0x96   :  { %160 = vmatmul.f32.vlgmr.msra.gmra.mxu0 %v78_v32  ;;  %183 = vmatmul.f32.vlgmr.msra.gmra.mxu1 %v78_v32 }
  0x97   :  { %v67_v34 = vmul.f32 %v453_v24, %v66_v33  ;;  %206 = vmatmul.f32.vlgmr.msra.gmra.mxu2 %v78_v32  ;;  %229 = vmatmul.f32.vlgmr.msra.gmra.mxu3 %v78_v32 }
  0x99   :  { %v71_v35 = vsel %vm70_vm6, %v453_v24, %v67_v34 }
  0x9a   :  { %v73_v36 = vmul.f32 %v71_v35, %v538_v6 }
  0x9c   :  { %v79_v37 = vmul.f32 %v447_v27, %v73_v36 }
  0x9e   :  { %163 = vmatmul.f32.gmra.mxu0 %v79_v37  ;;  %186 = vmatmul.f32.gmra.mxu1 %v79_v37 }
  0x9f   :  { %209 = vmatmul.f32.gmra.mxu2 %v79_v37  ;;  %232 = vmatmul.f32.gmra.mxu3 %v79_v37 }
 0x113   :  { %v638_v3 = vpop.f32.mrf.mxu0  ;;  %v640_v4 = vpop.f32.mrf.mxu1 }
 0x114   :  { %v407_v5 = vmul.f32 -1.442695, %v638_v3  ;;  %v408_v7 = vmul.f32 -1.442695, %v640_v4 }
 0x116   :  { %454 = vpow2.f32 %v407_v5 }
 0x117   :  { %456 = vpow2.f32 %v408_v7 }
 0x11a   :  { %v207_v45 = vpop.f32.mrf.mxu2  ;;  %v230_v54 = vpop.f32.mrf.mxu3 }
 0x11b   :  { %v656_v12 = vpop.f32.mrf.mxu0  ;;  %v658_v13 = vpop.f32.mrf.mxu1 }
 0x11c   :  { %v455_v14 = vpop.eup %454  ;;  %v409_v15 = vmul.f32 -1.442695, %v656_v12  ;;  %v410_v18 = vmul.f32 -1.442695, %v658_v13 }
 0x11d   :  { %v457_v16 = vpop.eup %456  ;;  %v248_v17 = vadd.f32 1.0, %v455_v14 }
 0x11e   :  { %v249_v19 = vadd.f32 1.0, %v457_v16  ;;  %458 = vpow2.f32 %v409_v15 }
 0x11f   :  { %460 = vrcp.f32 %v248_v17  ;;  %v261_v29 = vand.u32 2147483647, %v248_v17  ;;  %v263_v30 = vand.u32 2147483648, %v248_v17  ;;  %vm257_vm9 = vweird.f32 %v248_v17 }
 0x120   :  { %462 = vrcp.f32 %v249_v19  ;;  %v278_v33 = vand.u32 2147483648, %v249_v19  ;;  %v276_v35 = vand.u32 2147483647, %v249_v19  ;;  %vm272_vm11 = vweird.f32 %v249_v19 }
 0x121   :  { %464 = vpow2.f32 %v410_v18  ;;  %v264_v38 = vor.u32 1.1754944e-38, %v263_v30  ;;  %vm262_vm12 = vcmp.eq.f32.partialorder %v261_v29, 8.507059e+37 }
 0x122   :  { %v279_v41 = vor.u32 1.1754944e-38, %v278_v33  ;;  %vm277_vm14 = vcmp.eq.f32.partialorder %v276_v35, 8.507059e+37  ;;  %v210_v8 = vpop.f32.mrf.mxu2  ;;  %v233_v14 = vpop.f32.mrf.mxu3 }
 0x124   :  { %v459_v20 = vpop.eup %458 }
 0x125   :  { %v461_v21 = vpop.eup %460  ;;  %v250_v22 = vadd.f32 1.0, %v459_v20 }
 0x126   :  { %v463_v23 = vpop.eup %462  ;;  %v253_v24 = vmul.f32 %v461_v21, %v248_v17  ;;  %vm258_vm7 = vweird.f32 %v461_v21 }
 0x127   :  { %v465_v25 = vpop.eup %464  ;;  %v268_v26 = vmul.f32 %v463_v23, %v249_v19  ;;  %466 = vrcp.f32 %v250_v22  ;;  %vm273_vm8 = vweird.f32 %v463_v23  ;;  %vm259_vm10 = vmor %vm257_vm9, %vm258_vm7  ;;  %v293_v51 = vand.u32 2147483648, %v250_v22 }
 0x128   :  { %v254_v27 = vsub.f32 1.0, %v253_v24  ;;  %v251_v28 = vadd.f32 1.0, %v465_v25  ;;  %vm274_vm13 = vmor %vm272_vm11, %vm273_vm8  ;;  %v291_v56 = vand.u32 2147483647, %v250_v22  ;;  %vm287_vm0 = vweird.f32 %v250_v22 }
 0x129   :  { %v269_v31 = vsub.f32 1.0, %v268_v26  ;;  %v294_v61 = vor.u32 1.1754944e-38, %v293_v51 }
 0x12a   :  { %v255_v32 = vmul.f32 %v461_v21, %v254_v27  ;;  %468 = vrcp.f32 %v251_v28  ;;  %v308_v60 = vand.u32 2147483648, %v251_v28  ;;  %v306_v63 = vand.u32 2147483647, %v251_v28 }
 0x12b   :  { %v270_v34 = vmul.f32 %v463_v23, %v269_v31  ;;  %vm292_vm3 = vcmp.eq.f32.partialorder %v291_v56, 8.507059e+37  ;;  %vm302_vm4 = vweird.f32 %v251_v28 }
 0x12c   :  { %v256_v36 = vadd.f32 %v461_v21, %v255_v32  ;;  %v309_v5 = vor.u32 1.1754944e-38, %v308_v60  ;;  %vm307_vm6 = vcmp.eq.f32.partialorder %v306_v63, 8.507059e+37 }
 0x12d   :  { %v467_v37 = vpop.eup %466  ;;  %v271_v39 = vadd.f32 %v463_v23, %v270_v34 }
 0x12e   :  { %v260_v40 = vsel %vm259_vm10, %v461_v21, %v256_v36  ;;  %v283_v42 = vmul.f32 %v467_v37, %v250_v22  ;;  %vm288_vm15 = vweird.f32 %v467_v37 }
 0x12f   :  { %v265_v43 = vsel %vm262_vm12, %v264_v38, %v260_v40  ;;  %v275_v44 = vsel %vm274_vm13, %v463_v23, %v271_v39  ;;  %vm289_vm1 = vmor %vm287_vm0, %vm288_vm15 }
 0x130   :  { %v469_v46 = vpop.eup %468  ;;  %v312_v47 = vmul.f32 %v265_v43, %v638_v3  ;;  %v280_v48 = vsel %vm277_vm14, %v279_v41, %v275_v44  ;;  %v284_v49 = vsub.f32 1.0, %v283_v42 }
 0x131   :  { %v313_v50 = vmul.f32 %v280_v48, %v640_v4  ;;  %v298_v52 = vmul.f32 %v469_v46, %v251_v28  ;;  %vm303_vm2 = vweird.f32 %v469_v46 }
 0x132   :  { %v316_v53 = vmul.f32 %v312_v47, %v207_v45  ;;  %v285_v55 = vmul.f32 %v467_v37, %v284_v49  ;;  %vm304_vm5 = vmor %vm302_vm4, %vm303_vm2 }
 0x133   :  { %v317_v57 = vmul.f32 %v313_v50, %v230_v54  ;;  %v299_v58 = vsub.f32 1.0, %v298_v52 }
 0x134   :  { %v286_v59 = vadd.f32 %v467_v37, %v285_v55  ;;  %368 = vmatmul.f32.vlgmr.msrb.gmra.mxu0 %v316_v53 }
 0x135   :  { %v300_v62 = vmul.f32 %v469_v46, %v299_v58  ;;  %391 = vmatmul.f32.vlgmr.msrb.gmra.mxu1 %v317_v57 }
 0x136   :  { %v290_v1 = vsel %vm289_vm1, %v467_v37, %v286_v59 }
 0x137   :  { %v295_v2 = vsel %vm292_vm3, %v294_v61, %v290_v1  ;;  %v301_v3 = vadd.f32 %v469_v46, %v300_v62 }
 0x138   :  { %v314_v4 = vmul.f32 %v295_v2, %v656_v12 }
 0x139   :  { %v305_v7 = vsel %vm304_vm5, %v469_v46, %v301_v3 }
 0x13a   :  { %v310_v9 = vsel %vm307_vm6, %v309_v5, %v305_v7  ;;  %v318_v10 = vmul.f32 %v314_v4, %v210_v8 }
 0x13b   :  { %v315_v11 = vmul.f32 %v310_v9, %v658_v13 }
 0x13c   :  { %371 = vmatmul.f32.vlgmr.msrb.gmra.mxu2 %v318_v10 }
 0x13d   :  { %v319_v15 = vmul.f32 %v315_v11, %v233_v14 }
 0x13f   :  { %394 = vmatmul.f32.vlgmr.msrb.gmra.mxu3 %v319_v15 }
 0x1b1   :  { %v369_v16 = vpop.f32.mrf.mxu0 }
 0x1b2   :  { %v392_v17 = vpop.f32.mrf.mxu1 }
 0x1b3   :  { %v393_v18 = vadd.f32 %v392_v17, %v369_v16 }
 0x1b5   :  { %v398_v19 = vadd.f32 %v393_v18, %v531_v0 }
 0x1b7   :  { %400 = vst [vmem:[%s678_s4] sm:$0xff] %v398_v19 }
 0x1bf   :  { %v372_v12 = vpop.f32.mrf.mxu2 }
 0x1c2   :  { %v395_v20 = vpop.f32.mrf.mxu3 }
 0x1c3   :  { %v396_v21 = vadd.f32 %v395_v20, %v372_v12 }
 0x1c5   :  { %v399_v22 = vadd.f32 %v396_v21, %v538_v6 }
 0x1c7   :  { %401 = vst [vmem:[%s678_s4 + $0x8] sm:$0xff] %v399_v22 }
 0x1c8   :  { %406 = vsyncpa [#allocation3], 1 }

// kernel: encode.8
= control target key start
LH: loop header
LB: loop body
LE: loop exit
PB: predicated region body
PF: predicated region fallthrough
CT: control target
= control target key end

     0   :  { %11 = vsyncpa [#allocation3], 0  ;;  %s1682_s21 = smov 0   ;;  %s1916_s0 = inlined_call_operand.vmem [shape: f32[2,8,384], index: 0, kind: input, shape index: {}]   ;;  %s1917_s1 = inlined_call_operand.vmem [shape: f32[2,8,128], index: 1, kind: input, shape index: {}]   ;;  %s1918_s2 = inlined_call_operand.vmem [shape: f32[8,32], index: 2, kind: input, shape index: {}]   ;;  %s1919_s3 = inlined_call_operand.vmem [shape: f32[8,32], index: 3, kind: input, shape index: {}]   ;;  %s1920_s4 = inlined_call_operand.vmem [shape: f32[2,1,8], index: 4, kind: input, shape index: {}]   ;;  %s1921_s5 = inlined_call_operand.hbm [shape: f32[128,128], index: 5, kind: input, shape index: {}]   ;;  %s1922_s6 = inlined_call_operand.vmem [shape: f32[2,8,128], index: 6, kind: output, shape index: {}]  }
   0x1 LB: > { %s206_s24 = sshll.u32 %s1921_s5, 4  ;;  %s1470_s25 = sadd.s32 4294967295, %s1635_s21   ;;  %s1635_s21 = sphi %s1682_s21, %s17_s21   ;;  %s207_s24 = int_to_ptr.hbm [resolvable:$true] %s206_s24 }
   0x2   : > { %p1472_p0 = scmp.ge.s32.totalorder %s1635_s21, 1  ;;  %p189_p1 = scmp.lt.s32.totalorder %s1635_s21, 3 }
   0x3   : > { %p1503_p2 = scmp.eq.s32.totalorder %s1470_s25, 0  ;;  %s1637_s26 = smov [#allocation2]  }
   0x4   : > { %p190_p3 = pnand %p1472_p0, %p189_p1  ;;  %s208_s27 = sshll.u32 %s1637_s26, 4  ;;  %s209_s27 = int_to_ptr.vmem [resolvable:$true] %s208_s27 }
   0x5   : > { %s1638_s28 = smov 128   ;;  %s1639_s29 = smov 8  }
   0x6   : > { %p1499_p4 = pneg %p190_p3  ;;  %245 = sbr.rel (%p190_p3) target bundleno = 2044 (0x7fc), region = 44 }
   0x8   : > { %p1500_p5 = pnand %p1503_p2, %p1499_p4 }
   0xa   : > { %1502 = dma.hbm_to_vmem [thread:$0]  (!%p1500_p5), %s207_s24, 2048, %s209_s27, [#allocation3], %s1638_s28, %s1638_s28, %s1639_s29  }
   0xb   : > { %1630 = dma.done.wait (%p1503_p2), [#allocation3], 2048  }
   0xc   : > { %1632 = vsyncadd (%p1503_p2), [#allocation3], 4294965248  ;;  %p282_p6 = scmp.lt.s32.totalorder %s1470_s25, 1  ;;  %s1640_s10 = smov 112   ;;  %v1728_v4 = vld [vmem:[%s1918_s2] sm:$0xff]  ;;  %vm315_vm0 = vcmask 130048  }
   0xd   : > { %s1641_s11 = smov 80   ;;  %s1642_s12 = smov 16   ;;  %v1735_v7 = vld [vmem:[%s1919_s3] sm:$0xff]  ;;  %vm333_vm1 = vcmask 261120   ;;  %vm411_vm3 = vcmask 64512   ;;  %vm1342_vm4 = vcmask 523264  }
   0xe   : > { %s1924_s25 = smov (!%p282_p6, %s1470_s25), 1  ;;  %s1643_s15 = smov 32   ;;  %vm1344_vm5 = vcmask 785408  }
   0xf   : > { %s1494_s30 = smul.u32 24, %s1924_s25  ;;  %s293_s20 = scalar_lea.vmem %s1920_s4, %s1924_s25 }
  0x10   : > { %s1644_s22 = smov 96   ;;  %v1761_v33 = vld [vmem:[%s293_s20] sm:$0x1]  ;;  %s1645_s23 = smov 48  }
  0x11   : > { %s1699_s9 = scalar_lea.vmem %s1916_s0, %s1494_s30  ;;  %vm305_vm2 = vcmp.gt.f32.partialorder %v1761_v33, 0.5  ;;  %s1646_s24 = smov 64  }
  0x12   : > { %v1702_v0 = vld [vmem:[%s1699_s9 + $0x8] sm:$0xff]  ;;  %v1705_v1 = vld [vmem:[%s1699_s9] sm:$0xff]  ;;  %s1478_s26 = sshll.u32 %s1924_s25, 3 }
  0x13   : > { %v1708_v2 = vsub.f32 0.0, %v1702_v0  ;;  %v1711_v3 = vsub.f32 0.0, %v1705_v1  ;;  %v330_v14 = vmul.f32 %v1728_v4, %v1702_v0  ;;  %v317_v19 = vmul.f32 %v1728_v4, %v1705_v1  ;;  %s290_s29 = scalar_lea.vmem %s1917_s1, %s1478_s26  ;;  %s297_s8 = scalar_lea.vmem %s1922_s6, %s1478_s26 }
  0x15   : > { %322 = vrot.lane.b32.xlu0 %v1708_v2, %s1640_s10  ;;  %308 = vrot.lane.b32.xlu1 %v1711_v3, %s1640_s10 }
  0x16   : > { %574 = vrot.lane.b32.xlu2 %v1708_v2, %s1641_s11 }
  0x1d   : > { %326 = vrot.lane.b32.xlu0 %v1702_v0, %s1642_s12  ;;  %312 = vrot.lane.b32.xlu1 %v1705_v1, %s1642_s12 }
  0x1e   : > { %577 = vrot.lane.b32.xlu2 %v1702_v0, %s1640_s10 }
  0x25   : > { %556 = vrot.lane.b32.xlu0 %v1711_v3, %s1641_s11  ;;  %559 = vrot.lane.b32.xlu1 %v1705_v1, %s1640_s10 }
  0x26   : > { %564 = vrot.lane.b32.xlu2 %v1728_v4, %s1643_s15 }
  0x70   : > { %v575_v5 = vpop.permute.xlu2 %574 }
  0x78   : > { %v578_v6 = vpop.permute.xlu2 %577 }
  0x79   : > { %v580_v8 = vsel %vm315_vm0, %v575_v5, %v578_v6 }
  0x7a   : > { %v582_v9 = vmul.f32 %v580_v8, %v1735_v7 }
  0x7c   : > { %584 = vrot.lane.b32.xlu0 %v582_v9, %s1643_s15 }
  0x80   : > { %v565_v26 = vpop.permute.xlu2 %564 }
  0x81   : > { %v567_v28 = vmul.f32 %v565_v26, %v1705_v1  ;;  %v581_v29 = vmul.f32 %v565_v26, %v1702_v0 }
  0x87   : > { %v323_v10 = vpop.permute.xlu0 %322  ;;  %v309_v11 = vpop.permute.xlu1 %308 }
  0x8f   : > { %v327_v12 = vpop.permute.xlu0 %326  ;;  %v313_v13 = vpop.permute.xlu1 %312 }
  0x90   : > { %v329_v15 = vsel %vm315_vm0, %v323_v10, %v327_v12  ;;  %v316_v16 = vsel %vm315_vm0, %v309_v11, %v313_v13 }
  0x91   : > { %v331_v17 = vmul.f32 %v329_v15, %v1735_v7  ;;  %v318_v18 = vmul.f32 %v316_v16, %v1735_v7 }
  0x93   : > { %v332_v20 = vadd.f32 %v331_v17, %v330_v14  ;;  %v319_v21 = vadd.f32 %v318_v18, %v317_v19 }
  0x95   : > { %1480 = vmatpush.xpose.msk.msra.mxu0 %vm333_vm1, %v332_v20 }
  0x97   : > { %v557_v22 = vpop.permute.xlu0 %556  ;;  %v560_v23 = vpop.permute.xlu1 %559 }
  0x98   : > { %1481 = vmatmul.msk.f32.vlgmr.msra.gmra.mxu0 %vm333_vm1, %v319_v21  ;;  %v562_v24 = vsel %vm315_vm0, %v557_v22, %v560_v23 }
  0x99   : > { %v568_v25 = vmul.f32 %v562_v24, %v1735_v7 }
  0x9b   : > { %570 = vrot.lane.b32.xlu1 %v568_v25, %s1643_s15 }
  0xee   : > { %v585_v27 = vpop.permute.xlu0 %584 }
  0xef   : > { %v587_v31 = vadd.f32 %v585_v27, %v581_v29 }
  0xf1   : > { %592 = vrot.lane.b32.xlu2 %v587_v31, %s1644_s22 }
 0x10d   : > { %v571_v30 = vpop.permute.xlu1 %570 }
 0x10e   : > { %v573_v32 = vadd.f32 %v571_v30, %v567_v28 }
 0x110   : > { %589 = vrot.lane.b32.xlu0 %v573_v32, %s1644_s22 }
 0x115   : > { %v357_v34 = vpop.f32.mrf.mxu0 }
 0x116   : > { %v360_v35 = vmul.f32 0.17677669, %v357_v34  ;;  %v1793_v34 = vld [vmem:[%s1699_s9 + $0x10] sm:$0xff] }
 0x117   : > { %551 = vmatpush.msrb.mxu0 %v1793_v34 }
 0x118   : > { %v364_v36 = vrot.slane %v360_v35, 1  ;;  %v365_v37 = vrot.slane %v360_v35, 2  ;;  %v366_v38 = vrot.slane %v360_v35, 3  ;;  %v367_v39 = vrot.slane %v360_v35, 4 }
 0x119   : > { %v378_v40 = vsel %vm305_vm2, %v360_v35, -1e+09  ;;  %v368_v41 = vrot.slane %v360_v35, 5  ;;  %v369_v43 = vrot.slane %v360_v35, 6  ;;  %v370_v45 = vrot.slane %v360_v35, 7 }
 0x11a   : > { %v379_v42 = vsel %vm305_vm2, %v364_v36, -1e+09  ;;  %v380_v44 = vsel %vm305_vm2, %v365_v37, -1e+09  ;;  %v381_v46 = vsel %vm305_vm2, %v366_v38, -1e+09 }
 0x11b   : > { %394 = vst [vmem:[#allocation1] ss:$9 sm:$0xff] %v378_v40  ;;  %v382_v47 = vsel %vm305_vm2, %v367_v39, -1e+09  ;;  %v383_v48 = vsel %vm305_vm2, %v368_v41, -1e+09 }
 0x11c   : > { %396 = vst [vmem:[#allocation1 + $0x1] ss:$9 sm:$0xff] %v379_v42  ;;  %v384_v49 = vsel %vm305_vm2, %v369_v43, -1e+09  ;;  %v385_v50 = vsel %vm305_vm2, %v370_v45, -1e+09 }
 0x11d   : > { %398 = vst [vmem:[#allocation1 + $0x2] ss:$9 sm:$0xff] %v380_v44 }
 0x11e   : > { %400 = vst [vmem:[#allocation1 + $0x3] ss:$9 sm:$0xff] %v381_v46 }
 0x11f   : > { %402 = vst [vmem:[#allocation1 + $0x4] ss:$9 sm:$0xff] %v382_v47 }
 0x120   : > { %404 = vst [vmem:[#allocation1 + $0x5] ss:$9 sm:$0xff] %v383_v48 }
 0x121   : > { %406 = vst [vmem:[#allocation1 + $0x6] ss:$9 sm:$0xff] %v384_v49 }
 0x122   : > { %408 = vst [vmem:[#allocation1 + $0x7] ss:$9 sm:$0xff] %v385_v50 }
 0x129   : > { %v409_v51 = vld [vmem:[#allocation1] sm:$0xff] }
 0x12a   : > { %v412_v52 = vsel %vm411_vm3, %v409_v51, -inf }
 0x12b   : > { %413 = vmax.xlane.f32.xlu1 %v412_v52 }
 0x144   : > { %835 = vrot.lane.b32.xlu1 %v1702_v0, %s1641_s11 }
 0x14b   : > { %v593_v53 = vpop.permute.xlu2 %592 }
 0x14c   : > { %1483 = vmatpush.xpose.msk.msra.mxu2 %vm333_vm1, %v593_v53  ;;  %822 = vrot.lane.b32.xlu1 %v1728_v4, %s1646_s24 }
 0x182   : > { %v590_v54 = vpop.permute.xlu0 %589 }
 0x183   : > { %1484 = vmatmul.msk.f32.vlgmr.msra.gmra.mxu2 %vm333_vm1, %v590_v54 }
 0x19e   : > { %v414_v55 = vpop.xlane.xlu1 %413 }
 0x19f   : > { %v416_v56 = vperm.slane %v414_v55, 0  ;;  %v417_v57 = vperm.slane %v414_v55, 1  ;;  %v418_v58 = vperm.slane %v414_v55, 2  ;;  %v419_v59 = vperm.slane %v414_v55, 3 }
 0x1a0   : > { %v420_v60 = vperm.slane %v414_v55, 4  ;;  %v421_v61 = vperm.slane %v414_v55, 5  ;;  %v422_v62 = vperm.slane %v414_v55, 6  ;;  %v423_v63 = vperm.slane %v414_v55, 7 }
 0x1a1   : > { %v432_v5 = vsub.f32 %v378_v40, %v416_v56  ;;  %v433_v6 = vsub.f32 %v379_v42, %v417_v57  ;;  %v434_v8 = vsub.f32 %v380_v44, %v418_v58  ;;  %v435_v9 = vsub.f32 %v381_v46, %v419_v59 }
 0x1a2   : > { %v436_v10 = vsub.f32 %v382_v47, %v420_v60  ;;  %v437_v11 = vsub.f32 %v383_v48, %v421_v61  ;;  %v438_v12 = vsub.f32 %v384_v49, %v422_v62  ;;  %v439_v16 = vsub.f32 %v385_v50, %v423_v63 }
 0x1a3   : > { %v440_v13 = vmul.f32 1.442695, %v432_v5  ;;  %v442_v14 = vmul.f32 1.442695, %v433_v6  ;;  %v444_v15 = vmul.f32 1.442695, %v434_v8 }
 0x1a4   : > { %v446_v17 = vmul.f32 1.442695, %v435_v9  ;;  %v448_v18 = vmul.f32 1.442695, %v436_v10  ;;  %v450_v19 = vmul.f32 1.442695, %v437_v11 }
 0x1a5   : > { %1523 = vpow2.f32 %v440_v13  ;;  %v452_v20 = vmul.f32 1.442695, %v438_v12  ;;  %v454_v21 = vmul.f32 1.442695, %v439_v16 }
 0x1a6   : > { %1525 = vpow2.f32 %v442_v14 }
 0x1a7   : > { %1527 = vpow2.f32 %v444_v15 }
 0x1a8   : > { %1529 = vpow2.f32 %v446_v17 }
 0x1a9   : > { %1531 = vpow2.f32 %v448_v18 }
 0x1aa   : > { %1533 = vpow2.f32 %v450_v19 }
 0x1ab   : > { %v1524_v22 = vpop.eup %1523  ;;  %1535 = vpow2.f32 %v452_v20 }
 0x1ac   : > { %v1526_v23 = vpop.eup %1525  ;;  %1537 = vpow2.f32 %v454_v21  ;;  %464 = vst [vmem:[#allocation1] ss:$9 sm:$0xff] %v1524_v22 }
 0x1ad   : > { %v1528_v24 = vpop.eup %1527  ;;  %466 = vst [vmem:[#allocation1 + $0x1] ss:$9 sm:$0xff] %v1526_v23 }
 0x1ae   : > { %v1530_v25 = vpop.eup %1529  ;;  %468 = vst [vmem:[#allocation1 + $0x2] ss:$9 sm:$0xff] %v1528_v24 }
 0x1af   : > { %v1532_v26 = vpop.eup %1531  ;;  %470 = vst [vmem:[#allocation1 + $0x3] ss:$9 sm:$0xff] %v1530_v25 }
 0x1b0   : > { %v1534_v27 = vpop.eup %1533  ;;  %472 = vst [vmem:[#allocation1 + $0x4] ss:$9 sm:$0xff] %v1532_v26 }
 0x1b1   : > { %v1536_v28 = vpop.eup %1535  ;;  %474 = vst [vmem:[#allocation1 + $0x5] ss:$9 sm:$0xff] %v1534_v27 }
 0x1b2   : > { %v1538_v29 = vpop.eup %1537  ;;  %476 = vst [vmem:[#allocation1 + $0x6] ss:$9 sm:$0xff] %v1536_v28 }
 0x1b3   : > { %478 = vst [vmem:[#allocation1 + $0x7] ss:$9 sm:$0xff] %v1538_v29 }
 0x1b6   : > { %v836_v15 = vpop.permute.xlu1 %835 }
 0x1ba   : > { %v479_v30 = vld [vmem:[#allocation1] sm:$0xff] }
 0x1bb   : > { %v481_v31 = vsel %vm411_vm3, %v479_v30, 0.0 }
 0x1bc   : > { %482 = vadd.xlane.f32.xlu2 %v481_v31 }
 0x1d4   : > { %832 = vrot.lane.b32.xlu2 %v1708_v2, %s1645_s23 }
 0x1dc   : > { %818 = vrot.lane.b32.xlu2 %v1705_v1, %s1641_s11 }
 0x206   : > { %v615_v51 = vpop.f32.mrf.mxu2 }
 0x207   : > { %v618_v53 = vmul.f32 0.17677669, %v615_v51 }
 0x209   : > { %v620_v54 = vrot.slane %v618_v53, 1  ;;  %v621_v55 = vrot.slane %v618_v53, 2  ;;  %v622_v56 = vrot.slane %v618_v53, 3  ;;  %v623_v57 = vrot.slane %v618_v53, 4 }
 0x20a   : > { %v624_v58 = vrot.slane %v618_v53, 5  ;;  %v625_v61 = vrot.slane %v618_v53, 6  ;;  %v634_v62 = vsel %vm305_vm2, %v618_v53, -1e+09  ;;  %v626_v5 = vrot.slane %v618_v53, 7 }
 0x20b   : > { %v635_v59 = vsel %vm305_vm2, %v620_v54, -1e+09  ;;  %v636_v63 = vsel %vm305_vm2, %v621_v55, -1e+09  ;;  %v637_v6 = vsel %vm305_vm2, %v622_v56, -1e+09 }
 0x20c   : > { %v638_v8 = vsel %vm305_vm2, %v623_v57, -1e+09  ;;  %v639_v9 = vsel %vm305_vm2, %v624_v58, -1e+09  ;;  %v640_v10 = vsel %vm305_vm2, %v625_v61, -1e+09 }
 0x20d   : > { %v641_v11 = vsel %vm305_vm2, %v626_v5, -1e+09 }
 0x22f   : > { %v483_v32 = vpop.xlane.xlu2 %482 }
 0x230   : > { %1539 = vrcp.f32 %v483_v32 }
 0x236   : > { %v1540_v35 = vpop.eup %1539 }
 0x237   : > { %v486_v36 = vperm.slane %v1540_v35, 0  ;;  %v487_v37 = vperm.slane %v1540_v35, 1  ;;  %v488_v38 = vperm.slane %v1540_v35, 2  ;;  %v489_v39 = vperm.slane %v1540_v35, 3  ;;  %v833_v14 = vpop.permute.xlu2 %832 }
 0x238   : > { %v490_v40 = vperm.slane %v1540_v35, 4  ;;  %v491_v41 = vperm.slane %v1540_v35, 5  ;;  %v492_v42 = vperm.slane %v1540_v35, 6  ;;  %v493_v46 = vperm.slane %v1540_v35, 7 }
 0x239   : > { %v502_v43 = vmul.f32 %v1524_v22, %v486_v36  ;;  %v503_v44 = vmul.f32 %v1526_v23, %v487_v37  ;;  %v504_v45 = vmul.f32 %v1528_v24, %v488_v38  ;;  %v505_v47 = vmul.f32 %v1530_v25, %v489_v39 }
 0x23a   : > { %v506_v48 = vmul.f32 %v1532_v26, %v490_v40  ;;  %v507_v49 = vmul.f32 %v1534_v27, %v491_v41  ;;  %v508_v50 = vmul.f32 %v1536_v28, %v492_v42  ;;  %v509_v52 = vmul.f32 %v1538_v29, %v493_v46 }
 0x23b   : > { %518 = vst [vmem:[#allocation1] ss:$9 sm:$0xff] %v502_v43  ;;  %v838_v16 = vsel %vm315_vm0, %v833_v14, %v836_v15 }
 0x23c   : > { %520 = vst [vmem:[#allocation1 + $0x1] ss:$9 sm:$0xff] %v503_v44  ;;  %v840_v17 = vmul.f32 %v838_v16, %v1735_v7 }
 0x23d   : > { %522 = vst [vmem:[#allocation1 + $0x2] ss:$9 sm:$0xff] %v504_v45 }
 0x23e   : > { %524 = vst [vmem:[#allocation1 + $0x3] ss:$9 sm:$0xff] %v505_v47 }
 0x23f   : > { %526 = vst [vmem:[#allocation1 + $0x4] ss:$9 sm:$0xff] %v506_v48 }
 0x240   : > { %528 = vst [vmem:[#allocation1 + $0x5] ss:$9 sm:$0xff] %v507_v49 }
 0x241   : > { %530 = vst [vmem:[#allocation1 + $0x6] ss:$9 sm:$0xff] %v508_v50  ;;  %v819_v50 = vpop.permute.xlu2 %818 }
 0x242   : > { %532 = vst [vmem:[#allocation1 + $0x7] ss:$9 sm:$0xff] %v509_v52 }
 0x249   : > { %v533_v60 = vld [vmem:[#allocation1] sm:$0xff] }
 0x24a   : > { %650 = vst [vmem:[#allocation1] ss:$9 sm:$0xff] %v634_v62  ;;  %1482 = vmatmul.msk.f32.vlgmr.msrb.gmra.mxu0 %vm411_vm3, %v533_v60 }
 0x24b   : > { %652 = vst [vmem:[#allocation1 + $0x1] ss:$9 sm:$0xff] %v635_v59 }
 0x24c   : > { %654 = vst [vmem:[#allocation1 + $0x2] ss:$9 sm:$0xff] %v636_v63 }
 0x24d   : > { %656 = vst [vmem:[#allocation1 + $0x3] ss:$9 sm:$0xff] %v637_v6 }
 0x24e   : > { %658 = vst [vmem:[#allocation1 + $0x4] ss:$9 sm:$0xff] %v638_v8 }
 0x24f   : > { %660 = vst [vmem:[#allocation1 + $0x5] ss:$9 sm:$0xff] %v639_v9 }
 0x250   : > { %662 = vst [vmem:[#allocation1 + $0x6] ss:$9 sm:$0xff] %v640_v10 }
 0x251   : > { %664 = vst [vmem:[#allocation1 + $0x7] ss:$9 sm:$0xff] %v641_v11 }
 0x258   : > { %v665_v12 = vld [vmem:[#allocation1] sm:$0xff] }
 0x259   : > { %v667_v13 = vsel %vm411_vm3, %v665_v12, -inf }
 0x25a   : > { %668 = vmax.xlane.f32.xlu0 %v667_v13 }
 0x26e   : > { %815 = vrot.lane.b32.xlu0 %v1711_v3, %s1645_s23 }
 0x276   : > { %842 = vrot.lane.b32.xlu0 %v840_v17, %s1646_s24 }
 0x27e   : > { %790 = vrot.lane.b32.xlu0 %v1793_v34, %s1644_s22 }
 0x2cd   : > { %v669_v18 = vpop.xlane.xlu0 %668 }
 0x2ce   : > { %v671_v19 = vperm.slane %v669_v18, 0  ;;  %v672_v20 = vperm.slane %v669_v18, 1  ;;  %v673_v21 = vperm.slane %v669_v18, 2  ;;  %v674_v22 = vperm.slane %v669_v18, 3 }
 0x2cf   : > { %v675_v23 = vperm.slane %v669_v18, 4  ;;  %v676_v24 = vperm.slane %v669_v18, 5  ;;  %v677_v25 = vperm.slane %v669_v18, 6  ;;  %v678_v26 = vperm.slane %v669_v18, 7 }
 0x2d0   : > { %v687_v27 = vsub.f32 %v634_v62, %v671_v19  ;;  %v688_v28 = vsub.f32 %v635_v59, %v672_v20  ;;  %v689_v29 = vsub.f32 %v636_v63, %v673_v21  ;;  %v690_v30 = vsub.f32 %v637_v6, %v674_v22  ;;  %v823_v59 = vpop.permute.xlu1 %822 }
 0x2d1   : > { %v691_v31 = vsub.f32 %v638_v8, %v675_v23  ;;  %v692_v32 = vsub.f32 %v639_v9, %v676_v24  ;;  %v693_v35 = vsub.f32 %v640_v10, %v677_v25  ;;  %v694_v39 = vsub.f32 %v641_v11, %v678_v26 }
 0x2d2   : > { %v695_v36 = vmul.f32 1.442695, %v687_v27  ;;  %v697_v37 = vmul.f32 1.442695, %v688_v28  ;;  %v699_v38 = vmul.f32 1.442695, %v689_v29  ;;  %v839_v60 = vmul.f32 %v823_v59, %v1702_v0 }
 0x2d3   : > { %v701_v40 = vmul.f32 1.442695, %v690_v30  ;;  %v703_v41 = vmul.f32 1.442695, %v691_v31  ;;  %v705_v42 = vmul.f32 1.442695, %v692_v32  ;;  %v825_v63 = vmul.f32 %v823_v59, %v1705_v1 }
 0x2d4   : > { %1541 = vpow2.f32 %v695_v36  ;;  %v707_v43 = vmul.f32 1.442695, %v693_v35  ;;  %v709_v44 = vmul.f32 1.442695, %v694_v39 }
 0x2d5   : > { %1543 = vpow2.f32 %v697_v37 }
 0x2d6   : > { %1545 = vpow2.f32 %v699_v38 }
 0x2d7   : > { %1547 = vpow2.f32 %v701_v40 }
 0x2d8   : > { %1549 = vpow2.f32 %v703_v41 }
 0x2d9   : > { %1551 = vpow2.f32 %v705_v42 }
 0x2da   : > { %v1542_v45 = vpop.eup %1541  ;;  %1553 = vpow2.f32 %v707_v43 }
 0x2db   : > { %v1544_v46 = vpop.eup %1543  ;;  %1555 = vpow2.f32 %v709_v44  ;;  %719 = vst [vmem:[#allocation1] ss:$9 sm:$0xff] %v1542_v45 }
 0x2dc   : > { %v1546_v47 = vpop.eup %1545  ;;  %721 = vst [vmem:[#allocation1 + $0x1] ss:$9 sm:$0xff] %v1544_v46 }
 0x2dd   : > { %v1548_v48 = vpop.eup %1547  ;;  %723 = vst [vmem:[#allocation1 + $0x2] ss:$9 sm:$0xff] %v1546_v47 }
 0x2de   : > { %v1550_v49 = vpop.eup %1549  ;;  %725 = vst [vmem:[#allocation1 + $0x3] ss:$9 sm:$0xff] %v1548_v48 }
 0x2df   : > { %v1552_v51 = vpop.eup %1551  ;;  %727 = vst [vmem:[#allocation1 + $0x4] ss:$9 sm:$0xff] %v1550_v49 }
 0x2e0   : > { %v1554_v52 = vpop.eup %1553  ;;  %729 = vst [vmem:[#allocation1 + $0x5] ss:$9 sm:$0xff] %v1552_v51  ;;  %v816_v53 = vpop.permute.xlu0 %815 }
 0x2e1   : > { %v1556_v54 = vpop.eup %1555  ;;  %731 = vst [vmem:[#allocation1 + $0x6] ss:$9 sm:$0xff] %v1554_v52  ;;  %v821_v55 = vsel %vm315_vm0, %v816_v53, %v819_v50 }
 0x2e2   : > { %733 = vst [vmem:[#allocation1 + $0x7] ss:$9 sm:$0xff] %v1556_v54  ;;  %v826_v56 = vmul.f32 %v821_v55, %v1735_v7 }
 0x2e4   : > { %828 = vrot.lane.b32.xlu2 %v826_v56, %s1646_s24 }
 0x2e8   : > { %v843_v61 = vpop.permute.xlu0 %842 }
 0x2e9   : > { %v734_v57 = vld [vmem:[#allocation1] sm:$0xff]  ;;  %v845_v62 = vadd.f32 %v843_v61, %v839_v60 }
 0x2ea   : > { %v736_v58 = vsel %vm411_vm3, %v734_v57, 0.0 }
 0x2eb   : > { %737 = vadd.xlane.f32.xlu1 %v736_v58 }
 0x2ec   : > { %850 = vrot.lane.b32.xlu2 %v845_v62, %s1646_s24 }
 0x2f0   : > { %v791_v8 = vpop.permute.xlu0 %790 }
 0x2f1   : > { %810 = vmatpush.msra.mxu3 %v791_v8 }
 0x2f4   : > { %1089 = vrot.lane.b32.xlu2 %v1708_v2, %s1642_s12 }
 0x2fc   : > { %1072 = vrot.lane.b32.xlu2 %v1711_v3, %s1642_s12 }
 0x304   : > { %1079 = vrot.lane.b32.xlu2 %v1728_v4, %s1644_s22 }
 0x33e   : > { %v829_v5 = vpop.permute.xlu2 %828 }
 0x33f   : > { %v831_v6 = vadd.f32 %v829_v5, %v825_v63 }
 0x341   : > { %847 = vrot.lane.b32.xlu0 %v831_v6, %s1646_s24 }
 0x346   : > { %v851_v25 = vpop.permute.xlu2 %850 }
 0x347   : > { %1486 = vmatpush.xpose.msk.msrb.mxu3 %vm333_vm1, %v851_v25 }
 0x349   : > { %1092 = vrot.lane.b32.xlu0 %v1702_v0, %s1645_s23 }
 0x34e   : > { %v1090_v27 = vpop.permute.xlu2 %1089 }
 0x351   : > { %1075 = vrot.lane.b32.xlu0 %v1705_v1, %s1645_s23 }
 0x356   : > { %v1073_v31 = vpop.permute.xlu2 %1072 }
 0x35e   : > { %v738_v2 = vpop.xlane.xlu1 %737  ;;  %v1080_v37 = vpop.permute.xlu2 %1079 }
 0x35f   : > { %1557 = vrcp.f32 %v738_v2  ;;  %v1096_v39 = vmul.f32 %v1080_v37, %v1702_v0  ;;  %v1082_v44 = vmul.f32 %v1080_v37, %v1705_v1 }
 0x365   : > { %v1558_v3 = vpop.eup %1557 }
 0x366   : > { %v741_v9 = vperm.slane %v1558_v3, 0  ;;  %v742_v10 = vperm.slane %v1558_v3, 1  ;;  %v743_v4 = vperm.slane %v1558_v3, 2  ;;  %v744_v11 = vperm.slane %v1558_v3, 3 }
 0x367   : > { %v745_v12 = vperm.slane %v1558_v3, 4  ;;  %v746_v13 = vperm.slane %v1558_v3, 5  ;;  %v747_v14 = vperm.slane %v1558_v3, 6  ;;  %v748_v18 = vperm.slane %v1558_v3, 7 }
 0x368   : > { %v757_v15 = vmul.f32 %v1542_v45, %v741_v9  ;;  %v758_v16 = vmul.f32 %v1544_v46, %v742_v10  ;;  %v759_v17 = vmul.f32 %v1546_v47, %v743_v4  ;;  %v760_v19 = vmul.f32 %v1548_v48, %v744_v11 }
 0x369   : > { %v761_v20 = vmul.f32 %v1550_v49, %v745_v12  ;;  %v762_v21 = vmul.f32 %v1552_v51, %v746_v13  ;;  %v763_v22 = vmul.f32 %v1554_v52, %v747_v14  ;;  %v764_v23 = vmul.f32 %v1556_v54, %v748_v18 }
 0x36a   : > { %773 = vst [vmem:[#allocation1] ss:$9 sm:$0xff] %v757_v15 }
 0x36b   : > { %775 = vst [vmem:[#allocation1 + $0x1] ss:$9 sm:$0xff] %v758_v16 }
 0x36c   : > { %777 = vst [vmem:[#allocation1 + $0x2] ss:$9 sm:$0xff] %v759_v17 }
 0x36d   : > { %779 = vst [vmem:[#allocation1 + $0x3] ss:$9 sm:$0xff] %v760_v19 }
 0x36e   : > { %781 = vst [vmem:[#allocation1 + $0x4] ss:$9 sm:$0xff] %v761_v20 }
 0x36f   : > { %783 = vst [vmem:[#allocation1 + $0x5] ss:$9 sm:$0xff] %v762_v21 }
 0x370   : > { %785 = vst [vmem:[#allocation1 + $0x6] ss:$9 sm:$0xff] %v763_v22 }
 0x371   : > { %787 = vst [vmem:[#allocation1 + $0x7] ss:$9 sm:$0xff] %v764_v23 }
 0x378   : > { %v788_v24 = vld [vmem:[#allocation1] sm:$0xff] }
 0x379   : > { %1485 = vmatmul.msk.f32.vlgmr.msra.gmra.mxu3 %vm411_vm3, %v788_v24 }
 0x3b3   : > { %v848_v26 = vpop.permute.xlu0 %847 }
 0x3b4   : > { %1487 = vmatmul.msk.f32.vlgmr.msrb.gmra.mxu3 %vm333_vm1, %v848_v26 }
 0x3bb   : > { %v1093_v28 = vpop.permute.xlu0 %1092 }
 0x3bc   : > { %v1095_v29 = vsel %vm315_vm0, %v1090_v27, %v1093_v28 }
 0x3bd   : > { %v1097_v30 = vmul.f32 %v1095_v29, %v1735_v7 }
 0x3bf   : > { %1099 = vrot.lane.b32.xlu0 %v1097_v30, %s1644_s22 }
 0x3c3   : > { %v1076_v32 = vpop.permute.xlu0 %1075 }
 0x3c4   : > { %v1078_v35 = vsel %vm315_vm0, %v1073_v31, %v1076_v32 }
 0x3c5   : > { %v1083_v36 = vmul.f32 %v1078_v35, %v1735_v7 }
 0x3c7   : > { %1085 = vrot.lane.b32.xlu2 %v1083_v36, %s1644_s22 }
 0x3fc   : > { %v1848_v38 = vpop.f32.mrf.mxu3 }
 0x421   : > { %v1086_v48 = vpop.permute.xlu2 %1085 }
 0x422   : > { %v1088_v51 = vadd.f32 %v1086_v48, %v1082_v44 }
 0x424   : > { %1104 = vrot.lane.b32.xlu0 %v1088_v51, %s1643_s15 }
 0x431   : > { %v1100_v40 = vpop.permute.xlu0 %1099 }
 0x432   : > { %v1102_v41 = vadd.f32 %v1100_v40, %v1096_v39 }
 0x434   : > { %1107 = vrot.lane.b32.xlu1 %v1102_v41, %s1643_s15 }
 0x437   : > { %v873_v42 = vpop.f32.mrf.mxu3 }
 0x438   : > { %v876_v43 = vmul.f32 0.17677669, %v873_v42  ;;  %v1876_v42 = vpop.f32.mrf.mxu0 }
 0x43a   : > { %v878_v45 = vrot.slane %v876_v43, 1  ;;  %v879_v46 = vrot.slane %v876_v43, 2  ;;  %v880_v47 = vrot.slane %v876_v43, 3  ;;  %v881_v7 = vrot.slane %v876_v43, 4 }
 0x43b   : > { %v892_v49 = vsel %vm305_vm2, %v876_v43, -1e+09  ;;  %v882_v50 = vrot.slane %v876_v43, 5  ;;  %v883_v52 = vrot.slane %v876_v43, 6  ;;  %v884_v54 = vrot.slane %v876_v43, 7 }
 0x43c   : > { %v893_v0 = vsel %vm305_vm2, %v878_v45, -1e+09  ;;  %v894_v53 = vsel %vm305_vm2, %v879_v46, -1e+09  ;;  %v895_v1 = vsel %vm305_vm2, %v880_v47, -1e+09 }
 0x43d   : > { %908 = vst [vmem:[#allocation1] ss:$9 sm:$0xff] %v892_v49  ;;  %v896_v55 = vsel %vm305_vm2, %v881_v7, -1e+09  ;;  %v897_v56 = vsel %vm305_vm2, %v882_v50, -1e+09 }
 0x43e   : > { %910 = vst [vmem:[#allocation1 + $0x1] ss:$9 sm:$0xff] %v893_v0  ;;  %v898_v57 = vsel %vm305_vm2, %v883_v52, -1e+09  ;;  %v899_v58 = vsel %vm305_vm2, %v884_v54, -1e+09 }
 0x43f   : > { %912 = vst [vmem:[#allocation1 + $0x2] ss:$9 sm:$0xff] %v894_v53 }
 0x440   : > { %914 = vst [vmem:[#allocation1 + $0x3] ss:$9 sm:$0xff] %v895_v1 }
 0x441   : > { %916 = vst [vmem:[#allocation1 + $0x4] ss:$9 sm:$0xff] %v896_v55 }
 0x442   : > { %918 = vst [vmem:[#allocation1 + $0x5] ss:$9 sm:$0xff] %v897_v56 }
 0x443   : > { %920 = vst [vmem:[#allocation1 + $0x6] ss:$9 sm:$0xff] %v898_v57 }
 0x444   : > { %922 = vst [vmem:[#allocation1 + $0x7] ss:$9 sm:$0xff] %v899_v58 }
 0x44b   : > { %v923_v59 = vld [vmem:[#allocation1] sm:$0xff] }
 0x44c   : > { %v925_v60 = vsel %vm411_vm3, %v923_v59, -inf }
 0x44d   : > { %926 = vmax.xlane.f32.xlu2 %v925_v60 }
 0x496   : > { %v1105_v62 = vpop.permute.xlu0 %1104 }
 0x4a6   : > { %v1108_v61 = vpop.permute.xlu1 %1107 }
 0x4a7   : > { %1489 = vmatpush.xpose.msk.msra.mxu0 %vm333_vm1, %v1108_v61 }
 0x4aa   : > { %1490 = vmatmul.msk.f32.vlgmr.msra.gmra.mxu0 %vm333_vm1, %v1105_v62 }
 0x4c0   : > { %v927_v63 = vpop.xlane.xlu2 %926 }
 0x4c1   : > { %v929_v5 = vperm.slane %v927_v63, 0  ;;  %v930_v6 = vperm.slane %v927_v63, 1  ;;  %v931_v8 = vperm.slane %v927_v63, 2  ;;  %v932_v2 = vperm.slane %v927_v63, 3 }
 0x4c2   : > { %v933_v3 = vperm.slane %v927_v63, 4  ;;  %v934_v9 = vperm.slane %v927_v63, 5  ;;  %v935_v10 = vperm.slane %v927_v63, 6  ;;  %v936_v4 = vperm.slane %v927_v63, 7 }
 0x4c3   : > { %v945_v11 = vsub.f32 %v892_v49, %v929_v5  ;;  %v946_v12 = vsub.f32 %v893_v0, %v930_v6  ;;  %v947_v13 = vsub.f32 %v894_v53, %v931_v8  ;;  %v948_v14 = vsub.f32 %v895_v1, %v932_v2 }
 0x4c4   : > { %v949_v15 = vsub.f32 %v896_v55, %v933_v3  ;;  %v950_v16 = vsub.f32 %v897_v56, %v934_v9  ;;  %v951_v17 = vsub.f32 %v898_v57, %v935_v10  ;;  %v952_v21 = vsub.f32 %v899_v58, %v936_v4 }
 0x4c5   : > { %v953_v18 = vmul.f32 1.442695, %v945_v11  ;;  %v955_v19 = vmul.f32 1.442695, %v946_v12  ;;  %v957_v20 = vmul.f32 1.442695, %v947_v13 }
 0x4c6   : > { %v959_v22 = vmul.f32 1.442695, %v948_v14  ;;  %v961_v23 = vmul.f32 1.442695, %v949_v15  ;;  %v963_v24 = vmul.f32 1.442695, %v950_v16 }
 0x4c7   : > { %1559 = vpow2.f32 %v953_v18  ;;  %v965_v25 = vmul.f32 1.442695, %v951_v17  ;;  %v967_v26 = vmul.f32 1.442695, %v952_v21 }
 0x4c8   : > { %1561 = vpow2.f32 %v955_v19 }
 0x4c9   : > { %1563 = vpow2.f32 %v957_v20 }
 0x4ca   : > { %1565 = vpow2.f32 %v959_v22 }
 0x4cb   : > { %1567 = vpow2.f32 %v961_v23 }
 0x4cc   : > { %1569 = vpow2.f32 %v963_v24 }
 0x4cd   : > { %v1560_v27 = vpop.eup %1559  ;;  %1571 = vpow2.f32 %v965_v25 }
 0x4ce   : > { %v1562_v28 = vpop.eup %1561  ;;  %1573 = vpow2.f32 %v967_v26  ;;  %977 = vst [vmem:[#allocation1] ss:$9 sm:$0xff] %v1560_v27 }
 0x4cf   : > { %v1564_v29 = vpop.eup %1563  ;;  %979 = vst [vmem:[#allocation1 + $0x1] ss:$9 sm:$0xff] %v1562_v28 }
 0x4d0   : > { %v1566_v30 = vpop.eup %1565  ;;  %981 = vst [vmem:[#allocation1 + $0x2] ss:$9 sm:$0xff] %v1564_v29 }
 0x4d1   : > { %v1568_v31 = vpop.eup %1567  ;;  %983 = vst [vmem:[#allocation1 + $0x3] ss:$9 sm:$0xff] %v1566_v30 }
 0x4d2   : > { %v1570_v32 = vpop.eup %1569  ;;  %985 = vst [vmem:[#allocation1 + $0x4] ss:$9 sm:$0xff] %v1568_v31 }
 0x4d3   : > { %v1572_v35 = vpop.eup %1571  ;;  %987 = vst [vmem:[#allocation1 + $0x5] ss:$9 sm:$0xff] %v1570_v32 }
 0x4d4   : > { %v1574_v36 = vpop.eup %1573  ;;  %989 = vst [vmem:[#allocation1 + $0x6] ss:$9 sm:$0xff] %v1572_v35 }
 0x4d5   : > { %991 = vst [vmem:[#allocation1 + $0x7] ss:$9 sm:$0xff] %v1574_v36 }
 0x4dc   : > { %v992_v37 = vld [vmem:[#allocation1] sm:$0xff] }
 0x4dd   : > { %v994_v39 = vsel %vm411_vm3, %v992_v37, 0.0 }
 0x4de   : > { %995 = vadd.xlane.f32.xlu0 %v994_v39 }
 0x4f2   : > { %1047 = vrot.lane.b32.xlu0 %v1793_v34, %s1646_s24 }
 0x527   : > { %v1130_v56 = vpop.f32.mrf.mxu0 }
 0x528   : > { %v1133_v57 = vmul.f32 0.17677669, %v1130_v56 }
 0x52a   : > { %v1135_v59 = vrot.slane %v1133_v57, 1  ;;  %v1136_v60 = vrot.slane %v1133_v57, 2  ;;  %v1137_v61 = vrot.slane %v1133_v57, 3  ;;  %v1138_v63 = vrot.slane %v1133_v57, 4 }
 0x52b   : > { %v1149_v5 = vsel %vm305_vm2, %v1133_v57, -1e+09  ;;  %v1139_v6 = vrot.slane %v1133_v57, 5  ;;  %v1140_v2 = vrot.slane %v1133_v57, 6  ;;  %v1141_v9 = vrot.slane %v1133_v57, 7 }
 0x52c   : > { %v1150_v8 = vsel %vm305_vm2, %v1135_v59, -1e+09  ;;  %v1151_v3 = vsel %vm305_vm2, %v1136_v60, -1e+09  ;;  %v1152_v10 = vsel %vm305_vm2, %v1137_v61, -1e+09 }
 0x52d   : > { %v1153_v4 = vsel %vm305_vm2, %v1138_v63, -1e+09  ;;  %v1154_v11 = vsel %vm305_vm2, %v1139_v6, -1e+09  ;;  %v1155_v12 = vsel %vm305_vm2, %v1140_v2, -1e+09 }
 0x52e   : > { %v1156_v13 = vsel %vm305_vm2, %v1141_v9, -1e+09 }
 0x551   : > { %v996_v40 = vpop.xlane.xlu0 %995 }
 0x552   : > { %1575 = vrcp.f32 %v996_v40 }
 0x558   : > { %v1576_v41 = vpop.eup %1575 }
 0x559   : > { %v999_v43 = vperm.slane %v1576_v41, 0  ;;  %v1000_v44 = vperm.slane %v1576_v41, 1  ;;  %v1001_v45 = vperm.slane %v1576_v41, 2  ;;  %v1002_v46 = vperm.slane %v1576_v41, 3 }
 0x55a   : > { %v1003_v47 = vperm.slane %v1576_v41, 4  ;;  %v1004_v48 = vperm.slane %v1576_v41, 5  ;;  %v1005_v7 = vperm.slane %v1576_v41, 6  ;;  %v1006_v51 = vperm.slane %v1576_v41, 7 }
 0x55b   : > { %v1015_v49 = vmul.f32 %v1560_v27, %v999_v43  ;;  %v1016_v50 = vmul.f32 %v1562_v28, %v1000_v44  ;;  %v1017_v0 = vmul.f32 %v1564_v29, %v1001_v45  ;;  %v1018_v52 = vmul.f32 %v1566_v30, %v1002_v46 }
 0x55c   : > { %v1019_v53 = vmul.f32 %v1568_v31, %v1003_v47  ;;  %v1020_v54 = vmul.f32 %v1570_v32, %v1004_v48  ;;  %v1021_v1 = vmul.f32 %v1572_v35, %v1005_v7  ;;  %v1022_v55 = vmul.f32 %v1574_v36, %v1006_v51 }
 0x55d   : > { %1031 = vst [vmem:[#allocation1] ss:$9 sm:$0xff] %v1015_v49 }
 0x55e   : > { %1033 = vst [vmem:[#allocation1 + $0x1] ss:$9 sm:$0xff] %v1016_v50 }
 0x55f   : > { %1035 = vst [vmem:[#allocation1 + $0x2] ss:$9 sm:$0xff] %v1017_v0 }
 0x560   : > { %1037 = vst [vmem:[#allocation1 + $0x3] ss:$9 sm:$0xff] %v1018_v52 }
 0x561   : > { %1039 = vst [vmem:[#allocation1 + $0x4] ss:$9 sm:$0xff] %v1019_v53 }
 0x562   : > { %1041 = vst [vmem:[#allocation1 + $0x5] ss:$9 sm:$0xff] %v1020_v54 }
 0x563   : > { %1043 = vst [vmem:[#allocation1 + $0x6] ss:$9 sm:$0xff] %v1021_v1 }
 0x564   : > { %1045 = vst [vmem:[#allocation1 + $0x7] ss:$9 sm:$0xff] %v1022_v55  ;;  %v1048_v58 = vpop.permute.xlu0 %1047 }
 0x565   : > { %1067 = vmatpush.msra.mxu3 %v1048_v58 }
 0x56b   : > { %v1046_v62 = vld [vmem:[#allocation1] sm:$0xff] }
 0x56c   : > { %1165 = vst [vmem:[#allocation1] ss:$9 sm:$0xff] %v1149_v5  ;;  %1488 = vmatmul.msk.f32.vlgmr.msra.gmra.mxu3 %vm411_vm3, %v1046_v62 }
 0x56d   : > { %1167 = vst [vmem:[#allocation1 + $0x1] ss:$9 sm:$0xff] %v1150_v8 }
 0x56e   : > { %1169 = vst [vmem:[#allocation1 + $0x2] ss:$9 sm:$0xff] %v1151_v3 }
 0x56f   : > { %1171 = vst [vmem:[#allocation1 + $0x3] ss:$9 sm:$0xff] %v1152_v10 }
 0x570   : > { %1173 = vst [vmem:[#allocation1 + $0x4] ss:$9 sm:$0xff] %v1153_v4 }
 0x571   : > { %1175 = vst [vmem:[#allocation1 + $0x5] ss:$9 sm:$0xff] %v1154_v11 }
 0x572   : > { %1177 = vst [vmem:[#allocation1 + $0x6] ss:$9 sm:$0xff] %v1155_v12 }
 0x573   : > { %1179 = vst [vmem:[#allocation1 + $0x7] ss:$9 sm:$0xff] %v1156_v13 }
 0x57a   : > { %v1180_v14 = vld [vmem:[#allocation1] sm:$0xff] }
 0x57b   : > { %v1182_v15 = vsel %vm411_vm3, %v1180_v14, -inf  ;;  %v1356_v14 = vld [vmem:[#allocation2 + $0x50] sm:$0xff] }
 0x57c   : > { %1183 = vmax.xlane.f32.xlu1 %v1182_v15  ;;  %v1355_v15 = vld [vmem:[#allocation2 + $0x48] sm:$0xff] }
 0x595   : > { %1330 = vrot.lane.b32.xlu1 %v1848_v38, %s1643_s15 }
 0x5ef   : > { %v1184_v16 = vpop.xlane.xlu1 %1183  ;;  %v1069_v17 = vpop.f32.mrf.mxu3 }
 0x5f0   : > { %v1186_v18 = vperm.slane %v1184_v16, 0  ;;  %v1187_v19 = vperm.slane %v1184_v16, 1  ;;  %v1188_v20 = vperm.slane %v1184_v16, 2  ;;  %v1189_v21 = vperm.slane %v1184_v16, 3  ;;  %1334 = vrot.lane.b32.xlu0 %v1069_v17, %s1646_s24  ;;  %v1353_v17 = vld [vmem:[#allocation2 + $0x38] sm:$0xff] }
 0x5f1   : > { %v1190_v22 = vperm.slane %v1184_v16, 4  ;;  %v1191_v33 = vperm.slane %v1184_v16, 5  ;;  %v1192_v23 = vperm.slane %v1184_v16, 6  ;;  %v1193_v24 = vperm.slane %v1184_v16, 7  ;;  %v1354_v16 = vld [vmem:[#allocation2 + $0x40] sm:$0xff] }
 0x5f2   : > { %v1202_v25 = vsub.f32 %v1149_v5, %v1186_v18  ;;  %v1203_v26 = vsub.f32 %v1150_v8, %v1187_v19  ;;  %v1204_v27 = vsub.f32 %v1151_v3, %v1188_v20  ;;  %v1205_v28 = vsub.f32 %v1152_v10, %v1189_v21  ;;  %v1361_v10 = vld [vmem:[#allocation2 + $0x78] sm:$0xff]  ;;  %v1352_v18 = vld [vmem:[#allocation2 + $0x30] sm:$0xff]  ;;  %v1351_v19 = vld [vmem:[#allocation2 + $0x28] sm:$0xff] }
 0x5f3   : > { %v1206_v29 = vsub.f32 %v1153_v4, %v1190_v22  ;;  %v1207_v30 = vsub.f32 %v1154_v11, %v1191_v33  ;;  %v1208_v31 = vsub.f32 %v1155_v12, %v1192_v23  ;;  %v1209_v36 = vsub.f32 %v1156_v13, %v1193_v24  ;;  %v1360_v4 = vld [vmem:[#allocation2 + $0x70] sm:$0xff]  ;;  %1362 = vmatpush.msra.mxu1 %v1361_v10  ;;  %v1359_v11 = vld [vmem:[#allocation2 + $0x68] sm:$0xff]  ;;  %v1358_v12 = vld [vmem:[#allocation2 + $0x60] sm:$0xff] }
 0x5f4   : > { %v1210_v38 = vmul.f32 1.442695, %v1202_v25  ;;  %v1212_v32 = vmul.f32 1.442695, %v1203_v26  ;;  %v1214_v35 = vmul.f32 1.442695, %v1204_v27 }
 0x5f5   : > { %v1216_v37 = vmul.f32 1.442695, %v1205_v28  ;;  %v1218_v39 = vmul.f32 1.442695, %v1206_v29  ;;  %v1220_v40 = vmul.f32 1.442695, %v1207_v30  ;;  %1363 = vmatpush.msra.mxu1 %v1360_v4 }
 0x5f6   : > { %1577 = vpow2.f32 %v1210_v38  ;;  %v1222_v41 = vmul.f32 1.442695, %v1208_v31  ;;  %v1224_v43 = vmul.f32 1.442695, %v1209_v36  ;;  %v1357_v13 = vld [vmem:[#allocation2 + $0x58] sm:$0xff]  ;;  %v1350_v20 = vld [vmem:[#allocation2 + $0x20] sm:$0xff] }
 0x5f7   : > { %1579 = vpow2.f32 %v1212_v32  ;;  %1364 = vmatpush.msra.mxu1 %v1359_v11  ;;  %v1349_v21 = vld [vmem:[#allocation2 + $0x18] sm:$0xff]  ;;  %v1348_v22 = vld [vmem:[#allocation2 + $0x10] sm:$0xff]  ;;  %v1347_v33 = vld [vmem:[#allocation2 + $0x8] sm:$0xff] }
 0x5f8   : > { %1581 = vpow2.f32 %v1214_v35  ;;  %v1346_v24 = vld [vmem:[#allocation2] sm:$0xff]  ;;  %v301_v31 = vld [vmem:[%s290_s29] sm:$0xff] }
 0x5f9   : > { %1583 = vpow2.f32 %v1216_v37  ;;  %1365 = vmatpush.msra.mxu1 %v1358_v12 }
 0x5fa   : > { %1585 = vpow2.f32 %v1218_v39 }
 0x5fb   : > { %1587 = vpow2.f32 %v1220_v40  ;;  %1366 = vmatpush.msra.mxu1 %v1357_v13 }
 0x5fc   : > { %v1578_v44 = vpop.eup %1577  ;;  %1589 = vpow2.f32 %v1222_v41 }
 0x5fd   : > { %v1580_v45 = vpop.eup %1579  ;;  %1591 = vpow2.f32 %v1224_v43  ;;  %1234 = vst [vmem:[#allocation1] ss:$9 sm:$0xff] %v1578_v44  ;;  %1367 = vmatpush.msra.mxu1 %v1356_v14 }
 0x5fe   : > { %v1582_v46 = vpop.eup %1581  ;;  %1236 = vst [vmem:[#allocation1 + $0x1] ss:$9 sm:$0xff] %v1580_v45 }
 0x5ff   : > { %v1584_v47 = vpop.eup %1583  ;;  %1238 = vst [vmem:[#allocation1 + $0x2] ss:$9 sm:$0xff] %v1582_v46  ;;  %1368 = vmatpush.msra.mxu1 %v1355_v15 }
 0x600   : > { %v1586_v48 = vpop.eup %1585  ;;  %1240 = vst [vmem:[#allocation1 + $0x3] ss:$9 sm:$0xff] %v1584_v47 }
 0x601   : > { %v1588_v7 = vpop.eup %1587  ;;  %1242 = vst [vmem:[#allocation1 + $0x4] ss:$9 sm:$0xff] %v1586_v48  ;;  %1369 = vmatpush.msra.mxu1 %v1354_v16 }
 0x602   : > { %v1590_v49 = vpop.eup %1589  ;;  %1244 = vst [vmem:[#allocation1 + $0x5] ss:$9 sm:$0xff] %v1588_v7 }
 0x603   : > { %v1592_v50 = vpop.eup %1591  ;;  %1246 = vst [vmem:[#allocation1 + $0x6] ss:$9 sm:$0xff] %v1590_v49  ;;  %1370 = vmatpush.msra.mxu1 %v1353_v17 }
 0x604   : > { %1248 = vst [vmem:[#allocation1 + $0x7] ss:$9 sm:$0xff] %v1592_v50 }
 0x605   : > { %1371 = vmatpush.msra.mxu1 %v1352_v18 }
 0x607   : > { %1372 = vmatpush.msra.mxu1 %v1351_v19  ;;  %v1331_v25 = vpop.permute.xlu1 %1330 }
 0x608   : > { %v1341_v27 = vsel %vm333_vm1, %v1876_v42, %v1331_v25 }
 0x609   : > { %1373 = vmatpush.msra.mxu1 %v1350_v20 }
 0x60b   : > { %v1249_v0 = vld [vmem:[#allocation1] sm:$0xff]  ;;  %1374 = vmatpush.msra.mxu1 %v1349_v21 }
 0x60c   : > { %v1251_v51 = vsel %vm411_vm3, %v1249_v0, 0.0 }
 0x60d   : > { %1252 = vadd.xlane.f32.xlu2 %v1251_v51  ;;  %1375 = vmatpush.msra.mxu1 %v1348_v22 }
 0x60f   : > { %1376 = vmatpush.msra.mxu1 %v1347_v33 }
 0x611   : > { %1377 = vmatpush.msra.mxu1 %v1346_v24 }
 0x625   : > { %1304 = vrot.lane.b32.xlu2 %v1793_v34, %s1643_s15 }
 0x662   : > { %v1335_v26 = vpop.permute.xlu0 %1334 }
 0x663   : > { %v1343_v28 = vsel %vm1342_vm4, %v1341_v27, %v1335_v26 }
 0x680   : > { %v1253_v52 = vpop.xlane.xlu2 %1252 }
 0x681   : > { %1593 = vrcp.f32 %v1253_v52 }
 0x687   : > { %v1594_v53 = vpop.eup %1593 }
 0x688   : > { %v1256_v54 = vperm.slane %v1594_v53, 0  ;;  %v1257_v1 = vperm.slane %v1594_v53, 1  ;;  %v1258_v55 = vperm.slane %v1594_v53, 2  ;;  %v1259_v56 = vperm.slane %v1594_v53, 3  ;;  %v1305_v57 = vpop.permute.xlu2 %1304 }
 0x689   : > { %v1260_v58 = vperm.slane %v1594_v53, 4  ;;  %v1261_v59 = vperm.slane %v1594_v53, 5  ;;  %1324 = vmatpush.msrb.mxu2 %v1305_v57  ;;  %v1262_v60 = vperm.slane %v1594_v53, 6  ;;  %v1263_v5 = vperm.slane %v1594_v53, 7 }
 0x68a   : > { %v1272_v61 = vmul.f32 %v1578_v44, %v1256_v54  ;;  %v1273_v62 = vmul.f32 %v1580_v45, %v1257_v1  ;;  %v1274_v63 = vmul.f32 %v1582_v46, %v1258_v55  ;;  %v1275_v6 = vmul.f32 %v1584_v47, %v1259_v56 }
 0x68b   : > { %v1276_v8 = vmul.f32 %v1586_v48, %v1260_v58  ;;  %v1277_v34 = vmul.f32 %v1588_v7, %v1261_v59  ;;  %v1278_v2 = vmul.f32 %v1590_v49, %v1262_v60  ;;  %v1279_v3 = vmul.f32 %v1592_v50, %v1263_v5 }
 0x68c   : > { %1288 = vst [vmem:[#allocation1] ss:$9 sm:$0xff] %v1272_v61 }
 0x68d   : > { %1290 = vst [vmem:[#allocation1 + $0x1] ss:$9 sm:$0xff] %v1273_v62 }
 0x68e   : > { %1292 = vst [vmem:[#allocation1 + $0x2] ss:$9 sm:$0xff] %v1274_v63 }
 0x68f   : > { %1294 = vst [vmem:[#allocation1 + $0x3] ss:$9 sm:$0xff] %v1275_v6 }
 0x690   : > { %1296 = vst [vmem:[#allocation1 + $0x4] ss:$9 sm:$0xff] %v1276_v8 }
 0x691   : > { %1298 = vst [vmem:[#allocation1 + $0x5] ss:$9 sm:$0xff] %v1277_v34 }
 0x692   : > { %1300 = vst [vmem:[#allocation1 + $0x6] ss:$9 sm:$0xff] %v1278_v2 }
 0x693   : > { %1302 = vst [vmem:[#allocation1 + $0x7] ss:$9 sm:$0xff] %v1279_v3 }
 0x69a   : > { %v1303_v9 = vld [vmem:[#allocation1] sm:$0xff] }
 0x69b   : > { %1491 = vmatmul.msk.f32.vlgmr.msrb.gmra.mxu2 %vm411_vm3, %v1303_v9 }
 0x71e   : > { %v1326_v23 = vpop.f32.mrf.mxu2 }
 0x71f   : > { %1338 = vrot.lane.b32.xlu2 %v1326_v23, %s1644_s22 }
 0x779   : > { %v1339_v29 = vpop.permute.xlu2 %1338 }
 0x77a   : > { %v1345_v30 = vsel %vm1344_vm5, %v1343_v28, %v1339_v29 }
 0x77b   : > { %1378 = vmatmul.f32.vlgmr.msra.gmra.mxu1 %v1345_v30 }
 0x7f8   : > { %v1379_v38 = vpop.f32.mrf.mxu1 }
 0x7f9   : > { %v1382_v32 = vadd.f32 %v1379_v38, %v301_v31 }
 0x7fb   : > { %1383 = vst [vmem:[%s297_s8] sm:$0xff] %v1382_v32 }
 0x7fc PF: > { %s17_s21 = sadd.s32 1, %s1635_s21  }
 0x7fd   : > { %p14_p7 = scmp.ge.s32.totalorder %s17_s21, 4  }
 0x7ff   :  { %16 = sbr.rel (!%p14_p7) target bundleno = 1 (0x1), region = 169 }
 0x804   :  { %1403 = vsyncpa [#allocation3], 1 }
 0x805   :  { %1405 = vsyncpa [#allocation3 + $0x1], 1 }

// kernel: encode.13
= control target key start
LH: loop header
LB: loop body
LE: loop exit
PB: predicated region body
PF: predicated region fallthrough
CT: control target
= control target key end

     0   :  { %vm91_vm0 = vcmask 58368   ;;  %v64_v2 = vlaneseq  ;;  %s245_s0 = inlined_call_operand.vmem [shape: f32[2,8,128], index: 0, kind: input, shape index: {}]   ;;  %s246_s1 = inlined_call_operand.vmem [shape: f32[1,128], index: 1, kind: input, shape index: {}]   ;;  %s247_s2 = inlined_call_operand.vmem [shape: f32[2,8], index: 2, kind: input, shape index: {}]   ;;  %s248_s3 = inlined_call_operand.hbm [shape: f32[2,128], index: 3, kind: output, shape index: {}]  }
   0x1   :  { %v62_v0 = vld [vmem:[%s247_s2] sm:$0x3]  ;;  %v16_v1 = vld [vmem:[%s245_s0 + $0x8] sm:$0xff] }
   0x2   :  { %v92_v3 = vsel %vm91_vm0, %v62_v0, 0.0  ;;  %v18_v4 = vmul.f32 %v16_v1, %v16_v1 }
   0x3   :  { %8 = vsyncpa [#allocation3], 0  ;;  %93 = vadd.xlane.f32.xlu1 %v92_v3  ;;  %v65_v5 = vshrl.u32 %v64_v2, 7  ;;  %v226_v6 = vld [vmem:[%s245_s0] sm:$0xff]  ;;  %v63_v8 = vperm.slane %v62_v0, 0  ;;  %v70_v9 = vperm.slane %v62_v0, 1 }
   0x4   :  { %21 = vadd.xlane.f32.xlu0 %v18_v4  ;;  %v17_v7 = vmul.f32 %v226_v6, %v226_v6  ;;  %v195_v10 = vmov 128.0   ;;  %v158_v34 = vld [vmem:[%s246_s1] ss:$0 sm:$0xff]  ;;  %s196_s1 = smov [#allocation2]   ;;  %s144_s21 = sshll.u32 %s248_s3, 4  ;;  %vm133_vm0 = vcmask 1041409   ;;  %s145_s21 = int_to_ptr.hbm [resolvable:$true] %s144_s21 }
   0x5   :  { %155 = vset.pattern.permute.xlu1 %v65_v5  ;;  %156 = vset.pattern.permute.xlu2 %v65_v5  ;;  %159 = vrcp.f32 %v195_v10  ;;  %s142_s18 = sshll.u32 %s196_s1, 4  ;;  %s143_s18 = int_to_ptr.vmem [resolvable:$true] %s142_s18 }
   0x6   :  { %157 = vset.pattern.permute.xlu0 %v65_v5 }
   0xb   :  { %v160_v11 = vpop.eup %159 }
   0xc   :  { %19 = vadd.xlane.f32.xlu0 %v17_v7  ;;  %v24_v12 = vmul.f32 128.0, %v160_v11  ;;  %vm28_vm1 = vweird.f32 %v160_v11 }
   0xd   :  { %68 = vperm.xlu2 %156, %v63_v8  }
   0xe   :  { %v25_v13 = vsub.f32 1.0, %v24_v12 }
  0x10   :  { %v26_v14 = vmul.f32 %v160_v11, %v25_v13 }
  0x12   :  { %v27_v15 = vadd.f32 %v160_v11, %v26_v14 }
  0x14   :  { %v29_v16 = vsel %vm28_vm1, %v160_v11, %v27_v15 }
  0x1c   :  { %75 = vperm.xlu1 %155, %v70_v9  }
  0x67   :  { %v69_v53 = vpop.permute.xlu2 %68 }
  0x76   :  { %v94_v20 = vpop.xlane.xlu1 %93 }
  0x77   :  { %v22_v17 = vpop.xlane.xlu0 %21  ;;  %v230_v21 = vmax.f32 %v94_v20, 1.0 }
  0x78   :  { %v31_v18 = vmul.f32 %v29_v16, %v22_v17 }
  0x79   :  { %v97_v26 = vrot.slane %v230_v21, 1  ;;  %vm105_vm11 = vweird.f32 %v230_v21  ;;  %v111_v8 = vand.u32 2147483648, %v230_v21  ;;  %v109_v10 = vand.u32 2147483647, %v230_v21 }
  0x7a   :  { %v33_v19 = vadd.f32 1e-05, %v31_v18 }
  0x7b   :  { %vm120_vm8 = vweird.f32 %v97_v26  ;;  %v126_v0 = vand.u32 2147483648, %v97_v26  ;;  %v112_v15 = vor.u32 1.1754944e-38, %v111_v8  ;;  %vm110_vm15 = vcmp.eq.f32.partialorder %v109_v10, 8.507059e+37 }
  0x7c   :  { %161 = vrsqrt.f32 %v33_v19  ;;  %vm50_vm3 = vweird.f32 %v33_v19 }
  0x7d   :  { %v127_v7 = vor.u32 1.1754944e-38, %v126_v0 }
  0x7f   :  { %v20_v22 = vpop.xlane.xlu0 %19 }
  0x80   :  { %v30_v23 = vmul.f32 %v29_v16, %v20_v22 }
  0x82   :  { %v162_v24 = vpop.eup %161  ;;  %v32_v25 = vadd.f32 1e-05, %v30_v23 }
  0x83   :  { %v45_v27 = vmul.f32 %v162_v24, %v33_v19  ;;  %vm51_vm2 = vweird.f32 %v162_v24 }
  0x84   :  { %163 = vrsqrt.f32 %v32_v25  ;;  %vm52_vm4 = vmor %vm50_vm3, %vm51_vm2  ;;  %vm40_vm6 = vweird.f32 %v32_v25 }
  0x85   :  { %v46_v28 = vmul.f32 %v162_v24, %v45_v27  ;;  %165 = vrcp.f32 %v97_v26 }
  0x86   :  { %167 = vrcp.f32 %v230_v21 }
  0x87   :  { %v47_v29 = vmul.f32 0.5, %v46_v28 }
  0x89   :  { %v48_v30 = vsub.f32 1.5, %v47_v29 }
  0x8a   :  { %v164_v31 = vpop.eup %163 }
  0x8b   :  { %v35_v32 = vmul.f32 %v164_v31, %v32_v25  ;;  %v49_v33 = vmul.f32 %v162_v24, %v48_v30  ;;  %v166_v35 = vpop.eup %165  ;;  %vm41_vm5 = vweird.f32 %v164_v31 }
  0x8c   :  { %v116_v41 = vmul.f32 %v166_v35, %v97_v26  ;;  %v168_v43 = vpop.eup %167  ;;  %vm42_vm7 = vmor %vm40_vm6, %vm41_vm5  ;;  %vm121_vm9 = vweird.f32 %v166_v35 }
  0x8d   :  { %v36_v36 = vmul.f32 %v164_v31, %v35_v32  ;;  %v53_v37 = vsel %vm52_vm4, %v162_v24, %v49_v33  ;;  %v101_v47 = vmul.f32 %v168_v43, %v230_v21  ;;  %vm122_vm10 = vmor %vm120_vm8, %vm121_vm9  ;;  %vm106_vm12 = vweird.f32 %v168_v43 }
  0x8e   :  { %v55_v38 = vmul.f32 %v53_v37, %v16_v1  ;;  %v76_v40 = vpop.permute.xlu1 %75  ;;  %v117_v48 = vsub.f32 1.0, %v116_v41  ;;  %v124_v1 = vand.u32 2147483647, %v97_v26  ;;  %vm107_vm14 = vmor %vm105_vm11, %vm106_vm12 }
  0x8f   :  { %v37_v39 = vmul.f32 0.5, %v36_v36  ;;  %v102_v54 = vsub.f32 1.0, %v101_v47 }
  0x90   :  { %v61_v42 = vmul.f32 %v158_v34, %v55_v38  ;;  %v118_v55 = vmul.f32 %v166_v35, %v117_v48  ;;  %vm125_vm13 = vcmp.eq.f32.partialorder %v124_v1, 8.507059e+37 }
  0x91   :  { %v38_v44 = vsub.f32 1.5, %v37_v39  ;;  %v103_v63 = vmul.f32 %v168_v43, %v102_v54 }
  0x92   :  { %v78_v45 = vmul.f32 %v76_v40, %v61_v42  ;;  %v119_v60 = vadd.f32 %v166_v35, %v118_v55 }
  0x93   :  { %v39_v46 = vmul.f32 %v164_v31, %v38_v44 }
  0x94   :  { %v85_v49 = vrot.slane %v78_v45, 4  ;;  %v123_v3 = vsel %vm122_vm10, %v166_v35, %v119_v60 }
  0x95   :  { %v43_v50 = vsel %vm42_vm7, %v164_v31, %v39_v46  ;;  %v128_v11 = vsel %vm125_vm13, %v127_v7, %v123_v3 }
  0x96   :  { %v86_v51 = vadd.f32 %v85_v49, %v78_v45  ;;  %v54_v52 = vmul.f32 %v43_v50, %v226_v6  ;;  %v104_v6 = vadd.f32 %v168_v43, %v103_v63 }
  0x98   :  { %v87_v56 = vrot.slane %v86_v51, 2  ;;  %v60_v57 = vmul.f32 %v158_v34, %v54_v52  ;;  %v108_v14 = vsel %vm107_vm14, %v168_v43, %v104_v6 }
  0x99   :  { %v113_v17 = vsel %vm110_vm15, %v112_v15, %v108_v14 }
  0x9a   :  { %v88_v58 = vadd.f32 %v87_v56, %v86_v51  ;;  %v77_v59 = vmul.f32 %v69_v53, %v60_v57 }
  0x9c   :  { %v89_v61 = vrot.slane %v88_v58, 1  ;;  %v79_v62 = vrot.slane %v77_v59, 4 }
  0x9e   :  { %v80_v2 = vadd.f32 %v79_v62, %v77_v59  ;;  %v90_v4 = vadd.f32 %v89_v61, %v88_v58 }
  0xa0   :  { %v81_v5 = vrot.slane %v80_v2, 2  ;;  %v129_v12 = vmul.f32 %v128_v11, %v90_v4 }
  0xa2   :  { %v82_v9 = vadd.f32 %v81_v5, %v80_v2  ;;  %v132_v19 = vrot.slane %v129_v12, 7 }
  0xa4   :  { %v83_v13 = vrot.slane %v82_v9, 1 }
  0xa6   :  { %v84_v16 = vadd.f32 %v83_v13, %v82_v9 }
  0xa8   :  { %v114_v18 = vmul.f32 %v113_v17, %v84_v16 }
  0xaa   :  { %v134_v20 = vsel %vm133_vm0, %v132_v19, %v114_v18 }
  0xab   :  { %136 = vst [vmem:[#allocation2] sm:$0x3] %v134_v20 }
  0xac   :  { %147 = dma.vmem_to_hbm [thread:$0]  %s143_s18, 32, %s145_s21, [#allocation3]  }
  0xad   :  { %193 = dma.done.wait [#allocation3], 32  }
  0xae   :  { %194 = vsyncadd [#allocation3], 4294967264 }
  0xaf   :  { %152 = vsyncpa [#allocation3], 1 }

</bundles_post_ra>
